<compile_context>
chip_gen: v6e
topology: v6e:2x2x1
jax: 0.10.0
libtpu: 0.0.40
codegen_flags: <defaults>
</compile_context>

<pallas_src>
import functools
import math

import jax
import jax.numpy as jnp
from jax.experimental import pallas as pl
from jax.experimental.pallas import tpu as pltpu


def _round_up(x, m):
    return (x + m - 1) // m * m


def _msda_sample_kernel(pk_ref, val_ref, out_ref, *,
                        n_levels, n_points, n_group, d_head, level_info):
    """Deformable sampling for ONE (batch, head-group, query-tile) grid cell.

    pk_ref  (tile, c_pad)          f32   packed columns: [ref-points | offsets | attention]
    val_ref (lin_pad, G*d_head)    bf16  projected value columns of the G heads in this group
    out_ref (tile, G*d_head)       f32
    level_info: per level (h_l, w_l, hw_pad, start_pad), static Python ints.
    """
    f32 = jnp.float32
    L, P, G, dh = n_levels, n_points, n_group, d_head
    lp = L * P
    pk = pk_ref[...]
    lq = pk.shape[0]
    off_base = 2 * L
    att_base = 2 * L + G * 2 * lp

    accs = [jnp.zeros((lq, dh), f32) for _ in range(G)]

    for l, (h_l, w_l, hw_pad, start) in enumerate(level_info):
        hw = h_l * w_l
        hf, wf = float(h_l), float(w_l)
        # small (1, n) iotas only — broadcast against (lq, 1) index columns.
        iota_h = jax.lax.broadcasted_iota(jnp.int32, (1, h_l), 1)
        iota_w = jax.lax.broadcasted_iota(jnp.int32, (1, w_l), 1)
        # grid_sample(align_corners=False): x_px = loc_x * W - 0.5, loc_x = rp_x + off_x / W
        #   => x_px = rp_x * W + off_x - 0.5   (divide removed); hoisted per level.
        rpx_w = pk[:, 2 * l:2 * l + 1] * wf - 0.5
        rpy_h = pk[:, 2 * l + 1:2 * l + 2] * hf - 0.5

        for g in range(G):
            # per-(level, head) sampling weights, accumulated over points in separable
            # 3-D form; flattened ONCE before the dot.
            wmat3 = jnp.zeros((lq, h_l, w_l), f32)
            for p in range(P):
                oc = off_base + g * 2 * lp + (l * P + p) * 2
                ac = att_base + g * lp + l * P + p
                xp = rpx_w + pk[:, oc:oc + 1]
                yp = rpy_h + pk[:, oc + 1:oc + 2]
                x0 = jnp.floor(xp)
                y0 = jnp.floor(yp)
                lx = xp - x0
                ly = yp - y0
                x0i = x0.astype(jnp.int32)
                y0i = y0.astype(jnp.int32)
                aw = pk[:, ac:ac + 1]
                # Separable row/column one-hots.  Out-of-range corner indices miss the
                # iota and therefore contribute exactly 0 (grid_sample padding_mode='zeros').
                ay = (jnp.where(iota_h == y0i, 1.0 - ly, 0.0) +
                      jnp.where(iota_h == y0i + 1, ly, 0.0)) * aw          # (lq, h_l)
                ax = (jnp.where(iota_w == x0i, 1.0 - lx, 0.0) +
                      jnp.where(iota_w == x0i + 1, lx, 0.0))               # (lq, w_l)
                wmat3 = wmat3 + ay[:, :, None] * ax[:, None, :]
            wmat = wmat3.reshape(lq, hw).astype(val_ref.dtype)
            if hw_pad > hw:
                wmat = jnp.concatenate(
                    [wmat, jnp.zeros((lq, hw_pad - hw), val_ref.dtype)], axis=1)
            # (lq, hw_pad) @ (hw_pad, d_head) on the MXU: bf16 operands, f32 accumulation.
            accs[g] = accs[g] + jnp.dot(
                wmat, val_ref[start:start + hw_pad, g * dh:(g + 1) * dh],
                preferred_element_type=f32)

    out_ref[...] = jnp.concatenate(accs, axis=1).astype(out_ref.dtype)


def ms_deform_attn_pallas(query, reference_points, input_flatten,
                          spatial_shapes, level_start_index, params,
                          *, n_heads, n_levels, n_points,
                          input_padding_mask=None,
                          lq_tile=128,              # 96-128 for v5e/v7x; up to 256 on v6e
                          vmem_limit_bytes=None):
    """MSDeformAttn.forward.  spatial_shapes / level_start_index: static Python ints."""
    wv, bv, wo, bo, wa, ba, wout, bout = params
    n, lq, d = query.shape
    _, lin, _ = input_flatten.shape
    assert d % n_heads == 0
    assert reference_points.shape[-1] == 2  # TODO(synk): 4-coord reference boxes
    d_head = d // n_heads
    lp = n_levels * n_points

    spatial_shapes = tuple((int(h), int(w)) for (h, w) in spatial_shapes)
    level_starts = tuple(int(s) for s in level_start_index)
    assert sum(h * w for h, w in spatial_shapes) == lin

    f32 = jnp.float32
    query = query.astype(f32)

    # heads per grid cell: G heads share a kernel invocation -> lane-dense output block.
    n_group = math.gcd(n_heads, max(1, 128 // d_head))
    hg = n_heads // n_group
    gdh = n_group * d_head

    # ---- projections: hoisted to XLA matmuls (not recomputed per tile / head)
    value = jnp.dot(input_flatten.astype(f32), wv) + bv                       # (N, Lin, D)
    if input_padding_mask is not None:
        value = jnp.where(input_padding_mask[..., None], 0.0, value)
    offs = jnp.dot(query, wo) + bo                                            # (N, Lq, H*2LP)
    attn = jnp.dot(query, wa) + ba                                            # (N, Lq, H*LP)
    attn = jax.nn.softmax(attn.reshape(n, lq, n_heads, lp), axis=-1)

    # ---- head-group-major layouts
    value_h = value.reshape(n, lin, hg, n_group, d_head)
    value_h = value_h.transpose(0, 2, 1, 3, 4).reshape(n, hg, lin, gdh)       # (N, HG, Lin, G*Dh)
    offs_h = offs.reshape(n, lq, hg, n_group * 2 * lp).transpose(0, 2, 1, 3)  # (N, HG, Lq, G*2LP)
    attn_h = attn.reshape(n, lq, hg, n_group * lp).transpose(0, 2, 1, 3)      # (N, HG, Lq, G*LP)
    rp_h = jnp.broadcast_to(
        reference_points.reshape(n, 1, lq, 2 * n_levels).astype(f32),
        (n, hg, lq, 2 * n_levels))

    # ---- pack ref-points / offsets / attention into ONE lane-dense f32 input
    c_used = 2 * n_levels + n_group * 2 * lp + n_group * lp
    c_pad = _round_up(c_used, 128)
    packed = jnp.concatenate([rp_h, offs_h, attn_h], axis=-1)
    if c_pad > c_used:
        packed = jnp.pad(packed, ((0, 0), (0, 0), (0, 0), (0, c_pad - c_used)))

    # ---- sublane-align each level's rows of value (16-row tile for bf16); padded rows
    #      are zero and get zero sampling weight, so results are unchanged.
    hw_pads, starts_pad, off = [], [], 0
    for (h_l, w_l) in spatial_shapes:
        hwp = _round_up(h_l * w_l, 16)
        hw_pads.append(hwp)
        starts_pad.append(off)
        off += hwp
    lin_pad = off
    parts = []
    for l, (h_l, w_l) in enumerate(spatial_shapes):
        hw = h_l * w_l
        seg = value_h[:, :, level_starts[l]:level_starts[l] + hw, :]
        if hw_pads[l] > hw:
            seg = jnp.pad(seg, ((0, 0), (0, 0), (0, hw_pads[l] - hw), (0, 0)))
        parts.append(seg)
    value_h = jnp.concatenate(parts, axis=2).astype(jnp.bfloat16)             # (N, HG, Lin_pad, G*Dh)
    level_info = tuple((h, w, hw_pads[l], starts_pad[l])
                       for l, (h, w) in enumerate(spatial_shapes))

    # ---- query tiling (padded attention rows are zero AFTER the softmax -> contribute 0)
    tile = min(_round_up(lq, 8), _round_up(lq_tile, 8))
    lq_pad = _round_up(lq, tile)
    if lq_pad != lq:
        packed = jnp.pad(packed, ((0, 0), (0, 0), (0, lq_pad - lq), (0, 0)))
    n_qt = lq_pad // tile

    # ---- VMEM budget from actual buffer sizes (double-buffered blocks + in-kernel temps)
    if vmem_limit_bytes is None:
        wmat3_b = tile * max(_round_up(h, 8) * _round_up(w, 128)
                             for h, w in spatial_shapes) * 4
        wmat_b = tile * _round_up(max(hw_pads), 128) * 6                      # f32 + bf16
        est = (2 * lin_pad * gdh * 2          # value block, double-buffered, bf16
               + 2 * tile * c_pad * 4         # packed input
               + 2 * tile * gdh * 4           # output block
               + 2 * wmat3_b + wmat_b
               + 2 * tile * max(gdh, 128) * 4
               + (4 << 20))                   # slack for spills / pipeline bookkeeping
        vmem_limit_bytes = int(min(max(est, 16 << 20), 96 << 20))

    kernel = functools.partial(_msda_sample_kernel, n_levels=n_levels, n_points=n_points,
                               n_group=n_group, d_head=d_head, level_info=level_info)

    # grid: (batch, head-group, query-tile).  q innermost AND "arbitrary" so the large
    # (Lin_pad, G*Dh) value block is reused across consecutive query tiles and never split
    # across v7x's two TensorCores; batch / head-group are "parallel".
    grid = (n, hg, n_qt)
    sampled = pl.pallas_call(
        kernel,
        out_shape=jax.ShapeDtypeStruct((n, hg, lq_pad, gdh), f32),
        grid_spec=pltpu.PrefetchScalarGridSpec(
            num_scalar_prefetch=0,
            grid=grid,
            in_specs=[
                pl.BlockSpec((None, None, tile, c_pad), lambda b, h, q: (b, h, q, 0)),
                pl.BlockSpec((None, None, lin_pad, gdh), lambda b, h, q: (b, h, 0, 0)),
            ],
            out_specs=pl.BlockSpec((None, None, tile, gdh),
                                   lambda b, h, q: (b, h, q, 0)),
        ),
        compiler_params=pltpu.CompilerParams(
            dimension_semantics=("parallel", "parallel", "arbitrary"),
            vmem_limit_bytes=vmem_limit_bytes,
        ),
    )(packed, value_h)

    # reassemble heads: (N, HG, Lq, G*Dh) -> (N, Lq, H*Dh) preserving head order
    out = sampled.transpose(0, 2, 1, 3).reshape(n, lq_pad, d)[:, :lq]
    return jnp.dot(out, wout) + bout                                          # output_proj


# ----------------------------- pure-JAX reference (f32) -----------------------------
def ms_deform_attn_ref(query, reference_points, input_flatten,
                       spatial_shapes_py, level_start_py, params,
                       *, n_heads, n_levels, n_points):
    wv, bv, wo, bo, wa, ba, wout, bout = params
    n, lq, d = query.shape
    _, lin, _ = input_flatten.shape
    d_head = d // n_heads

    value = input_flatten @ wv + bv
    value = value.reshape(n, lin, n_heads, d_head)
    offs = (query @ wo + bo).reshape(n, lq, n_heads, n_levels, n_points, 2)
    attn = (query @ wa + ba).reshape(n, lq, n_heads, n_levels * n_points)
    attn = jax.nn.softmax(attn, axis=-1).reshape(n, lq, n_heads, n_levels, n_points)

    out = jnp.zeros((n, lq, n_heads, d_head), jnp.float32)
    n_idx = jnp.arange(n)[:, None, None, None]
    h_idx = jnp.arange(n_heads)[None, None, :, None]
    for l, (h_l, w_l) in enumerate(spatial_shapes_py):
        start = level_start_py[l]
        norm = jnp.array([w_l, h_l], jnp.float32)
        loc = reference_points[:, :, None, l, None, :] + offs[:, :, :, l, :, :] / norm
        v_l = value[:, start:start + h_l * w_l].reshape(n, h_l, w_l, n_heads, d_head)
        xp = loc[..., 0] * w_l - 0.5
        yp = loc[..., 1] * h_l - 0.5
        x0 = jnp.floor(xp)
        y0 = jnp.floor(yp)
        lx = xp - x0
        ly = yp - y0
        for dy in (0, 1):
            for dx in (0, 1):
                xi = x0 + dx
                yi = y0 + dy
                wbl = (ly if dy else (1.0 - ly)) * (lx if dx else (1.0 - lx))
                valid = (xi >= 0) & (xi <= w_l - 1) & (yi >= 0) & (yi <= h_l - 1)
                xc = jnp.clip(xi, 0, w_l - 1).astype(jnp.int32)
                yc = jnp.clip(yi, 0, h_l - 1).astype(jnp.int32)
                sampled = v_l[n_idx, yc, xc, h_idx]
                w = jnp.where(valid, wbl, 0.0) * attn[:, :, :, l, :]
                out = out + (sampled * w[..., None]).sum(axis=3)
    out = out.reshape(n, lq, d)
    return out @ wout + bout


# ----------------------------- parameter init -----------------------------
def init_params(key, d_model, n_heads, n_levels, n_points):
    k1, k2, k3, k4, k5 = jax.random.split(key, 5)
    hlp = n_heads * n_levels * n_points

    def xavier(k, shape):
        bound = math.sqrt(6.0 / (shape[0] + shape[1]))
        return jax.random.uniform(k, shape, jnp.float32, -bound, bound)

    wv = xavier(k1, (d_model, d_model))
    bv = jnp.zeros((d_model,), jnp.float32)
    # module init zeroes these weights; use small random values so the numerical test
    # exercises the query-dependent offset/attention paths.
    wo = 0.02 * jax.random.normal(k2, (d_model, 2 * hlp), jnp.float32)
    thetas = jnp.arange(n_heads, dtype=jnp.float32) * (2.0 * math.pi / n_heads)
    grid = jnp.stack([jnp.cos(thetas), jnp.sin(thetas)], axis=-1)
    grid = grid / jnp.max(jnp.abs(grid), axis=-1, keepdims=True)
    grid = jnp.tile(grid[:, None, None, :], (1, n_levels, n_points, 1))
    grid = grid * jnp.arange(1, n_points + 1, dtype=jnp.float32)[None, None, :, None]
    bo = grid.reshape(-1)
    wa = 0.02 * jax.random.normal(k3, (d_model, hlp), jnp.float32)
    ba = 0.02 * jax.random.normal(k4, (hlp,), jnp.float32)
    wout = xavier(k5, (d_model, d_model))
    bout = jnp.zeros((d_model,), jnp.float32)
    return (wv, bv, wo, bo, wa, ba, wout, bout)


if __name__ == "__main__":
    # small config: d_model=32, n_heads=4, n_levels=2, n_points=2
    D, H, L, P = 32, 4, 2, 2
    N, LQ = 2, 8
    spatial_shapes_py = [(8, 8), (4, 4)]
    level_start_py = [0, 64]
    LIN = sum(h * w for h, w in spatial_shapes_py)

    key = jax.random.PRNGKey(0)
    kq, kr, kx, kp = jax.random.split(key, 4)
    query = jax.random.normal(kq, (N, LQ, D), jnp.float32)
    reference_points = jax.random.uniform(kr, (N, LQ, L, 2), jnp.float32)
    input_flatten = jax.random.normal(kx, (N, LIN, D), jnp.float32)

    params = init_params(kp, D, H, L, P)

    out = ms_deform_attn_pallas(query, reference_points, input_flatten,
                                spatial_shapes_py, level_start_py, params,
                                n_heads=H, n_levels=L, n_points=P)
    out = jax.block_until_ready(out)

    ref = ms_deform_attn_ref(query, reference_points, input_flatten,
                             spatial_shapes_py, level_start_py, params,
                             n_heads=H, n_levels=L, n_points=P)
    ref = jax.block_until_ready(ref)

    assert out.shape == (N, LQ, D)
    assert bool(jnp.all(jnp.isfinite(out)))
    # bf16 value / bf16 sampling-weight MXU operands vs. an all-f32 reference:
    # expected error is a few 1e-3; use a 3e-2 tolerance (inference-grade accuracy).
    err = float(jnp.max(jnp.abs(out - ref)))
    assert bool(jnp.allclose(out, ref, rtol=3e-2, atol=3e-2)), f"max err {err}"
    print("KERNEL_OK")
</pallas_src>

<mosaic_0001>
module attributes {stable_mosaic.version = 11 : i64} {
  func.func @_msda_sample_kernel(%arg0: i32, %arg1: i32, %arg2: i32, %arg3: memref<1x1x8x128xf32, #tpu.memory_space<vmem>>, %arg4: memref<1x1x80x32xbf16, #tpu.memory_space<vmem>>, %arg5: memref<1x1x8x32xf32, #tpu.memory_space<vmem>>) attributes {dimension_semantics = [#tpu.dimension_semantics<parallel>, #tpu.dimension_semantics<parallel>, #tpu.dimension_semantics<arbitrary>], iteration_bounds = array<i64: 2, 1, 1>, scalar_prefetch = 0 : i64, scratch_operands = 0 : i64, tpu.core_type = #tpu.core_type<tc>, window_params = [{transform_indices = @transform_0, window_bounds = array<i64: 1, 1, 8, 128>}, {transform_indices = @transform_1, window_bounds = array<i64: 1, 1, 80, 32>}, {transform_indices = @transform_2, window_bounds = array<i64: 1, 1, 8, 32>}]} {
    %c0 = arith.constant 0 : index
    %c0_0 = arith.constant 0 : index
    %c0_1 = arith.constant 0 : index
    %c0_2 = arith.constant 0 : index
    %0 = vector.load %arg3[%c0, %c0_0, %c0_1, %c0_2] : memref<1x1x8x128xf32, #tpu.memory_space<vmem>>, vector<1x1x8x128xf32>
    %1 = vector.shape_cast %0 : vector<1x1x8x128xf32> to vector<8x128xf32>
    %cst = arith.constant 0.000000e+00 : f32
    %2 = vector.broadcast %cst : f32 to vector<8x8xf32>
    %cst_3 = arith.constant 0.000000e+00 : f32
    %3 = vector.broadcast %cst_3 : f32 to vector<8x8xf32>
    %cst_4 = arith.constant 0.000000e+00 : f32
    %4 = vector.broadcast %cst_4 : f32 to vector<8x8xf32>
    %cst_5 = arith.constant 0.000000e+00 : f32
    %5 = vector.broadcast %cst_5 : f32 to vector<8x8xf32>
    %6 = tpu.iota {dimensions = array<i32: 1>} : vector<1x8xi32>
    %7 = tpu.iota {dimensions = array<i32: 1>} : vector<1x8xi32>
    %8 = vector.extract_strided_slice %1 {offsets = [0, 0], sizes = [8, 1], strides = [1, 1]} : vector<8x128xf32> to vector<8x1xf32>
    %cst_6 = arith.constant 8.000000e+00 : f32
    %9 = vector.broadcast %cst_6 : f32 to vector<8x1xf32>
    %10 = arith.mulf %8, %9 : vector<8x1xf32>
    %cst_7 = arith.constant 5.000000e-01 : f32
    %11 = vector.broadcast %cst_7 : f32 to vector<8x1xf32>
    %12 = arith.subf %10, %11 : vector<8x1xf32>
    %13 = vector.extract_strided_slice %1 {offsets = [0, 1], sizes = [8, 1], strides = [1, 1]} : vector<8x128xf32> to vector<8x1xf32>
    %cst_8 = arith.constant 8.000000e+00 : f32
    %14 = vector.broadcast %cst_8 : f32 to vector<8x1xf32>
    %15 = arith.mulf %13, %14 : vector<8x1xf32>
    %cst_9 = arith.constant 5.000000e-01 : f32
    %16 = vector.broadcast %cst_9 : f32 to vector<8x1xf32>
    %17 = arith.subf %15, %16 : vector<8x1xf32>
    %cst_10 = arith.constant 0.000000e+00 : f32
    %18 = vector.broadcast %cst_10 : f32 to vector<8x8x8xf32>
    %19 = vector.extract_strided_slice %1 {offsets = [0, 4], sizes = [8, 1], strides = [1, 1]} : vector<8x128xf32> to vector<8x1xf32>
    %20 = arith.addf %12, %19 : vector<8x1xf32>
    %21 = vector.extract_strided_slice %1 {offsets = [0, 5], sizes = [8, 1], strides = [1, 1]} : vector<8x128xf32> to vector<8x1xf32>
    %22 = arith.addf %17, %21 : vector<8x1xf32>
    %23 = math.floor %20 : vector<8x1xf32>
    %24 = math.floor %22 : vector<8x1xf32>
    %25 = arith.subf %20, %23 : vector<8x1xf32>
    %26 = arith.subf %22, %24 : vector<8x1xf32>
    %27 = arith.fptosi %23 : vector<8x1xf32> to vector<8x1xi32>
    %28 = arith.fptosi %24 : vector<8x1xf32> to vector<8x1xi32>
    %29 = vector.extract_strided_slice %1 {offsets = [0, 36], sizes = [8, 1], strides = [1, 1]} : vector<8x128xf32> to vector<8x1xf32>
    %30 = vector.broadcast %6 : vector<1x8xi32> to vector<8x8xi32>
    %31 = vector.broadcast %28 : vector<8x1xi32> to vector<8x8xi32>
    %32 = arith.cmpi eq, %30, %31 : vector<8x8xi32>
    %cst_11 = arith.constant 1.000000e+00 : f32
    %33 = vector.broadcast %cst_11 : f32 to vector<8x1xf32>
    %34 = arith.subf %33, %26 : vector<8x1xf32>
    %cst_12 = arith.constant 0.000000e+00 : f32
    %35 = vector.shape_cast %34 : vector<8x1xf32> to vector<8x1xf32>
    %36 = vector.broadcast %35 : vector<8x1xf32> to vector<8x8xf32>
    %37 = vector.broadcast %cst_12 : f32 to vector<8x8xf32>
    %38 = arith.select %32, %36, %37 : vector<8x8xi1>, vector<8x8xf32>
    %c1_i32 = arith.constant 1 : i32
    %39 = vector.broadcast %c1_i32 : i32 to vector<8x1xi32>
    %40 = arith.addi %28, %39 : vector<8x1xi32>
    %41 = vector.broadcast %6 : vector<1x8xi32> to vector<8x8xi32>
    %42 = vector.broadcast %40 : vector<8x1xi32> to vector<8x8xi32>
    %43 = arith.cmpi eq, %41, %42 : vector<8x8xi32>
    %cst_13 = arith.constant 0.000000e+00 : f32
    %44 = vector.shape_cast %26 : vector<8x1xf32> to vector<8x1xf32>
    %45 = vector.broadcast %44 : vector<8x1xf32> to vector<8x8xf32>
    %46 = vector.broadcast %cst_13 : f32 to vector<8x8xf32>
    %47 = arith.select %43, %45, %46 : vector<8x8xi1>, vector<8x8xf32>
    %48 = arith.addf %38, %47 : vector<8x8xf32>
    %49 = vector.broadcast %29 : vector<8x1xf32> to vector<8x8xf32>
    %50 = arith.mulf %48, %49 : vector<8x8xf32>
    %51 = vector.broadcast %7 : vector<1x8xi32> to vector<8x8xi32>
    %52 = vector.broadcast %27 : vector<8x1xi32> to vector<8x8xi32>
    %53 = arith.cmpi eq, %51, %52 : vector<8x8xi32>
    %cst_14 = arith.constant 1.000000e+00 : f32
    %54 = vector.broadcast %cst_14 : f32 to vector<8x1xf32>
    %55 = arith.subf %54, %25 : vector<8x1xf32>
    %cst_15 = arith.constant 0.000000e+00 : f32
    %56 = vector.shape_cast %55 : vector<8x1xf32> to vector<8x1xf32>
    %57 = vector.broadcast %56 : vector<8x1xf32> to vector<8x8xf32>
    %58 = vector.broadcast %cst_15 : f32 to vector<8x8xf32>
    %59 = arith.select %53, %57, %58 : vector<8x8xi1>, vector<8x8xf32>
    %c1_i32_16 = arith.constant 1 : i32
    %60 = vector.broadcast %c1_i32_16 : i32 to vector<8x1xi32>
    %61 = arith.addi %27, %60 : vector<8x1xi32>
    %62 = vector.broadcast %7 : vector<1x8xi32> to vector<8x8xi32>
    %63 = vector.broadcast %61 : vector<8x1xi32> to vector<8x8xi32>
    %64 = arith.cmpi eq, %62, %63 : vector<8x8xi32>
    %cst_17 = arith.constant 0.000000e+00 : f32
    %65 = vector.shape_cast %25 : vector<8x1xf32> to vector<8x1xf32>
    %66 = vector.broadcast %65 : vector<8x1xf32> to vector<8x8xf32>
    %67 = vector.broadcast %cst_17 : f32 to vector<8x8xf32>
    %68 = arith.select %64, %66, %67 : vector<8x8xi1>, vector<8x8xf32>
    %69 = arith.addf %59, %68 : vector<8x8xf32>
    %70 = vector.shape_cast %50 : vector<8x8xf32> to vector<8x8x1xf32>
    %71 = vector.shape_cast %69 : vector<8x8xf32> to vector<8x1x8xf32>
    %72 = vector.broadcast %70 : vector<8x8x1xf32> to vector<8x8x8xf32>
    %73 = vector.broadcast %71 : vector<8x1x8xf32> to vector<8x8x8xf32>
    %74 = arith.mulf %72, %73 : vector<8x8x8xf32>
    %75 = arith.addf %18, %74 : vector<8x8x8xf32>
    %76 = vector.extract_strided_slice %1 {offsets = [0, 6], sizes = [8, 1], strides = [1, 1]} : vector<8x128xf32> to vector<8x1xf32>
    %77 = arith.addf %12, %76 : vector<8x1xf32>
    %78 = vector.extract_strided_slice %1 {offsets = [0, 7], sizes = [8, 1], strides = [1, 1]} : vector<8x128xf32> to vector<8x1xf32>
    %79 = arith.addf %17, %78 : vector<8x1xf32>
    %80 = math.floor %77 : vector<8x1xf32>
    %81 = math.floor %79 : vector<8x1xf32>
    %82 = arith.subf %77, %80 : vector<8x1xf32>
    %83 = arith.subf %79, %81 : vector<8x1xf32>
    %84 = arith.fptosi %80 : vector<8x1xf32> to vector<8x1xi32>
    %85 = arith.fptosi %81 : vector<8x1xf32> to vector<8x1xi32>
    %86 = vector.extract_strided_slice %1 {offsets = [0, 37], sizes = [8, 1], strides = [1, 1]} : vector<8x128xf32> to vector<8x1xf32>
    %87 = vector.broadcast %6 : vector<1x8xi32> to vector<8x8xi32>
    %88 = vector.broadcast %85 : vector<8x1xi32> to vector<8x8xi32>
    %89 = arith.cmpi eq, %87, %88 : vector<8x8xi32>
    %cst_18 = arith.constant 1.000000e+00 : f32
    %90 = vector.broadcast %cst_18 : f32 to vector<8x1xf32>
    %91 = arith.subf %90, %83 : vector<8x1xf32>
    %cst_19 = arith.constant 0.000000e+00 : f32
    %92 = vector.shape_cast %91 : vector<8x1xf32> to vector<8x1xf32>
    %93 = vector.broadcast %92 : vector<8x1xf32> to vector<8x8xf32>
    %94 = vector.broadcast %cst_19 : f32 to vector<8x8xf32>
    %95 = arith.select %89, %93, %94 : vector<8x8xi1>, vector<8x8xf32>
    %c1_i32_20 = arith.constant 1 : i32
    %96 = vector.broadcast %c1_i32_20 : i32 to vector<8x1xi32>
    %97 = arith.addi %85, %96 : vector<8x1xi32>
    %98 = vector.broadcast %6 : vector<1x8xi32> to vector<8x8xi32>
    %99 = vector.broadcast %97 : vector<8x1xi32> to vector<8x8xi32>
    %100 = arith.cmpi eq, %98, %99 : vector<8x8xi32>
    %cst_21 = arith.constant 0.000000e+00 : f32
    %101 = vector.shape_cast %83 : vector<8x1xf32> to vector<8x1xf32>
    %102 = vector.broadcast %101 : vector<8x1xf32> to vector<8x8xf32>
    %103 = vector.broadcast %cst_21 : f32 to vector<8x8xf32>
    %104 = arith.select %100, %102, %103 : vector<8x8xi1>, vector<8x8xf32>
    %105 = arith.addf %95, %104 : vector<8x8xf32>
    %106 = vector.broadcast %86 : vector<8x1xf32> to vector<8x8xf32>
    %107 = arith.mulf %105, %106 : vector<8x8xf32>
    %108 = vector.broadcast %7 : vector<1x8xi32> to vector<8x8xi32>
    %109 = vector.broadcast %84 : vector<8x1xi32> to vector<8x8xi32>
    %110 = arith.cmpi eq, %108, %109 : vector<8x8xi32>
    %cst_22 = arith.constant 1.000000e+00 : f32
    %111 = vector.broadcast %cst_22 : f32 to vector<8x1xf32>
    %112 = arith.subf %111, %82 : vector<8x1xf32>
    %cst_23 = arith.constant 0.000000e+00 : f32
    %113 = vector.shape_cast %112 : vector<8x1xf32> to vector<8x1xf32>
    %114 = vector.broadcast %113 : vector<8x1xf32> to vector<8x8xf32>
    %115 = vector.broadcast %cst_23 : f32 to vector<8x8xf32>
    %116 = arith.select %110, %114, %115 : vector<8x8xi1>, vector<8x8xf32>
    %c1_i32_24 = arith.constant 1 : i32
    %117 = vector.broadcast %c1_i32_24 : i32 to vector<8x1xi32>
    %118 = arith.addi %84, %117 : vector<8x1xi32>
    %119 = vector.broadcast %7 : vector<1x8xi32> to vector<8x8xi32>
    %120 = vector.broadcast %118 : vector<8x1xi32> to vector<8x8xi32>
    %121 = arith.cmpi eq, %119, %120 : vector<8x8xi32>
    %cst_25 = arith.constant 0.000000e+00 : f32
    %122 = vector.shape_cast %82 : vector<8x1xf32> to vector<8x1xf32>
    %123 = vector.broadcast %122 : vector<8x1xf32> to vector<8x8xf32>
    %124 = vector.broadcast %cst_25 : f32 to vector<8x8xf32>
    %125 = arith.select %121, %123, %124 : vector<8x8xi1>, vector<8x8xf32>
    %126 = arith.addf %116, %125 : vector<8x8xf32>
    %127 = vector.shape_cast %107 : vector<8x8xf32> to vector<8x8x1xf32>
    %128 = vector.shape_cast %126 : vector<8x8xf32> to vector<8x1x8xf32>
    %129 = vector.broadcast %127 : vector<8x8x1xf32> to vector<8x8x8xf32>
    %130 = vector.broadcast %128 : vector<8x1x8xf32> to vector<8x8x8xf32>
    %131 = arith.mulf %129, %130 : vector<8x8x8xf32>
    %132 = arith.addf %75, %131 : vector<8x8x8xf32>
    %133 = vector.shape_cast %132 : vector<8x8x8xf32> to vector<8x64xf32>
    %134 = arith.truncf %133 : vector<8x64xf32> to vector<8x64xbf16>
    %c0_26 = arith.constant 0 : index
    %c0_27 = arith.constant 0 : index
    %c0_28 = arith.constant 0 : index
    %c0_29 = arith.constant 0 : index
    %135 = vector.load %arg4[%c0_26, %c0_27, %c0_28, %c0_29] : memref<1x1x80x32xbf16, #tpu.memory_space<vmem>>, vector<1x1x64x8xbf16>
    %136 = vector.shape_cast %135 : vector<1x1x64x8xbf16> to vector<64x8xbf16>
    %cst_30 = arith.constant dense<0.000000e+00> : vector<8x8xf32>
    %137 = tpu.matmul %134, %136, %cst_30 {dimension_numbers = #tpu.dot_dimension_numbers<[1], [0], [0], [1], [0, 0, 1, 1], [], []>} : vector<8x64xbf16>, vector<64x8xbf16>, vector<8x8xf32> -> vector<8x8xf32>
    %138 = arith.addf %2, %137 : vector<8x8xf32>
    %cst_31 = arith.constant 0.000000e+00 : f32
    %139 = vector.broadcast %cst_31 : f32 to vector<8x8x8xf32>
    %140 = vector.extract_strided_slice %1 {offsets = [0, 12], sizes = [8, 1], strides = [1, 1]} : vector<8x128xf32> to vector<8x1xf32>
    %141 = arith.addf %12, %140 : vector<8x1xf32>
    %142 = vector.extract_strided_slice %1 {offsets = [0, 13], sizes = [8, 1], strides = [1, 1]} : vector<8x128xf32> to vector<8x1xf32>
    %143 = arith.addf %17, %142 : vector<8x1xf32>
    %144 = math.floor %141 : vector<8x1xf32>
    %145 = math.floor %143 : vector<8x1xf32>
    %146 = arith.subf %141, %144 : vector<8x1xf32>
    %147 = arith.subf %143, %145 : vector<8x1xf32>
    %148 = arith.fptosi %144 : vector<8x1xf32> to vector<8x1xi32>
    %149 = arith.fptosi %145 : vector<8x1xf32> to vector<8x1xi32>
    %150 = vector.extract_strided_slice %1 {offsets = [0, 40], sizes = [8, 1], strides = [1, 1]} : vector<8x128xf32> to vector<8x1xf32>
    %151 = vector.broadcast %6 : vector<1x8xi32> to vector<8x8xi32>
    %152 = vector.broadcast %149 : vector<8x1xi32> to vector<8x8xi32>
    %153 = arith.cmpi eq, %151, %152 : vector<8x8xi32>
    %cst_32 = arith.constant 1.000000e+00 : f32
    %154 = vector.broadcast %cst_32 : f32 to vector<8x1xf32>
    %155 = arith.subf %154, %147 : vector<8x1xf32>
    %cst_33 = arith.constant 0.000000e+00 : f32
    %156 = vector.shape_cast %155 : vector<8x1xf32> to vector<8x1xf32>
    %157 = vector.broadcast %156 : vector<8x1xf32> to vector<8x8xf32>
    %158 = vector.broadcast %cst_33 : f32 to vector<8x8xf32>
    %159 = arith.select %153, %157, %158 : vector<8x8xi1>, vector<8x8xf32>
    %c1_i32_34 = arith.constant 1 : i32
    %160 = vector.broadcast %c1_i32_34 : i32 to vector<8x1xi32>
    %161 = arith.addi %149, %160 : vector<8x1xi32>
    %162 = vector.broadcast %6 : vector<1x8xi32> to vector<8x8xi32>
    %163 = vector.broadcast %161 : vector<8x1xi32> to vector<8x8xi32>
    %164 = arith.cmpi eq, %162, %163 : vector<8x8xi32>
    %cst_35 = arith.constant 0.000000e+00 : f32
    %165 = vector.shape_cast %147 : vector<8x1xf32> to vector<8x1xf32>
    %166 = vector.broadcast %165 : vector<8x1xf32> to vector<8x8xf32>
    %167 = vector.broadcast %cst_35 : f32 to vector<8x8xf32>
    %168 = arith.select %164, %166, %167 : vector<8x8xi1>, vector<8x8xf32>
    %169 = arith.addf %159, %168 : vector<8x8xf32>
    %170 = vector.broadcast %150 : vector<8x1xf32> to vector<8x8xf32>
    %171 = arith.mulf %169, %170 : vector<8x8xf32>
    %172 = vector.broadcast %7 : vector<1x8xi32> to vector<8x8xi32>
    %173 = vector.broadcast %148 : vector<8x1xi32> to vector<8x8xi32>
    %174 = arith.cmpi eq, %172, %173 : vector<8x8xi32>
    %cst_36 = arith.constant 1.000000e+00 : f32
    %175 = vector.broadcast %cst_36 : f32 to vector<8x1xf32>
    %176 = arith.subf %175, %146 : vector<8x1xf32>
    %cst_37 = arith.constant 0.000000e+00 : f32
    %177 = vector.shape_cast %176 : vector<8x1xf32> to vector<8x1xf32>
    %178 = vector.broadcast %177 : vector<8x1xf32> to vector<8x8xf32>
    %179 = vector.broadcast %cst_37 : f32 to vector<8x8xf32>
    %180 = arith.select %174, %178, %179 : vector<8x8xi1>, vector<8x8xf32>
    %c1_i32_38 = arith.constant 1 : i32
    %181 = vector.broadcast %c1_i32_38 : i32 to vector<8x1xi32>
    %182 = arith.addi %148, %181 : vector<8x1xi32>
    %183 = vector.broadcast %7 : vector<1x8xi32> to vector<8x8xi32>
    %184 = vector.broadcast %182 : vector<8x1xi32> to vector<8x8xi32>
    %185 = arith.cmpi eq, %183, %184 : vector<8x8xi32>
    %cst_39 = arith.constant 0.000000e+00 : f32
    %186 = vector.shape_cast %146 : vector<8x1xf32> to vector<8x1xf32>
    %187 = vector.broadcast %186 : vector<8x1xf32> to vector<8x8xf32>
    %188 = vector.broadcast %cst_39 : f32 to vector<8x8xf32>
    %189 = arith.select %185, %187, %188 : vector<8x8xi1>, vector<8x8xf32>
    %190 = arith.addf %180, %189 : vector<8x8xf32>
    %191 = vector.shape_cast %171 : vector<8x8xf32> to vector<8x8x1xf32>
    %192 = vector.shape_cast %190 : vector<8x8xf32> to vector<8x1x8xf32>
    %193 = vector.broadcast %191 : vector<8x8x1xf32> to vector<8x8x8xf32>
    %194 = vector.broadcast %192 : vector<8x1x8xf32> to vector<8x8x8xf32>
    %195 = arith.mulf %193, %194 : vector<8x8x8xf32>
    %196 = arith.addf %139, %195 : vector<8x8x8xf32>
    %197 = vector.extract_strided_slice %1 {offsets = [0, 14], sizes = [8, 1], strides = [1, 1]} : vector<8x128xf32> to vector<8x1xf32>
    %198 = arith.addf %12, %197 : vector<8x1xf32>
    %199 = vector.extract_strided_slice %1 {offsets = [0, 15], sizes = [8, 1], strides = [1, 1]} : vector<8x128xf32> to vector<8x1xf32>
    %200 = arith.addf %17, %199 : vector<8x1xf32>
    %201 = math.floor %198 : vector<8x1xf32>
    %202 = math.floor %200 : vector<8x1xf32>
    %203 = arith.subf %198, %201 : vector<8x1xf32>
    %204 = arith.subf %200, %202 : vector<8x1xf32>
    %205 = arith.fptosi %201 : vector<8x1xf32> to vector<8x1xi32>
    %206 = arith.fptosi %202 : vector<8x1xf32> to vector<8x1xi32>
    %207 = vector.extract_strided_slice %1 {offsets = [0, 41], sizes = [8, 1], strides = [1, 1]} : vector<8x128xf32> to vector<8x1xf32>
    %208 = vector.broadcast %6 : vector<1x8xi32> to vector<8x8xi32>
    %209 = vector.broadcast %206 : vector<8x1xi32> to vector<8x8xi32>
    %210 = arith.cmpi eq, %208, %209 : vector<8x8xi32>
    %cst_40 = arith.constant 1.000000e+00 : f32
    %211 = vector.broadcast %cst_40 : f32 to vector<8x1xf32>
    %212 = arith.subf %211, %204 : vector<8x1xf32>
    %cst_41 = arith.constant 0.000000e+00 : f32
    %213 = vector.shape_cast %212 : vector<8x1xf32> to vector<8x1xf32>
    %214 = vector.broadcast %213 : vector<8x1xf32> to vector<8x8xf32>
    %215 = vector.broadcast %cst_41 : f32 to vector<8x8xf32>
    %216 = arith.select %210, %214, %215 : vector<8x8xi1>, vector<8x8xf32>
    %c1_i32_42 = arith.constant 1 : i32
    %217 = vector.broadcast %c1_i32_42 : i32 to vector<8x1xi32>
    %218 = arith.addi %206, %217 : vector<8x1xi32>
    %219 = vector.broadcast %6 : vector<1x8xi32> to vector<8x8xi32>
    %220 = vector.broadcast %218 : vector<8x1xi32> to vector<8x8xi32>
    %221 = arith.cmpi eq, %219, %220 : vector<8x8xi32>
    %cst_43 = arith.constant 0.000000e+00 : f32
    %222 = vector.shape_cast %204 : vector<8x1xf32> to vector<8x1xf32>
    %223 = vector.broadcast %222 : vector<8x1xf32> to vector<8x8xf32>
    %224 = vector.broadcast %cst_43 : f32 to vector<8x8xf32>
    %225 = arith.select %221, %223, %224 : vector<8x8xi1>, vector<8x8xf32>
    %226 = arith.addf %216, %225 : vector<8x8xf32>
    %227 = vector.broadcast %207 : vector<8x1xf32> to vector<8x8xf32>
    %228 = arith.mulf %226, %227 : vector<8x8xf32>
    %229 = vector.broadcast %7 : vector<1x8xi32> to vector<8x8xi32>
    %230 = vector.broadcast %205 : vector<8x1xi32> to vector<8x8xi32>
    %231 = arith.cmpi eq, %229, %230 : vector<8x8xi32>
    %cst_44 = arith.constant 1.000000e+00 : f32
    %232 = vector.broadcast %cst_44 : f32 to vector<8x1xf32>
    %233 = arith.subf %232, %203 : vector<8x1xf32>
    %cst_45 = arith.constant 0.000000e+00 : f32
    %234 = vector.shape_cast %233 : vector<8x1xf32> to vector<8x1xf32>
    %235 = vector.broadcast %234 : vector<8x1xf32> to vector<8x8xf32>
    %236 = vector.broadcast %cst_45 : f32 to vector<8x8xf32>
    %237 = arith.select %231, %235, %236 : vector<8x8xi1>, vector<8x8xf32>
    %c1_i32_46 = arith.constant 1 : i32
    %238 = vector.broadcast %c1_i32_46 : i32 to vector<8x1xi32>
    %239 = arith.addi %205, %238 : vector<8x1xi32>
    %240 = vector.broadcast %7 : vector<1x8xi32> to vector<8x8xi32>
    %241 = vector.broadcast %239 : vector<8x1xi32> to vector<8x8xi32>
    %242 = arith.cmpi eq, %240, %241 : vector<8x8xi32>
    %cst_47 = arith.constant 0.000000e+00 : f32
    %243 = vector.shape_cast %203 : vector<8x1xf32> to vector<8x1xf32>
    %244 = vector.broadcast %243 : vector<8x1xf32> to vector<8x8xf32>
    %245 = vector.broadcast %cst_47 : f32 to vector<8x8xf32>
    %246 = arith.select %242, %244, %245 : vector<8x8xi1>, vector<8x8xf32>
    %247 = arith.addf %237, %246 : vector<8x8xf32>
    %248 = vector.shape_cast %228 : vector<8x8xf32> to vector<8x8x1xf32>
    %249 = vector.shape_cast %247 : vector<8x8xf32> to vector<8x1x8xf32>
    %250 = vector.broadcast %248 : vector<8x8x1xf32> to vector<8x8x8xf32>
    %251 = vector.broadcast %249 : vector<8x1x8xf32> to vector<8x8x8xf32>
    %252 = arith.mulf %250, %251 : vector<8x8x8xf32>
    %253 = arith.addf %196, %252 : vector<8x8x8xf32>
    %254 = vector.shape_cast %253 : vector<8x8x8xf32> to vector<8x64xf32>
    %255 = arith.truncf %254 : vector<8x64xf32> to vector<8x64xbf16>
    %c0_48 = arith.constant 0 : index
    %c0_49 = arith.constant 0 : index
    %c0_50 = arith.constant 0 : index
    %c8 = arith.constant 8 : index
    %256 = vector.load %arg4[%c0_48, %c0_49, %c0_50, %c8] : memref<1x1x80x32xbf16, #tpu.memory_space<vmem>>, vector<1x1x64x8xbf16>
    %257 = vector.shape_cast %256 : vector<1x1x64x8xbf16> to vector<64x8xbf16>
    %cst_51 = arith.constant dense<0.000000e+00> : vector<8x8xf32>
    %258 = tpu.matmul %255, %257, %cst_51 {dimension_numbers = #tpu.dot_dimension_numbers<[1], [0], [0], [1], [0, 0, 1, 1], [], []>} : vector<8x64xbf16>, vector<64x8xbf16>, vector<8x8xf32> -> vector<8x8xf32>
    %259 = arith.addf %3, %258 : vector<8x8xf32>
    %cst_52 = arith.constant 0.000000e+00 : f32
    %260 = vector.broadcast %cst_52 : f32 to vector<8x8x8xf32>
    %261 = vector.extract_strided_slice %1 {offsets = [0, 20], sizes = [8, 1], strides = [1, 1]} : vector<8x128xf32> to vector<8x1xf32>
    %262 = arith.addf %12, %261 : vector<8x1xf32>
    %263 = vector.extract_strided_slice %1 {offsets = [0, 21], sizes = [8, 1], strides = [1, 1]} : vector<8x128xf32> to vector<8x1xf32>
    %264 = arith.addf %17, %263 : vector<8x1xf32>
    %265 = math.floor %262 : vector<8x1xf32>
    %266 = math.floor %264 : vector<8x1xf32>
    %267 = arith.subf %262, %265 : vector<8x1xf32>
    %268 = arith.subf %264, %266 : vector<8x1xf32>
    %269 = arith.fptosi %265 : vector<8x1xf32> to vector<8x1xi32>
    %270 = arith.fptosi %266 : vector<8x1xf32> to vector<8x1xi32>
    %271 = vector.extract_strided_slice %1 {offsets = [0, 44], sizes = [8, 1], strides = [1, 1]} : vector<8x128xf32> to vector<8x1xf32>
    %272 = vector.broadcast %6 : vector<1x8xi32> to vector<8x8xi32>
    %273 = vector.broadcast %270 : vector<8x1xi32> to vector<8x8xi32>
    %274 = arith.cmpi eq, %272, %273 : vector<8x8xi32>
    %cst_53 = arith.constant 1.000000e+00 : f32
    %275 = vector.broadcast %cst_53 : f32 to vector<8x1xf32>
    %276 = arith.subf %275, %268 : vector<8x1xf32>
    %cst_54 = arith.constant 0.000000e+00 : f32
    %277 = vector.shape_cast %276 : vector<8x1xf32> to vector<8x1xf32>
    %278 = vector.broadcast %277 : vector<8x1xf32> to vector<8x8xf32>
    %279 = vector.broadcast %cst_54 : f32 to vector<8x8xf32>
    %280 = arith.select %274, %278, %279 : vector<8x8xi1>, vector<8x8xf32>
    %c1_i32_55 = arith.constant 1 : i32
    %281 = vector.broadcast %c1_i32_55 : i32 to vector<8x1xi32>
    %282 = arith.addi %270, %281 : vector<8x1xi32>
    %283 = vector.broadcast %6 : vector<1x8xi32> to vector<8x8xi32>
    %284 = vector.broadcast %282 : vector<8x1xi32> to vector<8x8xi32>
    %285 = arith.cmpi eq, %283, %284 : vector<8x8xi32>
    %cst_56 = arith.constant 0.000000e+00 : f32
    %286 = vector.shape_cast %268 : vector<8x1xf32> to vector<8x1xf32>
    %287 = vector.broadcast %286 : vector<8x1xf32> to vector<8x8xf32>
    %288 = vector.broadcast %cst_56 : f32 to vector<8x8xf32>
    %289 = arith.select %285, %287, %288 : vector<8x8xi1>, vector<8x8xf32>
    %290 = arith.addf %280, %289 : vector<8x8xf32>
    %291 = vector.broadcast %271 : vector<8x1xf32> to vector<8x8xf32>
    %292 = arith.mulf %290, %291 : vector<8x8xf32>
    %293 = vector.broadcast %7 : vector<1x8xi32> to vector<8x8xi32>
    %294 = vector.broadcast %269 : vector<8x1xi32> to vector<8x8xi32>
    %295 = arith.cmpi eq, %293, %294 : vector<8x8xi32>
    %cst_57 = arith.constant 1.000000e+00 : f32
    %296 = vector.broadcast %cst_57 : f32 to vector<8x1xf32>
    %297 = arith.subf %296, %267 : vector<8x1xf32>
    %cst_58 = arith.constant 0.000000e+00 : f32
    %298 = vector.shape_cast %297 : vector<8x1xf32> to vector<8x1xf32>
    %299 = vector.broadcast %298 : vector<8x1xf32> to vector<8x8xf32>
    %300 = vector.broadcast %cst_58 : f32 to vector<8x8xf32>
    %301 = arith.select %295, %299, %300 : vector<8x8xi1>, vector<8x8xf32>
    %c1_i32_59 = arith.constant 1 : i32
    %302 = vector.broadcast %c1_i32_59 : i32 to vector<8x1xi32>
    %303 = arith.addi %269, %302 : vector<8x1xi32>
    %304 = vector.broadcast %7 : vector<1x8xi32> to vector<8x8xi32>
    %305 = vector.broadcast %303 : vector<8x1xi32> to vector<8x8xi32>
    %306 = arith.cmpi eq, %304, %305 : vector<8x8xi32>
    %cst_60 = arith.constant 0.000000e+00 : f32
    %307 = vector.shape_cast %267 : vector<8x1xf32> to vector<8x1xf32>
    %308 = vector.broadcast %307 : vector<8x1xf32> to vector<8x8xf32>
    %309 = vector.broadcast %cst_60 : f32 to vector<8x8xf32>
    %310 = arith.select %306, %308, %309 : vector<8x8xi1>, vector<8x8xf32>
    %311 = arith.addf %301, %310 : vector<8x8xf32>
    %312 = vector.shape_cast %292 : vector<8x8xf32> to vector<8x8x1xf32>
    %313 = vector.shape_cast %311 : vector<8x8xf32> to vector<8x1x8xf32>
    %314 = vector.broadcast %312 : vector<8x8x1xf32> to vector<8x8x8xf32>
    %315 = vector.broadcast %313 : vector<8x1x8xf32> to vector<8x8x8xf32>
    %316 = arith.mulf %314, %315 : vector<8x8x8xf32>
    %317 = arith.addf %260, %316 : vector<8x8x8xf32>
    %318 = vector.extract_strided_slice %1 {offsets = [0, 22], sizes = [8, 1], strides = [1, 1]} : vector<8x128xf32> to vector<8x1xf32>
    %319 = arith.addf %12, %318 : vector<8x1xf32>
    %320 = vector.extract_strided_slice %1 {offsets = [0, 23], sizes = [8, 1], strides = [1, 1]} : vector<8x128xf32> to vector<8x1xf32>
    %321 = arith.addf %17, %320 : vector<8x1xf32>
    %322 = math.floor %319 : vector<8x1xf32>
    %323 = math.floor %321 : vector<8x1xf32>
    %324 = arith.subf %319, %322 : vector<8x1xf32>
    %325 = arith.subf %321, %323 : vector<8x1xf32>
    %326 = arith.fptosi %322 : vector<8x1xf32> to vector<8x1xi32>
    %327 = arith.fptosi %323 : vector<8x1xf32> to vector<8x1xi32>
    %328 = vector.extract_strided_slice %1 {offsets = [0, 45], sizes = [8, 1], strides = [1, 1]} : vector<8x128xf32> to vector<8x1xf32>
    %329 = vector.broadcast %6 : vector<1x8xi32> to vector<8x8xi32>
    %330 = vector.broadcast %327 : vector<8x1xi32> to vector<8x8xi32>
    %331 = arith.cmpi eq, %329, %330 : vector<8x8xi32>
    %cst_61 = arith.constant 1.000000e+00 : f32
    %332 = vector.broadcast %cst_61 : f32 to vector<8x1xf32>
    %333 = arith.subf %332, %325 : vector<8x1xf32>
    %cst_62 = arith.constant 0.000000e+00 : f32
    %334 = vector.shape_cast %333 : vector<8x1xf32> to vector<8x1xf32>
    %335 = vector.broadcast %334 : vector<8x1xf32> to vector<8x8xf32>
    %336 = vector.broadcast %cst_62 : f32 to vector<8x8xf32>
    %337 = arith.select %331, %335, %336 : vector<8x8xi1>, vector<8x8xf32>
    %c1_i32_63 = arith.constant 1 : i32
    %338 = vector.broadcast %c1_i32_63 : i32 to vector<8x1xi32>
    %339 = arith.addi %327, %338 : vector<8x1xi32>
    %340 = vector.broadcast %6 : vector<1x8xi32> to vector<8x8xi32>
    %341 = vector.broadcast %339 : vector<8x1xi32> to vector<8x8xi32>
    %342 = arith.cmpi eq, %340, %341 : vector<8x8xi32>
    %cst_64 = arith.constant 0.000000e+00 : f32
    %343 = vector.shape_cast %325 : vector<8x1xf32> to vector<8x1xf32>
    %344 = vector.broadcast %343 : vector<8x1xf32> to vector<8x8xf32>
    %345 = vector.broadcast %cst_64 : f32 to vector<8x8xf32>
    %346 = arith.select %342, %344, %345 : vector<8x8xi1>, vector<8x8xf32>
    %347 = arith.addf %337, %346 : vector<8x8xf32>
    %348 = vector.broadcast %328 : vector<8x1xf32> to vector<8x8xf32>
    %349 = arith.mulf %347, %348 : vector<8x8xf32>
    %350 = vector.broadcast %7 : vector<1x8xi32> to vector<8x8xi32>
    %351 = vector.broadcast %326 : vector<8x1xi32> to vector<8x8xi32>
    %352 = arith.cmpi eq, %350, %351 : vector<8x8xi32>
    %cst_65 = arith.constant 1.000000e+00 : f32
    %353 = vector.broadcast %cst_65 : f32 to vector<8x1xf32>
    %354 = arith.subf %353, %324 : vector<8x1xf32>
    %cst_66 = arith.constant 0.000000e+00 : f32
    %355 = vector.shape_cast %354 : vector<8x1xf32> to vector<8x1xf32>
    %356 = vector.broadcast %355 : vector<8x1xf32> to vector<8x8xf32>
    %357 = vector.broadcast %cst_66 : f32 to vector<8x8xf32>
    %358 = arith.select %352, %356, %357 : vector<8x8xi1>, vector<8x8xf32>
    %c1_i32_67 = arith.constant 1 : i32
    %359 = vector.broadcast %c1_i32_67 : i32 to vector<8x1xi32>
    %360 = arith.addi %326, %359 : vector<8x1xi32>
    %361 = vector.broadcast %7 : vector<1x8xi32> to vector<8x8xi32>
    %362 = vector.broadcast %360 : vector<8x1xi32> to vector<8x8xi32>
    %363 = arith.cmpi eq, %361, %362 : vector<8x8xi32>
    %cst_68 = arith.constant 0.000000e+00 : f32
    %364 = vector.shape_cast %324 : vector<8x1xf32> to vector<8x1xf32>
    %365 = vector.broadcast %364 : vector<8x1xf32> to vector<8x8xf32>
    %366 = vector.broadcast %cst_68 : f32 to vector<8x8xf32>
    %367 = arith.select %363, %365, %366 : vector<8x8xi1>, vector<8x8xf32>
    %368 = arith.addf %358, %367 : vector<8x8xf32>
    %369 = vector.shape_cast %349 : vector<8x8xf32> to vector<8x8x1xf32>
    %370 = vector.shape_cast %368 : vector<8x8xf32> to vector<8x1x8xf32>
    %371 = vector.broadcast %369 : vector<8x8x1xf32> to vector<8x8x8xf32>
    %372 = vector.broadcast %370 : vector<8x1x8xf32> to vector<8x8x8xf32>
    %373 = arith.mulf %371, %372 : vector<8x8x8xf32>
    %374 = arith.addf %317, %373 : vector<8x8x8xf32>
    %375 = vector.shape_cast %374 : vector<8x8x8xf32> to vector<8x64xf32>
    %376 = arith.truncf %375 : vector<8x64xf32> to vector<8x64xbf16>
    %c0_69 = arith.constant 0 : index
    %c0_70 = arith.constant 0 : index
    %c0_71 = arith.constant 0 : index
    %c16 = arith.constant 16 : index
    %377 = vector.load %arg4[%c0_69, %c0_70, %c0_71, %c16] : memref<1x1x80x32xbf16, #tpu.memory_space<vmem>>, vector<1x1x64x8xbf16>
    %378 = vector.shape_cast %377 : vector<1x1x64x8xbf16> to vector<64x8xbf16>
    %cst_72 = arith.constant dense<0.000000e+00> : vector<8x8xf32>
    %379 = tpu.matmul %376, %378, %cst_72 {dimension_numbers = #tpu.dot_dimension_numbers<[1], [0], [0], [1], [0, 0, 1, 1], [], []>} : vector<8x64xbf16>, vector<64x8xbf16>, vector<8x8xf32> -> vector<8x8xf32>
    %380 = arith.addf %4, %379 : vector<8x8xf32>
    %cst_73 = arith.constant 0.000000e+00 : f32
    %381 = vector.broadcast %cst_73 : f32 to vector<8x8x8xf32>
    %382 = vector.extract_strided_slice %1 {offsets = [0, 28], sizes = [8, 1], strides = [1, 1]} : vector<8x128xf32> to vector<8x1xf32>
    %383 = arith.addf %12, %382 : vector<8x1xf32>
    %384 = vector.extract_strided_slice %1 {offsets = [0, 29], sizes = [8, 1], strides = [1, 1]} : vector<8x128xf32> to vector<8x1xf32>
    %385 = arith.addf %17, %384 : vector<8x1xf32>
    %386 = math.floor %383 : vector<8x1xf32>
    %387 = math.floor %385 : vector<8x1xf32>
    %388 = arith.subf %383, %386 : vector<8x1xf32>
    %389 = arith.subf %385, %387 : vector<8x1xf32>
    %390 = arith.fptosi %386 : vector<8x1xf32> to vector<8x1xi32>
    %391 = arith.fptosi %387 : vector<8x1xf32> to vector<8x1xi32>
    %392 = vector.extract_strided_slice %1 {offsets = [0, 48], sizes = [8, 1], strides = [1, 1]} : vector<8x128xf32> to vector<8x1xf32>
    %393 = vector.broadcast %6 : vector<1x8xi32> to vector<8x8xi32>
    %394 = vector.broadcast %391 : vector<8x1xi32> to vector<8x8xi32>
    %395 = arith.cmpi eq, %393, %394 : vector<8x8xi32>
    %cst_74 = arith.constant 1.000000e+00 : f32
    %396 = vector.broadcast %cst_74 : f32 to vector<8x1xf32>
    %397 = arith.subf %396, %389 : vector<8x1xf32>
    %cst_75 = arith.constant 0.000000e+00 : f32
    %398 = vector.shape_cast %397 : vector<8x1xf32> to vector<8x1xf32>
    %399 = vector.broadcast %398 : vector<8x1xf32> to vector<8x8xf32>
    %400 = vector.broadcast %cst_75 : f32 to vector<8x8xf32>
    %401 = arith.select %395, %399, %400 : vector<8x8xi1>, vector<8x8xf32>
    %c1_i32_76 = arith.constant 1 : i32
    %402 = vector.broadcast %c1_i32_76 : i32 to vector<8x1xi32>
    %403 = arith.addi %391, %402 : vector<8x1xi32>
    %404 = vector.broadcast %6 : vector<1x8xi32> to vector<8x8xi32>
    %405 = vector.broadcast %403 : vector<8x1xi32> to vector<8x8xi32>
    %406 = arith.cmpi eq, %404, %405 : vector<8x8xi32>
    %cst_77 = arith.constant 0.000000e+00 : f32
    %407 = vector.shape_cast %389 : vector<8x1xf32> to vector<8x1xf32>
    %408 = vector.broadcast %407 : vector<8x1xf32> to vector<8x8xf32>
    %409 = vector.broadcast %cst_77 : f32 to vector<8x8xf32>
    %410 = arith.select %406, %408, %409 : vector<8x8xi1>, vector<8x8xf32>
    %411 = arith.addf %401, %410 : vector<8x8xf32>
    %412 = vector.broadcast %392 : vector<8x1xf32> to vector<8x8xf32>
    %413 = arith.mulf %411, %412 : vector<8x8xf32>
    %414 = vector.broadcast %7 : vector<1x8xi32> to vector<8x8xi32>
    %415 = vector.broadcast %390 : vector<8x1xi32> to vector<8x8xi32>
    %416 = arith.cmpi eq, %414, %415 : vector<8x8xi32>
    %cst_78 = arith.constant 1.000000e+00 : f32
    %417 = vector.broadcast %cst_78 : f32 to vector<8x1xf32>
    %418 = arith.subf %417, %388 : vector<8x1xf32>
    %cst_79 = arith.constant 0.000000e+00 : f32
    %419 = vector.shape_cast %418 : vector<8x1xf32> to vector<8x1xf32>
    %420 = vector.broadcast %419 : vector<8x1xf32> to vector<8x8xf32>
    %421 = vector.broadcast %cst_79 : f32 to vector<8x8xf32>
    %422 = arith.select %416, %420, %421 : vector<8x8xi1>, vector<8x8xf32>
    %c1_i32_80 = arith.constant 1 : i32
    %423 = vector.broadcast %c1_i32_80 : i32 to vector<8x1xi32>
    %424 = arith.addi %390, %423 : vector<8x1xi32>
    %425 = vector.broadcast %7 : vector<1x8xi32> to vector<8x8xi32>
    %426 = vector.broadcast %424 : vector<8x1xi32> to vector<8x8xi32>
    %427 = arith.cmpi eq, %425, %426 : vector<8x8xi32>
    %cst_81 = arith.constant 0.000000e+00 : f32
    %428 = vector.shape_cast %388 : vector<8x1xf32> to vector<8x1xf32>
    %429 = vector.broadcast %428 : vector<8x1xf32> to vector<8x8xf32>
    %430 = vector.broadcast %cst_81 : f32 to vector<8x8xf32>
    %431 = arith.select %427, %429, %430 : vector<8x8xi1>, vector<8x8xf32>
    %432 = arith.addf %422, %431 : vector<8x8xf32>
    %433 = vector.shape_cast %413 : vector<8x8xf32> to vector<8x8x1xf32>
    %434 = vector.shape_cast %432 : vector<8x8xf32> to vector<8x1x8xf32>
    %435 = vector.broadcast %433 : vector<8x8x1xf32> to vector<8x8x8xf32>
    %436 = vector.broadcast %434 : vector<8x1x8xf32> to vector<8x8x8xf32>
    %437 = arith.mulf %435, %436 : vector<8x8x8xf32>
    %438 = arith.addf %381, %437 : vector<8x8x8xf32>
    %439 = vector.extract_strided_slice %1 {offsets = [0, 30], sizes = [8, 1], strides = [1, 1]} : vector<8x128xf32> to vector<8x1xf32>
    %440 = arith.addf %12, %439 : vector<8x1xf32>
    %441 = vector.extract_strided_slice %1 {offsets = [0, 31], sizes = [8, 1], strides = [1, 1]} : vector<8x128xf32> to vector<8x1xf32>
    %442 = arith.addf %17, %441 : vector<8x1xf32>
    %443 = math.floor %440 : vector<8x1xf32>
    %444 = math.floor %442 : vector<8x1xf32>
    %445 = arith.subf %440, %443 : vector<8x1xf32>
    %446 = arith.subf %442, %444 : vector<8x1xf32>
    %447 = arith.fptosi %443 : vector<8x1xf32> to vector<8x1xi32>
    %448 = arith.fptosi %444 : vector<8x1xf32> to vector<8x1xi32>
    %449 = vector.extract_strided_slice %1 {offsets = [0, 49], sizes = [8, 1], strides = [1, 1]} : vector<8x128xf32> to vector<8x1xf32>
    %450 = vector.broadcast %6 : vector<1x8xi32> to vector<8x8xi32>
    %451 = vector.broadcast %448 : vector<8x1xi32> to vector<8x8xi32>
    %452 = arith.cmpi eq, %450, %451 : vector<8x8xi32>
    %cst_82 = arith.constant 1.000000e+00 : f32
    %453 = vector.broadcast %cst_82 : f32 to vector<8x1xf32>
    %454 = arith.subf %453, %446 : vector<8x1xf32>
    %cst_83 = arith.constant 0.000000e+00 : f32
    %455 = vector.shape_cast %454 : vector<8x1xf32> to vector<8x1xf32>
    %456 = vector.broadcast %455 : vector<8x1xf32> to vector<8x8xf32>
    %457 = vector.broadcast %cst_83 : f32 to vector<8x8xf32>
    %458 = arith.select %452, %456, %457 : vector<8x8xi1>, vector<8x8xf32>
    %c1_i32_84 = arith.constant 1 : i32
    %459 = vector.broadcast %c1_i32_84 : i32 to vector<8x1xi32>
    %460 = arith.addi %448, %459 : vector<8x1xi32>
    %461 = vector.broadcast %6 : vector<1x8xi32> to vector<8x8xi32>
    %462 = vector.broadcast %460 : vector<8x1xi32> to vector<8x8xi32>
    %463 = arith.cmpi eq, %461, %462 : vector<8x8xi32>
    %cst_85 = arith.constant 0.000000e+00 : f32
    %464 = vector.shape_cast %446 : vector<8x1xf32> to vector<8x1xf32>
    %465 = vector.broadcast %464 : vector<8x1xf32> to vector<8x8xf32>
    %466 = vector.broadcast %cst_85 : f32 to vector<8x8xf32>
    %467 = arith.select %463, %465, %466 : vector<8x8xi1>, vector<8x8xf32>
    %468 = arith.addf %458, %467 : vector<8x8xf32>
    %469 = vector.broadcast %449 : vector<8x1xf32> to vector<8x8xf32>
    %470 = arith.mulf %468, %469 : vector<8x8xf32>
    %471 = vector.broadcast %7 : vector<1x8xi32> to vector<8x8xi32>
    %472 = vector.broadcast %447 : vector<8x1xi32> to vector<8x8xi32>
    %473 = arith.cmpi eq, %471, %472 : vector<8x8xi32>
    %cst_86 = arith.constant 1.000000e+00 : f32
    %474 = vector.broadcast %cst_86 : f32 to vector<8x1xf32>
    %475 = arith.subf %474, %445 : vector<8x1xf32>
    %cst_87 = arith.constant 0.000000e+00 : f32
    %476 = vector.shape_cast %475 : vector<8x1xf32> to vector<8x1xf32>
    %477 = vector.broadcast %476 : vector<8x1xf32> to vector<8x8xf32>
    %478 = vector.broadcast %cst_87 : f32 to vector<8x8xf32>
    %479 = arith.select %473, %477, %478 : vector<8x8xi1>, vector<8x8xf32>
    %c1_i32_88 = arith.constant 1 : i32
    %480 = vector.broadcast %c1_i32_88 : i32 to vector<8x1xi32>
    %481 = arith.addi %447, %480 : vector<8x1xi32>
    %482 = vector.broadcast %7 : vector<1x8xi32> to vector<8x8xi32>
    %483 = vector.broadcast %481 : vector<8x1xi32> to vector<8x8xi32>
    %484 = arith.cmpi eq, %482, %483 : vector<8x8xi32>
    %cst_89 = arith.constant 0.000000e+00 : f32
    %485 = vector.shape_cast %445 : vector<8x1xf32> to vector<8x1xf32>
    %486 = vector.broadcast %485 : vector<8x1xf32> to vector<8x8xf32>
    %487 = vector.broadcast %cst_89 : f32 to vector<8x8xf32>
    %488 = arith.select %484, %486, %487 : vector<8x8xi1>, vector<8x8xf32>
    %489 = arith.addf %479, %488 : vector<8x8xf32>
    %490 = vector.shape_cast %470 : vector<8x8xf32> to vector<8x8x1xf32>
    %491 = vector.shape_cast %489 : vector<8x8xf32> to vector<8x1x8xf32>
    %492 = vector.broadcast %490 : vector<8x8x1xf32> to vector<8x8x8xf32>
    %493 = vector.broadcast %491 : vector<8x1x8xf32> to vector<8x8x8xf32>
    %494 = arith.mulf %492, %493 : vector<8x8x8xf32>
    %495 = arith.addf %438, %494 : vector<8x8x8xf32>
    %496 = vector.shape_cast %495 : vector<8x8x8xf32> to vector<8x64xf32>
    %497 = arith.truncf %496 : vector<8x64xf32> to vector<8x64xbf16>
    %c0_90 = arith.constant 0 : index
    %c0_91 = arith.constant 0 : index
    %c0_92 = arith.constant 0 : index
    %c24 = arith.constant 24 : index
    %498 = vector.load %arg4[%c0_90, %c0_91, %c0_92, %c24] : memref<1x1x80x32xbf16, #tpu.memory_space<vmem>>, vector<1x1x64x8xbf16>
    %499 = vector.shape_cast %498 : vector<1x1x64x8xbf16> to vector<64x8xbf16>
    %cst_93 = arith.constant dense<0.000000e+00> : vector<8x8xf32>
    %500 = tpu.matmul %497, %499, %cst_93 {dimension_numbers = #tpu.dot_dimension_numbers<[1], [0], [0], [1], [0, 0, 1, 1], [], []>} : vector<8x64xbf16>, vector<64x8xbf16>, vector<8x8xf32> -> vector<8x8xf32>
    %501 = arith.addf %5, %500 : vector<8x8xf32>
    %502 = tpu.iota {dimensions = array<i32: 1>} : vector<1x4xi32>
    %503 = tpu.iota {dimensions = array<i32: 1>} : vector<1x4xi32>
    %504 = vector.extract_strided_slice %1 {offsets = [0, 2], sizes = [8, 1], strides = [1, 1]} : vector<8x128xf32> to vector<8x1xf32>
    %cst_94 = arith.constant 4.000000e+00 : f32
    %505 = vector.broadcast %cst_94 : f32 to vector<8x1xf32>
    %506 = arith.mulf %504, %505 : vector<8x1xf32>
    %cst_95 = arith.constant 5.000000e-01 : f32
    %507 = vector.broadcast %cst_95 : f32 to vector<8x1xf32>
    %508 = arith.subf %506, %507 : vector<8x1xf32>
    %509 = vector.extract_strided_slice %1 {offsets = [0, 3], sizes = [8, 1], strides = [1, 1]} : vector<8x128xf32> to vector<8x1xf32>
    %cst_96 = arith.constant 4.000000e+00 : f32
    %510 = vector.broadcast %cst_96 : f32 to vector<8x1xf32>
    %511 = arith.mulf %509, %510 : vector<8x1xf32>
    %cst_97 = arith.constant 5.000000e-01 : f32
    %512 = vector.broadcast %cst_97 : f32 to vector<8x1xf32>
    %513 = arith.subf %511, %512 : vector<8x1xf32>
    %cst_98 = arith.constant 0.000000e+00 : f32
    %514 = vector.broadcast %cst_98 : f32 to vector<8x4x4xf32>
    %515 = vector.extract_strided_slice %1 {offsets = [0, 8], sizes = [8, 1], strides = [1, 1]} : vector<8x128xf32> to vector<8x1xf32>
    %516 = arith.addf %508, %515 : vector<8x1xf32>
    %517 = vector.extract_strided_slice %1 {offsets = [0, 9], sizes = [8, 1], strides = [1, 1]} : vector<8x128xf32> to vector<8x1xf32>
    %518 = arith.addf %513, %517 : vector<8x1xf32>
    %519 = math.floor %516 : vector<8x1xf32>
    %520 = math.floor %518 : vector<8x1xf32>
    %521 = arith.subf %516, %519 : vector<8x1xf32>
    %522 = arith.subf %518, %520 : vector<8x1xf32>
    %523 = arith.fptosi %519 : vector<8x1xf32> to vector<8x1xi32>
    %524 = arith.fptosi %520 : vector<8x1xf32> to vector<8x1xi32>
    %525 = vector.extract_strided_slice %1 {offsets = [0, 38], sizes = [8, 1], strides = [1, 1]} : vector<8x128xf32> to vector<8x1xf32>
    %526 = vector.broadcast %502 : vector<1x4xi32> to vector<8x4xi32>
    %527 = vector.broadcast %524 : vector<8x1xi32> to vector<8x4xi32>
    %528 = arith.cmpi eq, %526, %527 : vector<8x4xi32>
    %cst_99 = arith.constant 1.000000e+00 : f32
    %529 = vector.broadcast %cst_99 : f32 to vector<8x1xf32>
    %530 = arith.subf %529, %522 : vector<8x1xf32>
    %cst_100 = arith.constant 0.000000e+00 : f32
    %531 = vector.shape_cast %530 : vector<8x1xf32> to vector<8x1xf32>
    %532 = vector.broadcast %531 : vector<8x1xf32> to vector<8x4xf32>
    %533 = vector.broadcast %cst_100 : f32 to vector<8x4xf32>
    %534 = arith.select %528, %532, %533 : vector<8x4xi1>, vector<8x4xf32>
    %c1_i32_101 = arith.constant 1 : i32
    %535 = vector.broadcast %c1_i32_101 : i32 to vector<8x1xi32>
    %536 = arith.addi %524, %535 : vector<8x1xi32>
    %537 = vector.broadcast %502 : vector<1x4xi32> to vector<8x4xi32>
    %538 = vector.broadcast %536 : vector<8x1xi32> to vector<8x4xi32>
    %539 = arith.cmpi eq, %537, %538 : vector<8x4xi32>
    %cst_102 = arith.constant 0.000000e+00 : f32
    %540 = vector.shape_cast %522 : vector<8x1xf32> to vector<8x1xf32>
    %541 = vector.broadcast %540 : vector<8x1xf32> to vector<8x4xf32>
    %542 = vector.broadcast %cst_102 : f32 to vector<8x4xf32>
    %543 = arith.select %539, %541, %542 : vector<8x4xi1>, vector<8x4xf32>
    %544 = arith.addf %534, %543 : vector<8x4xf32>
    %545 = vector.broadcast %525 : vector<8x1xf32> to vector<8x4xf32>
    %546 = arith.mulf %544, %545 : vector<8x4xf32>
    %547 = vector.broadcast %503 : vector<1x4xi32> to vector<8x4xi32>
    %548 = vector.broadcast %523 : vector<8x1xi32> to vector<8x4xi32>
    %549 = arith.cmpi eq, %547, %548 : vector<8x4xi32>
    %cst_103 = arith.constant 1.000000e+00 : f32
    %550 = vector.broadcast %cst_103 : f32 to vector<8x1xf32>
    %551 = arith.subf %550, %521 : vector<8x1xf32>
    %cst_104 = arith.constant 0.000000e+00 : f32
    %552 = vector.shape_cast %551 : vector<8x1xf32> to vector<8x1xf32>
    %553 = vector.broadcast %552 : vector<8x1xf32> to vector<8x4xf32>
    %554 = vector.broadcast %cst_104 : f32 to vector<8x4xf32>
    %555 = arith.select %549, %553, %554 : vector<8x4xi1>, vector<8x4xf32>
    %c1_i32_105 = arith.constant 1 : i32
    %556 = vector.broadcast %c1_i32_105 : i32 to vector<8x1xi32>
    %557 = arith.addi %523, %556 : vector<8x1xi32>
    %558 = vector.broadcast %503 : vector<1x4xi32> to vector<8x4xi32>
    %559 = vector.broadcast %557 : vector<8x1xi32> to vector<8x4xi32>
    %560 = arith.cmpi eq, %558, %559 : vector<8x4xi32>
    %cst_106 = arith.constant 0.000000e+00 : f32
    %561 = vector.shape_cast %521 : vector<8x1xf32> to vector<8x1xf32>
    %562 = vector.broadcast %561 : vector<8x1xf32> to vector<8x4xf32>
    %563 = vector.broadcast %cst_106 : f32 to vector<8x4xf32>
    %564 = arith.select %560, %562, %563 : vector<8x4xi1>, vector<8x4xf32>
    %565 = arith.addf %555, %564 : vector<8x4xf32>
    %566 = vector.shape_cast %546 : vector<8x4xf32> to vector<8x4x1xf32>
    %567 = vector.shape_cast %565 : vector<8x4xf32> to vector<8x1x4xf32>
    %568 = vector.broadcast %566 : vector<8x4x1xf32> to vector<8x4x4xf32>
    %569 = vector.broadcast %567 : vector<8x1x4xf32> to vector<8x4x4xf32>
    %570 = arith.mulf %568, %569 : vector<8x4x4xf32>
    %571 = arith.addf %514, %570 : vector<8x4x4xf32>
    %572 = vector.extract_strided_slice %1 {offsets = [0, 10], sizes = [8, 1], strides = [1, 1]} : vector<8x128xf32> to vector<8x1xf32>
    %573 = arith.addf %508, %572 : vector<8x1xf32>
    %574 = vector.extract_strided_slice %1 {offsets = [0, 11], sizes = [8, 1], strides = [1, 1]} : vector<8x128xf32> to vector<8x1xf32>
    %575 = arith.addf %513, %574 : vector<8x1xf32>
    %576 = math.floor %573 : vector<8x1xf32>
    %577 = math.floor %575 : vector<8x1xf32>
    %578 = arith.subf %573, %576 : vector<8x1xf32>
    %579 = arith.subf %575, %577 : vector<8x1xf32>
    %580 = arith.fptosi %576 : vector<8x1xf32> to vector<8x1xi32>
    %581 = arith.fptosi %577 : vector<8x1xf32> to vector<8x1xi32>
    %582 = vector.extract_strided_slice %1 {offsets = [0, 39], sizes = [8, 1], strides = [1, 1]} : vector<8x128xf32> to vector<8x1xf32>
    %583 = vector.broadcast %502 : vector<1x4xi32> to vector<8x4xi32>
    %584 = vector.broadcast %581 : vector<8x1xi32> to vector<8x4xi32>
    %585 = arith.cmpi eq, %583, %584 : vector<8x4xi32>
    %cst_107 = arith.constant 1.000000e+00 : f32
    %586 = vector.broadcast %cst_107 : f32 to vector<8x1xf32>
    %587 = arith.subf %586, %579 : vector<8x1xf32>
    %cst_108 = arith.constant 0.000000e+00 : f32
    %588 = vector.shape_cast %587 : vector<8x1xf32> to vector<8x1xf32>
    %589 = vector.broadcast %588 : vector<8x1xf32> to vector<8x4xf32>
    %590 = vector.broadcast %cst_108 : f32 to vector<8x4xf32>
    %591 = arith.select %585, %589, %590 : vector<8x4xi1>, vector<8x4xf32>
    %c1_i32_109 = arith.constant 1 : i32
    %592 = vector.broadcast %c1_i32_109 : i32 to vector<8x1xi32>
    %593 = arith.addi %581, %592 : vector<8x1xi32>
    %594 = vector.broadcast %502 : vector<1x4xi32> to vector<8x4xi32>
    %595 = vector.broadcast %593 : vector<8x1xi32> to vector<8x4xi32>
    %596 = arith.cmpi eq, %594, %595 : vector<8x4xi32>
    %cst_110 = arith.constant 0.000000e+00 : f32
    %597 = vector.shape_cast %579 : vector<8x1xf32> to vector<8x1xf32>
    %598 = vector.broadcast %597 : vector<8x1xf32> to vector<8x4xf32>
    %599 = vector.broadcast %cst_110 : f32 to vector<8x4xf32>
    %600 = arith.select %596, %598, %599 : vector<8x4xi1>, vector<8x4xf32>
    %601 = arith.addf %591, %600 : vector<8x4xf32>
    %602 = vector.broadcast %582 : vector<8x1xf32> to vector<8x4xf32>
    %603 = arith.mulf %601, %602 : vector<8x4xf32>
    %604 = vector.broadcast %503 : vector<1x4xi32> to vector<8x4xi32>
    %605 = vector.broadcast %580 : vector<8x1xi32> to vector<8x4xi32>
    %606 = arith.cmpi eq, %604, %605 : vector<8x4xi32>
    %cst_111 = arith.constant 1.000000e+00 : f32
    %607 = vector.broadcast %cst_111 : f32 to vector<8x1xf32>
    %608 = arith.subf %607, %578 : vector<8x1xf32>
    %cst_112 = arith.constant 0.000000e+00 : f32
    %609 = vector.shape_cast %608 : vector<8x1xf32> to vector<8x1xf32>
    %610 = vector.broadcast %609 : vector<8x1xf32> to vector<8x4xf32>
    %611 = vector.broadcast %cst_112 : f32 to vector<8x4xf32>
    %612 = arith.select %606, %610, %611 : vector<8x4xi1>, vector<8x4xf32>
    %c1_i32_113 = arith.constant 1 : i32
    %613 = vector.broadcast %c1_i32_113 : i32 to vector<8x1xi32>
    %614 = arith.addi %580, %613 : vector<8x1xi32>
    %615 = vector.broadcast %503 : vector<1x4xi32> to vector<8x4xi32>
    %616 = vector.broadcast %614 : vector<8x1xi32> to vector<8x4xi32>
    %617 = arith.cmpi eq, %615, %616 : vector<8x4xi32>
    %cst_114 = arith.constant 0.000000e+00 : f32
    %618 = vector.shape_cast %578 : vector<8x1xf32> to vector<8x1xf32>
    %619 = vector.broadcast %618 : vector<8x1xf32> to vector<8x4xf32>
    %620 = vector.broadcast %cst_114 : f32 to vector<8x4xf32>
    %621 = arith.select %617, %619, %620 : vector<8x4xi1>, vector<8x4xf32>
    %622 = arith.addf %612, %621 : vector<8x4xf32>
    %623 = vector.shape_cast %603 : vector<8x4xf32> to vector<8x4x1xf32>
    %624 = vector.shape_cast %622 : vector<8x4xf32> to vector<8x1x4xf32>
    %625 = vector.broadcast %623 : vector<8x4x1xf32> to vector<8x4x4xf32>
    %626 = vector.broadcast %624 : vector<8x1x4xf32> to vector<8x4x4xf32>
    %627 = arith.mulf %625, %626 : vector<8x4x4xf32>
    %628 = arith.addf %571, %627 : vector<8x4x4xf32>
    %629 = vector.shape_cast %628 : vector<8x4x4xf32> to vector<8x16xf32>
    %630 = arith.truncf %629 : vector<8x16xf32> to vector<8x16xbf16>
    %c0_115 = arith.constant 0 : index
    %c0_116 = arith.constant 0 : index
    %c64 = arith.constant 64 : index
    %c0_117 = arith.constant 0 : index
    %631 = vector.load %arg4[%c0_115, %c0_116, %c64, %c0_117] : memref<1x1x80x32xbf16, #tpu.memory_space<vmem>>, vector<1x1x16x8xbf16>
    %632 = vector.shape_cast %631 : vector<1x1x16x8xbf16> to vector<16x8xbf16>
    %cst_118 = arith.constant dense<0.000000e+00> : vector<8x8xf32>
    %633 = tpu.matmul %630, %632, %cst_118 {dimension_numbers = #tpu.dot_dimension_numbers<[1], [0], [0], [1], [0, 0, 1, 1], [], []>} : vector<8x16xbf16>, vector<16x8xbf16>, vector<8x8xf32> -> vector<8x8xf32>
    %634 = arith.addf %138, %633 : vector<8x8xf32>
    %cst_119 = arith.constant 0.000000e+00 : f32
    %635 = vector.broadcast %cst_119 : f32 to vector<8x4x4xf32>
    %636 = vector.extract_strided_slice %1 {offsets = [0, 16], sizes = [8, 1], strides = [1, 1]} : vector<8x128xf32> to vector<8x1xf32>
    %637 = arith.addf %508, %636 : vector<8x1xf32>
    %638 = vector.extract_strided_slice %1 {offsets = [0, 17], sizes = [8, 1], strides = [1, 1]} : vector<8x128xf32> to vector<8x1xf32>
    %639 = arith.addf %513, %638 : vector<8x1xf32>
    %640 = math.floor %637 : vector<8x1xf32>
    %641 = math.floor %639 : vector<8x1xf32>
    %642 = arith.subf %637, %640 : vector<8x1xf32>
    %643 = arith.subf %639, %641 : vector<8x1xf32>
    %644 = arith.fptosi %640 : vector<8x1xf32> to vector<8x1xi32>
    %645 = arith.fptosi %641 : vector<8x1xf32> to vector<8x1xi32>
    %646 = vector.extract_strided_slice %1 {offsets = [0, 42], sizes = [8, 1], strides = [1, 1]} : vector<8x128xf32> to vector<8x1xf32>
    %647 = vector.broadcast %502 : vector<1x4xi32> to vector<8x4xi32>
    %648 = vector.broadcast %645 : vector<8x1xi32> to vector<8x4xi32>
    %649 = arith.cmpi eq, %647, %648 : vector<8x4xi32>
    %cst_120 = arith.constant 1.000000e+00 : f32
    %650 = vector.broadcast %cst_120 : f32 to vector<8x1xf32>
    %651 = arith.subf %650, %643 : vector<8x1xf32>
    %cst_121 = arith.constant 0.000000e+00 : f32
    %652 = vector.shape_cast %651 : vector<8x1xf32> to vector<8x1xf32>
    %653 = vector.broadcast %652 : vector<8x1xf32> to vector<8x4xf32>
    %654 = vector.broadcast %cst_121 : f32 to vector<8x4xf32>
    %655 = arith.select %649, %653, %654 : vector<8x4xi1>, vector<8x4xf32>
    %c1_i32_122 = arith.constant 1 : i32
    %656 = vector.broadcast %c1_i32_122 : i32 to vector<8x1xi32>
    %657 = arith.addi %645, %656 : vector<8x1xi32>
    %658 = vector.broadcast %502 : vector<1x4xi32> to vector<8x4xi32>
    %659 = vector.broadcast %657 : vector<8x1xi32> to vector<8x4xi32>
    %660 = arith.cmpi eq, %658, %659 : vector<8x4xi32>
    %cst_123 = arith.constant 0.000000e+00 : f32
    %661 = vector.shape_cast %643 : vector<8x1xf32> to vector<8x1xf32>
    %662 = vector.broadcast %661 : vector<8x1xf32> to vector<8x4xf32>
    %663 = vector.broadcast %cst_123 : f32 to vector<8x4xf32>
    %664 = arith.select %660, %662, %663 : vector<8x4xi1>, vector<8x4xf32>
    %665 = arith.addf %655, %664 : vector<8x4xf32>
    %666 = vector.broadcast %646 : vector<8x1xf32> to vector<8x4xf32>
    %667 = arith.mulf %665, %666 : vector<8x4xf32>
    %668 = vector.broadcast %503 : vector<1x4xi32> to vector<8x4xi32>
    %669 = vector.broadcast %644 : vector<8x1xi32> to vector<8x4xi32>
    %670 = arith.cmpi eq, %668, %669 : vector<8x4xi32>
    %cst_124 = arith.constant 1.000000e+00 : f32
    %671 = vector.broadcast %cst_124 : f32 to vector<8x1xf32>
    %672 = arith.subf %671, %642 : vector<8x1xf32>
    %cst_125 = arith.constant 0.000000e+00 : f32
    %673 = vector.shape_cast %672 : vector<8x1xf32> to vector<8x1xf32>
    %674 = vector.broadcast %673 : vector<8x1xf32> to vector<8x4xf32>
    %675 = vector.broadcast %cst_125 : f32 to vector<8x4xf32>
    %676 = arith.select %670, %674, %675 : vector<8x4xi1>, vector<8x4xf32>
    %c1_i32_126 = arith.constant 1 : i32
    %677 = vector.broadcast %c1_i32_126 : i32 to vector<8x1xi32>
    %678 = arith.addi %644, %677 : vector<8x1xi32>
    %679 = vector.broadcast %503 : vector<1x4xi32> to vector<8x4xi32>
    %680 = vector.broadcast %678 : vector<8x1xi32> to vector<8x4xi32>
    %681 = arith.cmpi eq, %679, %680 : vector<8x4xi32>
    %cst_127 = arith.constant 0.000000e+00 : f32
    %682 = vector.shape_cast %642 : vector<8x1xf32> to vector<8x1xf32>
    %683 = vector.broadcast %682 : vector<8x1xf32> to vector<8x4xf32>
    %684 = vector.broadcast %cst_127 : f32 to vector<8x4xf32>
    %685 = arith.select %681, %683, %684 : vector<8x4xi1>, vector<8x4xf32>
    %686 = arith.addf %676, %685 : vector<8x4xf32>
    %687 = vector.shape_cast %667 : vector<8x4xf32> to vector<8x4x1xf32>
    %688 = vector.shape_cast %686 : vector<8x4xf32> to vector<8x1x4xf32>
    %689 = vector.broadcast %687 : vector<8x4x1xf32> to vector<8x4x4xf32>
    %690 = vector.broadcast %688 : vector<8x1x4xf32> to vector<8x4x4xf32>
    %691 = arith.mulf %689, %690 : vector<8x4x4xf32>
    %692 = arith.addf %635, %691 : vector<8x4x4xf32>
    %693 = vector.extract_strided_slice %1 {offsets = [0, 18], sizes = [8, 1], strides = [1, 1]} : vector<8x128xf32> to vector<8x1xf32>
    %694 = arith.addf %508, %693 : vector<8x1xf32>
    %695 = vector.extract_strided_slice %1 {offsets = [0, 19], sizes = [8, 1], strides = [1, 1]} : vector<8x128xf32> to vector<8x1xf32>
    %696 = arith.addf %513, %695 : vector<8x1xf32>
    %697 = math.floor %694 : vector<8x1xf32>
    %698 = math.floor %696 : vector<8x1xf32>
    %699 = arith.subf %694, %697 : vector<8x1xf32>
    %700 = arith.subf %696, %698 : vector<8x1xf32>
    %701 = arith.fptosi %697 : vector<8x1xf32> to vector<8x1xi32>
    %702 = arith.fptosi %698 : vector<8x1xf32> to vector<8x1xi32>
    %703 = vector.extract_strided_slice %1 {offsets = [0, 43], sizes = [8, 1], strides = [1, 1]} : vector<8x128xf32> to vector<8x1xf32>
    %704 = vector.broadcast %502 : vector<1x4xi32> to vector<8x4xi32>
    %705 = vector.broadcast %702 : vector<8x1xi32> to vector<8x4xi32>
    %706 = arith.cmpi eq, %704, %705 : vector<8x4xi32>
    %cst_128 = arith.constant 1.000000e+00 : f32
    %707 = vector.broadcast %cst_128 : f32 to vector<8x1xf32>
    %708 = arith.subf %707, %700 : vector<8x1xf32>
    %cst_129 = arith.constant 0.000000e+00 : f32
    %709 = vector.shape_cast %708 : vector<8x1xf32> to vector<8x1xf32>
    %710 = vector.broadcast %709 : vector<8x1xf32> to vector<8x4xf32>
    %711 = vector.broadcast %cst_129 : f32 to vector<8x4xf32>
    %712 = arith.select %706, %710, %711 : vector<8x4xi1>, vector<8x4xf32>
    %c1_i32_130 = arith.constant 1 : i32
    %713 = vector.broadcast %c1_i32_130 : i32 to vector<8x1xi32>
    %714 = arith.addi %702, %713 : vector<8x1xi32>
    %715 = vector.broadcast %502 : vector<1x4xi32> to vector<8x4xi32>
    %716 = vector.broadcast %714 : vector<8x1xi32> to vector<8x4xi32>
    %717 = arith.cmpi eq, %715, %716 : vector<8x4xi32>
    %cst_131 = arith.constant 0.000000e+00 : f32
    %718 = vector.shape_cast %700 : vector<8x1xf32> to vector<8x1xf32>
    %719 = vector.broadcast %718 : vector<8x1xf32> to vector<8x4xf32>
    %720 = vector.broadcast %cst_131 : f32 to vector<8x4xf32>
    %721 = arith.select %717, %719, %720 : vector<8x4xi1>, vector<8x4xf32>
    %722 = arith.addf %712, %721 : vector<8x4xf32>
    %723 = vector.broadcast %703 : vector<8x1xf32> to vector<8x4xf32>
    %724 = arith.mulf %722, %723 : vector<8x4xf32>
    %725 = vector.broadcast %503 : vector<1x4xi32> to vector<8x4xi32>
    %726 = vector.broadcast %701 : vector<8x1xi32> to vector<8x4xi32>
    %727 = arith.cmpi eq, %725, %726 : vector<8x4xi32>
    %cst_132 = arith.constant 1.000000e+00 : f32
    %728 = vector.broadcast %cst_132 : f32 to vector<8x1xf32>
    %729 = arith.subf %728, %699 : vector<8x1xf32>
    %cst_133 = arith.constant 0.000000e+00 : f32
    %730 = vector.shape_cast %729 : vector<8x1xf32> to vector<8x1xf32>
    %731 = vector.broadcast %730 : vector<8x1xf32> to vector<8x4xf32>
    %732 = vector.broadcast %cst_133 : f32 to vector<8x4xf32>
    %733 = arith.select %727, %731, %732 : vector<8x4xi1>, vector<8x4xf32>
    %c1_i32_134 = arith.constant 1 : i32
    %734 = vector.broadcast %c1_i32_134 : i32 to vector<8x1xi32>
    %735 = arith.addi %701, %734 : vector<8x1xi32>
    %736 = vector.broadcast %503 : vector<1x4xi32> to vector<8x4xi32>
    %737 = vector.broadcast %735 : vector<8x1xi32> to vector<8x4xi32>
    %738 = arith.cmpi eq, %736, %737 : vector<8x4xi32>
    %cst_135 = arith.constant 0.000000e+00 : f32
    %739 = vector.shape_cast %699 : vector<8x1xf32> to vector<8x1xf32>
    %740 = vector.broadcast %739 : vector<8x1xf32> to vector<8x4xf32>
    %741 = vector.broadcast %cst_135 : f32 to vector<8x4xf32>
    %742 = arith.select %738, %740, %741 : vector<8x4xi1>, vector<8x4xf32>
    %743 = arith.addf %733, %742 : vector<8x4xf32>
    %744 = vector.shape_cast %724 : vector<8x4xf32> to vector<8x4x1xf32>
    %745 = vector.shape_cast %743 : vector<8x4xf32> to vector<8x1x4xf32>
    %746 = vector.broadcast %744 : vector<8x4x1xf32> to vector<8x4x4xf32>
    %747 = vector.broadcast %745 : vector<8x1x4xf32> to vector<8x4x4xf32>
    %748 = arith.mulf %746, %747 : vector<8x4x4xf32>
    %749 = arith.addf %692, %748 : vector<8x4x4xf32>
    %750 = vector.shape_cast %749 : vector<8x4x4xf32> to vector<8x16xf32>
    %751 = arith.truncf %750 : vector<8x16xf32> to vector<8x16xbf16>
    %c0_136 = arith.constant 0 : index
    %c0_137 = arith.constant 0 : index
    %c64_138 = arith.constant 64 : index
    %c8_139 = arith.constant 8 : index
    %752 = vector.load %arg4[%c0_136, %c0_137, %c64_138, %c8_139] : memref<1x1x80x32xbf16, #tpu.memory_space<vmem>>, vector<1x1x16x8xbf16>
    %753 = vector.shape_cast %752 : vector<1x1x16x8xbf16> to vector<16x8xbf16>
    %cst_140 = arith.constant dense<0.000000e+00> : vector<8x8xf32>
    %754 = tpu.matmul %751, %753, %cst_140 {dimension_numbers = #tpu.dot_dimension_numbers<[1], [0], [0], [1], [0, 0, 1, 1], [], []>} : vector<8x16xbf16>, vector<16x8xbf16>, vector<8x8xf32> -> vector<8x8xf32>
    %755 = arith.addf %259, %754 : vector<8x8xf32>
    %cst_141 = arith.constant 0.000000e+00 : f32
    %756 = vector.broadcast %cst_141 : f32 to vector<8x4x4xf32>
    %757 = vector.extract_strided_slice %1 {offsets = [0, 24], sizes = [8, 1], strides = [1, 1]} : vector<8x128xf32> to vector<8x1xf32>
    %758 = arith.addf %508, %757 : vector<8x1xf32>
    %759 = vector.extract_strided_slice %1 {offsets = [0, 25], sizes = [8, 1], strides = [1, 1]} : vector<8x128xf32> to vector<8x1xf32>
    %760 = arith.addf %513, %759 : vector<8x1xf32>
    %761 = math.floor %758 : vector<8x1xf32>
    %762 = math.floor %760 : vector<8x1xf32>
    %763 = arith.subf %758, %761 : vector<8x1xf32>
    %764 = arith.subf %760, %762 : vector<8x1xf32>
    %765 = arith.fptosi %761 : vector<8x1xf32> to vector<8x1xi32>
    %766 = arith.fptosi %762 : vector<8x1xf32> to vector<8x1xi32>
    %767 = vector.extract_strided_slice %1 {offsets = [0, 46], sizes = [8, 1], strides = [1, 1]} : vector<8x128xf32> to vector<8x1xf32>
    %768 = vector.broadcast %502 : vector<1x4xi32> to vector<8x4xi32>
    %769 = vector.broadcast %766 : vector<8x1xi32> to vector<8x4xi32>
    %770 = arith.cmpi eq, %768, %769 : vector<8x4xi32>
    %cst_142 = arith.constant 1.000000e+00 : f32
    %771 = vector.broadcast %cst_142 : f32 to vector<8x1xf32>
    %772 = arith.subf %771, %764 : vector<8x1xf32>
    %cst_143 = arith.constant 0.000000e+00 : f32
    %773 = vector.shape_cast %772 : vector<8x1xf32> to vector<8x1xf32>
    %774 = vector.broadcast %773 : vector<8x1xf32> to vector<8x4xf32>
    %775 = vector.broadcast %cst_143 : f32 to vector<8x4xf32>
    %776 = arith.select %770, %774, %775 : vector<8x4xi1>, vector<8x4xf32>
    %c1_i32_144 = arith.constant 1 : i32
    %777 = vector.broadcast %c1_i32_144 : i32 to vector<8x1xi32>
    %778 = arith.addi %766, %777 : vector<8x1xi32>
    %779 = vector.broadcast %502 : vector<1x4xi32> to vector<8x4xi32>
    %780 = vector.broadcast %778 : vector<8x1xi32> to vector<8x4xi32>
    %781 = arith.cmpi eq, %779, %780 : vector<8x4xi32>
    %cst_145 = arith.constant 0.000000e+00 : f32
    %782 = vector.shape_cast %764 : vector<8x1xf32> to vector<8x1xf32>
    %783 = vector.broadcast %782 : vector<8x1xf32> to vector<8x4xf32>
    %784 = vector.broadcast %cst_145 : f32 to vector<8x4xf32>
    %785 = arith.select %781, %783, %784 : vector<8x4xi1>, vector<8x4xf32>
    %786 = arith.addf %776, %785 : vector<8x4xf32>
    %787 = vector.broadcast %767 : vector<8x1xf32> to vector<8x4xf32>
    %788 = arith.mulf %786, %787 : vector<8x4xf32>
    %789 = vector.broadcast %503 : vector<1x4xi32> to vector<8x4xi32>
    %790 = vector.broadcast %765 : vector<8x1xi32> to vector<8x4xi32>
    %791 = arith.cmpi eq, %789, %790 : vector<8x4xi32>
    %cst_146 = arith.constant 1.000000e+00 : f32
    %792 = vector.broadcast %cst_146 : f32 to vector<8x1xf32>
    %793 = arith.subf %792, %763 : vector<8x1xf32>
    %cst_147 = arith.constant 0.000000e+00 : f32
    %794 = vector.shape_cast %793 : vector<8x1xf32> to vector<8x1xf32>
    %795 = vector.broadcast %794 : vector<8x1xf32> to vector<8x4xf32>
    %796 = vector.broadcast %cst_147 : f32 to vector<8x4xf32>
    %797 = arith.select %791, %795, %796 : vector<8x4xi1>, vector<8x4xf32>
    %c1_i32_148 = arith.constant 1 : i32
    %798 = vector.broadcast %c1_i32_148 : i32 to vector<8x1xi32>
    %799 = arith.addi %765, %798 : vector<8x1xi32>
    %800 = vector.broadcast %503 : vector<1x4xi32> to vector<8x4xi32>
    %801 = vector.broadcast %799 : vector<8x1xi32> to vector<8x4xi32>
    %802 = arith.cmpi eq, %800, %801 : vector<8x4xi32>
    %cst_149 = arith.constant 0.000000e+00 : f32
    %803 = vector.shape_cast %763 : vector<8x1xf32> to vector<8x1xf32>
    %804 = vector.broadcast %803 : vector<8x1xf32> to vector<8x4xf32>
    %805 = vector.broadcast %cst_149 : f32 to vector<8x4xf32>
    %806 = arith.select %802, %804, %805 : vector<8x4xi1>, vector<8x4xf32>
    %807 = arith.addf %797, %806 : vector<8x4xf32>
    %808 = vector.shape_cast %788 : vector<8x4xf32> to vector<8x4x1xf32>
    %809 = vector.shape_cast %807 : vector<8x4xf32> to vector<8x1x4xf32>
    %810 = vector.broadcast %808 : vector<8x4x1xf32> to vector<8x4x4xf32>
    %811 = vector.broadcast %809 : vector<8x1x4xf32> to vector<8x4x4xf32>
    %812 = arith.mulf %810, %811 : vector<8x4x4xf32>
    %813 = arith.addf %756, %812 : vector<8x4x4xf32>
    %814 = vector.extract_strided_slice %1 {offsets = [0, 26], sizes = [8, 1], strides = [1, 1]} : vector<8x128xf32> to vector<8x1xf32>
    %815 = arith.addf %508, %814 : vector<8x1xf32>
    %816 = vector.extract_strided_slice %1 {offsets = [0, 27], sizes = [8, 1], strides = [1, 1]} : vector<8x128xf32> to vector<8x1xf32>
    %817 = arith.addf %513, %816 : vector<8x1xf32>
    %818 = math.floor %815 : vector<8x1xf32>
    %819 = math.floor %817 : vector<8x1xf32>
    %820 = arith.subf %815, %818 : vector<8x1xf32>
    %821 = arith.subf %817, %819 : vector<8x1xf32>
    %822 = arith.fptosi %818 : vector<8x1xf32> to vector<8x1xi32>
    %823 = arith.fptosi %819 : vector<8x1xf32> to vector<8x1xi32>
    %824 = vector.extract_strided_slice %1 {offsets = [0, 47], sizes = [8, 1], strides = [1, 1]} : vector<8x128xf32> to vector<8x1xf32>
    %825 = vector.broadcast %502 : vector<1x4xi32> to vector<8x4xi32>
    %826 = vector.broadcast %823 : vector<8x1xi32> to vector<8x4xi32>
    %827 = arith.cmpi eq, %825, %826 : vector<8x4xi32>
    %cst_150 = arith.constant 1.000000e+00 : f32
    %828 = vector.broadcast %cst_150 : f32 to vector<8x1xf32>
    %829 = arith.subf %828, %821 : vector<8x1xf32>
    %cst_151 = arith.constant 0.000000e+00 : f32
    %830 = vector.shape_cast %829 : vector<8x1xf32> to vector<8x1xf32>
    %831 = vector.broadcast %830 : vector<8x1xf32> to vector<8x4xf32>
    %832 = vector.broadcast %cst_151 : f32 to vector<8x4xf32>
    %833 = arith.select %827, %831, %832 : vector<8x4xi1>, vector<8x4xf32>
    %c1_i32_152 = arith.constant 1 : i32
    %834 = vector.broadcast %c1_i32_152 : i32 to vector<8x1xi32>
    %835 = arith.addi %823, %834 : vector<8x1xi32>
    %836 = vector.broadcast %502 : vector<1x4xi32> to vector<8x4xi32>
    %837 = vector.broadcast %835 : vector<8x1xi32> to vector<8x4xi32>
    %838 = arith.cmpi eq, %836, %837 : vector<8x4xi32>
    %cst_153 = arith.constant 0.000000e+00 : f32
    %839 = vector.shape_cast %821 : vector<8x1xf32> to vector<8x1xf32>
    %840 = vector.broadcast %839 : vector<8x1xf32> to vector<8x4xf32>
    %841 = vector.broadcast %cst_153 : f32 to vector<8x4xf32>
    %842 = arith.select %838, %840, %841 : vector<8x4xi1>, vector<8x4xf32>
    %843 = arith.addf %833, %842 : vector<8x4xf32>
    %844 = vector.broadcast %824 : vector<8x1xf32> to vector<8x4xf32>
    %845 = arith.mulf %843, %844 : vector<8x4xf32>
    %846 = vector.broadcast %503 : vector<1x4xi32> to vector<8x4xi32>
    %847 = vector.broadcast %822 : vector<8x1xi32> to vector<8x4xi32>
    %848 = arith.cmpi eq, %846, %847 : vector<8x4xi32>
    %cst_154 = arith.constant 1.000000e+00 : f32
    %849 = vector.broadcast %cst_154 : f32 to vector<8x1xf32>
    %850 = arith.subf %849, %820 : vector<8x1xf32>
    %cst_155 = arith.constant 0.000000e+00 : f32
    %851 = vector.shape_cast %850 : vector<8x1xf32> to vector<8x1xf32>
    %852 = vector.broadcast %851 : vector<8x1xf32> to vector<8x4xf32>
    %853 = vector.broadcast %cst_155 : f32 to vector<8x4xf32>
    %854 = arith.select %848, %852, %853 : vector<8x4xi1>, vector<8x4xf32>
    %c1_i32_156 = arith.constant 1 : i32
    %855 = vector.broadcast %c1_i32_156 : i32 to vector<8x1xi32>
    %856 = arith.addi %822, %855 : vector<8x1xi32>
    %857 = vector.broadcast %503 : vector<1x4xi32> to vector<8x4xi32>
    %858 = vector.broadcast %856 : vector<8x1xi32> to vector<8x4xi32>
    %859 = arith.cmpi eq, %857, %858 : vector<8x4xi32>
    %cst_157 = arith.constant 0.000000e+00 : f32
    %860 = vector.shape_cast %820 : vector<8x1xf32> to vector<8x1xf32>
    %861 = vector.broadcast %860 : vector<8x1xf32> to vector<8x4xf32>
    %862 = vector.broadcast %cst_157 : f32 to vector<8x4xf32>
    %863 = arith.select %859, %861, %862 : vector<8x4xi1>, vector<8x4xf32>
    %864 = arith.addf %854, %863 : vector<8x4xf32>
    %865 = vector.shape_cast %845 : vector<8x4xf32> to vector<8x4x1xf32>
    %866 = vector.shape_cast %864 : vector<8x4xf32> to vector<8x1x4xf32>
    %867 = vector.broadcast %865 : vector<8x4x1xf32> to vector<8x4x4xf32>
    %868 = vector.broadcast %866 : vector<8x1x4xf32> to vector<8x4x4xf32>
    %869 = arith.mulf %867, %868 : vector<8x4x4xf32>
    %870 = arith.addf %813, %869 : vector<8x4x4xf32>
    %871 = vector.shape_cast %870 : vector<8x4x4xf32> to vector<8x16xf32>
    %872 = arith.truncf %871 : vector<8x16xf32> to vector<8x16xbf16>
    %c0_158 = arith.constant 0 : index
    %c0_159 = arith.constant 0 : index
    %c64_160 = arith.constant 64 : index
    %c16_161 = arith.constant 16 : index
    %873 = vector.load %arg4[%c0_158, %c0_159, %c64_160, %c16_161] : memref<1x1x80x32xbf16, #tpu.memory_space<vmem>>, vector<1x1x16x8xbf16>
    %874 = vector.shape_cast %873 : vector<1x1x16x8xbf16> to vector<16x8xbf16>
    %cst_162 = arith.constant dense<0.000000e+00> : vector<8x8xf32>
    %875 = tpu.matmul %872, %874, %cst_162 {dimension_numbers = #tpu.dot_dimension_numbers<[1], [0], [0], [1], [0, 0, 1, 1], [], []>} : vector<8x16xbf16>, vector<16x8xbf16>, vector<8x8xf32> -> vector<8x8xf32>
    %876 = arith.addf %380, %875 : vector<8x8xf32>
    %cst_163 = arith.constant 0.000000e+00 : f32
    %877 = vector.broadcast %cst_163 : f32 to vector<8x4x4xf32>
    %878 = vector.extract_strided_slice %1 {offsets = [0, 32], sizes = [8, 1], strides = [1, 1]} : vector<8x128xf32> to vector<8x1xf32>
    %879 = arith.addf %508, %878 : vector<8x1xf32>
    %880 = vector.extract_strided_slice %1 {offsets = [0, 33], sizes = [8, 1], strides = [1, 1]} : vector<8x128xf32> to vector<8x1xf32>
    %881 = arith.addf %513, %880 : vector<8x1xf32>
    %882 = math.floor %879 : vector<8x1xf32>
    %883 = math.floor %881 : vector<8x1xf32>
    %884 = arith.subf %879, %882 : vector<8x1xf32>
    %885 = arith.subf %881, %883 : vector<8x1xf32>
    %886 = arith.fptosi %882 : vector<8x1xf32> to vector<8x1xi32>
    %887 = arith.fptosi %883 : vector<8x1xf32> to vector<8x1xi32>
    %888 = vector.extract_strided_slice %1 {offsets = [0, 50], sizes = [8, 1], strides = [1, 1]} : vector<8x128xf32> to vector<8x1xf32>
    %889 = vector.broadcast %502 : vector<1x4xi32> to vector<8x4xi32>
    %890 = vector.broadcast %887 : vector<8x1xi32> to vector<8x4xi32>
    %891 = arith.cmpi eq, %889, %890 : vector<8x4xi32>
    %cst_164 = arith.constant 1.000000e+00 : f32
    %892 = vector.broadcast %cst_164 : f32 to vector<8x1xf32>
    %893 = arith.subf %892, %885 : vector<8x1xf32>
    %cst_165 = arith.constant 0.000000e+00 : f32
    %894 = vector.shape_cast %893 : vector<8x1xf32> to vector<8x1xf32>
    %895 = vector.broadcast %894 : vector<8x1xf32> to vector<8x4xf32>
    %896 = vector.broadcast %cst_165 : f32 to vector<8x4xf32>
    %897 = arith.select %891, %895, %896 : vector<8x4xi1>, vector<8x4xf32>
    %c1_i32_166 = arith.constant 1 : i32
    %898 = vector.broadcast %c1_i32_166 : i32 to vector<8x1xi32>
    %899 = arith.addi %887, %898 : vector<8x1xi32>
    %900 = vector.broadcast %502 : vector<1x4xi32> to vector<8x4xi32>
    %901 = vector.broadcast %899 : vector<8x1xi32> to vector<8x4xi32>
    %902 = arith.cmpi eq, %900, %901 : vector<8x4xi32>
    %cst_167 = arith.constant 0.000000e+00 : f32
    %903 = vector.shape_cast %885 : vector<8x1xf32> to vector<8x1xf32>
    %904 = vector.broadcast %903 : vector<8x1xf32> to vector<8x4xf32>
    %905 = vector.broadcast %cst_167 : f32 to vector<8x4xf32>
    %906 = arith.select %902, %904, %905 : vector<8x4xi1>, vector<8x4xf32>
    %907 = arith.addf %897, %906 : vector<8x4xf32>
    %908 = vector.broadcast %888 : vector<8x1xf32> to vector<8x4xf32>
    %909 = arith.mulf %907, %908 : vector<8x4xf32>
    %910 = vector.broadcast %503 : vector<1x4xi32> to vector<8x4xi32>
    %911 = vector.broadcast %886 : vector<8x1xi32> to vector<8x4xi32>
    %912 = arith.cmpi eq, %910, %911 : vector<8x4xi32>
    %cst_168 = arith.constant 1.000000e+00 : f32
    %913 = vector.broadcast %cst_168 : f32 to vector<8x1xf32>
    %914 = arith.subf %913, %884 : vector<8x1xf32>
    %cst_169 = arith.constant 0.000000e+00 : f32
    %915 = vector.shape_cast %914 : vector<8x1xf32> to vector<8x1xf32>
    %916 = vector.broadcast %915 : vector<8x1xf32> to vector<8x4xf32>
    %917 = vector.broadcast %cst_169 : f32 to vector<8x4xf32>
    %918 = arith.select %912, %916, %917 : vector<8x4xi1>, vector<8x4xf32>
    %c1_i32_170 = arith.constant 1 : i32
    %919 = vector.broadcast %c1_i32_170 : i32 to vector<8x1xi32>
    %920 = arith.addi %886, %919 : vector<8x1xi32>
    %921 = vector.broadcast %503 : vector<1x4xi32> to vector<8x4xi32>
    %922 = vector.broadcast %920 : vector<8x1xi32> to vector<8x4xi32>
    %923 = arith.cmpi eq, %921, %922 : vector<8x4xi32>
    %cst_171 = arith.constant 0.000000e+00 : f32
    %924 = vector.shape_cast %884 : vector<8x1xf32> to vector<8x1xf32>
    %925 = vector.broadcast %924 : vector<8x1xf32> to vector<8x4xf32>
    %926 = vector.broadcast %cst_171 : f32 to vector<8x4xf32>
    %927 = arith.select %923, %925, %926 : vector<8x4xi1>, vector<8x4xf32>
    %928 = arith.addf %918, %927 : vector<8x4xf32>
    %929 = vector.shape_cast %909 : vector<8x4xf32> to vector<8x4x1xf32>
    %930 = vector.shape_cast %928 : vector<8x4xf32> to vector<8x1x4xf32>
    %931 = vector.broadcast %929 : vector<8x4x1xf32> to vector<8x4x4xf32>
    %932 = vector.broadcast %930 : vector<8x1x4xf32> to vector<8x4x4xf32>
    %933 = arith.mulf %931, %932 : vector<8x4x4xf32>
    %934 = arith.addf %877, %933 : vector<8x4x4xf32>
    %935 = vector.extract_strided_slice %1 {offsets = [0, 34], sizes = [8, 1], strides = [1, 1]} : vector<8x128xf32> to vector<8x1xf32>
    %936 = arith.addf %508, %935 : vector<8x1xf32>
    %937 = vector.extract_strided_slice %1 {offsets = [0, 35], sizes = [8, 1], strides = [1, 1]} : vector<8x128xf32> to vector<8x1xf32>
    %938 = arith.addf %513, %937 : vector<8x1xf32>
    %939 = math.floor %936 : vector<8x1xf32>
    %940 = math.floor %938 : vector<8x1xf32>
    %941 = arith.subf %936, %939 : vector<8x1xf32>
    %942 = arith.subf %938, %940 : vector<8x1xf32>
    %943 = arith.fptosi %939 : vector<8x1xf32> to vector<8x1xi32>
    %944 = arith.fptosi %940 : vector<8x1xf32> to vector<8x1xi32>
    %945 = vector.extract_strided_slice %1 {offsets = [0, 51], sizes = [8, 1], strides = [1, 1]} : vector<8x128xf32> to vector<8x1xf32>
    %946 = vector.broadcast %502 : vector<1x4xi32> to vector<8x4xi32>
    %947 = vector.broadcast %944 : vector<8x1xi32> to vector<8x4xi32>
    %948 = arith.cmpi eq, %946, %947 : vector<8x4xi32>
    %cst_172 = arith.constant 1.000000e+00 : f32
    %949 = vector.broadcast %cst_172 : f32 to vector<8x1xf32>
    %950 = arith.subf %949, %942 : vector<8x1xf32>
    %cst_173 = arith.constant 0.000000e+00 : f32
    %951 = vector.shape_cast %950 : vector<8x1xf32> to vector<8x1xf32>
    %952 = vector.broadcast %951 : vector<8x1xf32> to vector<8x4xf32>
    %953 = vector.broadcast %cst_173 : f32 to vector<8x4xf32>
    %954 = arith.select %948, %952, %953 : vector<8x4xi1>, vector<8x4xf32>
    %c1_i32_174 = arith.constant 1 : i32
    %955 = vector.broadcast %c1_i32_174 : i32 to vector<8x1xi32>
    %956 = arith.addi %944, %955 : vector<8x1xi32>
    %957 = vector.broadcast %502 : vector<1x4xi32> to vector<8x4xi32>
    %958 = vector.broadcast %956 : vector<8x1xi32> to vector<8x4xi32>
    %959 = arith.cmpi eq, %957, %958 : vector<8x4xi32>
    %cst_175 = arith.constant 0.000000e+00 : f32
    %960 = vector.shape_cast %942 : vector<8x1xf32> to vector<8x1xf32>
    %961 = vector.broadcast %960 : vector<8x1xf32> to vector<8x4xf32>
    %962 = vector.broadcast %cst_175 : f32 to vector<8x4xf32>
    %963 = arith.select %959, %961, %962 : vector<8x4xi1>, vector<8x4xf32>
    %964 = arith.addf %954, %963 : vector<8x4xf32>
    %965 = vector.broadcast %945 : vector<8x1xf32> to vector<8x4xf32>
    %966 = arith.mulf %964, %965 : vector<8x4xf32>
    %967 = vector.broadcast %503 : vector<1x4xi32> to vector<8x4xi32>
    %968 = vector.broadcast %943 : vector<8x1xi32> to vector<8x4xi32>
    %969 = arith.cmpi eq, %967, %968 : vector<8x4xi32>
    %cst_176 = arith.constant 1.000000e+00 : f32
    %970 = vector.broadcast %cst_176 : f32 to vector<8x1xf32>
    %971 = arith.subf %970, %941 : vector<8x1xf32>
    %cst_177 = arith.constant 0.000000e+00 : f32
    %972 = vector.shape_cast %971 : vector<8x1xf32> to vector<8x1xf32>
    %973 = vector.broadcast %972 : vector<8x1xf32> to vector<8x4xf32>
    %974 = vector.broadcast %cst_177 : f32 to vector<8x4xf32>
    %975 = arith.select %969, %973, %974 : vector<8x4xi1>, vector<8x4xf32>
    %c1_i32_178 = arith.constant 1 : i32
    %976 = vector.broadcast %c1_i32_178 : i32 to vector<8x1xi32>
    %977 = arith.addi %943, %976 : vector<8x1xi32>
    %978 = vector.broadcast %503 : vector<1x4xi32> to vector<8x4xi32>
    %979 = vector.broadcast %977 : vector<8x1xi32> to vector<8x4xi32>
    %980 = arith.cmpi eq, %978, %979 : vector<8x4xi32>
    %cst_179 = arith.constant 0.000000e+00 : f32
    %981 = vector.shape_cast %941 : vector<8x1xf32> to vector<8x1xf32>
    %982 = vector.broadcast %981 : vector<8x1xf32> to vector<8x4xf32>
    %983 = vector.broadcast %cst_179 : f32 to vector<8x4xf32>
    %984 = arith.select %980, %982, %983 : vector<8x4xi1>, vector<8x4xf32>
    %985 = arith.addf %975, %984 : vector<8x4xf32>
    %986 = vector.shape_cast %966 : vector<8x4xf32> to vector<8x4x1xf32>
    %987 = vector.shape_cast %985 : vector<8x4xf32> to vector<8x1x4xf32>
    %988 = vector.broadcast %986 : vector<8x4x1xf32> to vector<8x4x4xf32>
    %989 = vector.broadcast %987 : vector<8x1x4xf32> to vector<8x4x4xf32>
    %990 = arith.mulf %988, %989 : vector<8x4x4xf32>
    %991 = arith.addf %934, %990 : vector<8x4x4xf32>
    %992 = vector.shape_cast %991 : vector<8x4x4xf32> to vector<8x16xf32>
    %993 = arith.truncf %992 : vector<8x16xf32> to vector<8x16xbf16>
    %c0_180 = arith.constant 0 : index
    %c0_181 = arith.constant 0 : index
    %c64_182 = arith.constant 64 : index
    %c24_183 = arith.constant 24 : index
    %994 = vector.load %arg4[%c0_180, %c0_181, %c64_182, %c24_183] : memref<1x1x80x32xbf16, #tpu.memory_space<vmem>>, vector<1x1x16x8xbf16>
    %995 = vector.shape_cast %994 : vector<1x1x16x8xbf16> to vector<16x8xbf16>
    %cst_184 = arith.constant dense<0.000000e+00> : vector<8x8xf32>
    %996 = tpu.matmul %993, %995, %cst_184 {dimension_numbers = #tpu.dot_dimension_numbers<[1], [0], [0], [1], [0, 0, 1, 1], [], []>} : vector<8x16xbf16>, vector<16x8xbf16>, vector<8x8xf32> -> vector<8x8xf32>
    %997 = arith.addf %501, %996 : vector<8x8xf32>
    %998 = tpu.concatenate %634, %755, %876, %997 in 1 : vector<8x8xf32>, vector<8x8xf32>, vector<8x8xf32>, vector<8x8xf32> -> vector<8x32xf32>
    %c0_185 = arith.constant 0 : index
    %c0_186 = arith.constant 0 : index
    %c0_187 = arith.constant 0 : index
    %c0_188 = arith.constant 0 : index
    %999 = vector.load %arg5[%c0_185, %c0_186, %c0_187, %c0_188] : memref<1x1x8x32xf32, #tpu.memory_space<vmem>>, vector<1x1x8x32xf32>
    %1000 = vector.shape_cast %999 : vector<1x1x8x32xf32> to vector<8x32xf32>
    %1001 = vector.shape_cast %998 : vector<8x32xf32> to vector<1x1x8x32xf32>
    tpu.vector_store %arg5[%c0_185, %c0_186, %c0_187, %c0_188], %1001 {strides = array<i32>} : memref<1x1x8x32xf32, #tpu.memory_space<vmem>>, vector<1x1x8x32xf32>,
    return
  }
  func.func @transform_0(%arg0: i32, %arg1: i32, %arg2: i32) -> (i32, i32, i32, i32) {
    %c0_i32 = arith.constant 0 : i32
    %c0_i32_0 = arith.constant 0 : i32
    return %arg0, %arg1, %arg2, %c0_i32 : i32, i32, i32, i32
  }
  func.func @transform_1(%arg0: i32, %arg1: i32, %arg2: i32) -> (i32, i32, i32, i32) {
    %c0_i32 = arith.constant 0 : i32
    %c0_i32_0 = arith.constant 0 : i32
    %c0_i32_1 = arith.constant 0 : i32
    return %arg0, %arg1, %c0_i32, %c0_i32_0 : i32, i32, i32, i32
  }
  func.func @transform_2(%arg0: i32, %arg1: i32, %arg2: i32) -> (i32, i32, i32, i32) {
    %c0_i32 = arith.constant 0 : i32
    %c0_i32_0 = arith.constant 0 : i32
    return %arg0, %arg1, %arg2, %c0_i32 : i32, i32, i32, i32
  }
}

</mosaic_0001>

<bundles_post_ra>
// kernel: tpu_custom_call.1
= control target key start
LH: loop header
LB: loop body
LE: loop exit
PB: predicated region body
PF: predicated region fallthrough
CT: control target
= control target key end

     0   :  { %7 = vsyncpa [#allocation3], 0  ;;  %s8071_s0 = inlined_call_operand.vmem [shape: f32[2,1,8,128], index: 0, kind: input, shape index: {}]   ;;  %s8072_s1 = inlined_call_operand.vmem [shape: bf16[2,1,80,32], index: 1, kind: input, shape index: {}]   ;;  %s8073_s2 = inlined_call_operand.hbm [shape: f32[2,1,8,32], index: 2, kind: output, shape index: {}]  }
   0x1   :  { %9 = vsyncpa [#allocation3 + $0x1], 0  ;;  %s5886_s9 = smov 0   ;;  %s5888_s10 = smov 0  }
   0x2   :  { %s5890_s11 = smov 0   ;;  %s5892_s12 = smov 0  }
   0x3   :  { %s5894_s13 = smov 0   ;;  %s5896_s14 = smov 0  }
   0x4 LB: > { %s5370_s15 = sadd.s32 4294967295, %s5822_s14   ;;  %s5371_s16 = sadd.s32 4294967294, %s5822_s14   ;;  %s5822_s14 = sphi %s5896_s14, %s15_s14   ;;  %s5818_s13 = sphi %s5894_s13, %s8331_s13   ;;  %s5814_s12 = sphi %s5892_s12, %s8330_s12   ;;  %s5810_s11 = sphi %s5890_s11, %s8329_s11   ;;  %s5806_s10 = sphi %s5888_s10, %s8328_s10   ;;  %s5802_s9 = sphi %s5886_s9, %s8327_s9  }
   0x5   : > { %s34_s17 = sadd.s32 1, %s5818_s13  ;;  %s103_s18 = sadd.s32 1, %s5810_s11 }
   0x6   : > { %p36_p0 = scmp.ge.s32.totalorder %s34_s17, 2  ;;  %p113_p1 = scmp.ne.s32.totalorder %s5810_s11, %s5806_s10 }
   0x7   : > { %p114_p2 = scmp.eq.s32.totalorder %s5370_s15, 1  ;;  %p119_p3 = scmp.ne.s32.totalorder %s5806_s10, %s5802_s9 }
   0x8   : > { %s8333_s17 = smov (%p36_p0, %s34_s17), 0  ;;  %p120_p5 = scmp.eq.s32.totalorder %s5371_s16, 1 }
   0x9   : > { %p5926_p4 = por %p114_p2, %p113_p1  ;;  %s96_s20 = ssub.s32 %s5818_s13, %s8333_s17 }
   0xa   : > { %p5374_p6 = scmp.ge.s32.totalorder %s5822_s14, 1  ;;  %p101_p7 = scmp.eq.s32.totalorder %s96_s20, 0 }
   0xb   : > { %p5933_p8 = por %p120_p5, %p119_p3  ;;  %p163_p9 = scmp.lt.s32.totalorder %s5822_s14, 3 }
   0xc   : > { %s5939_s22 = scalar_select %p101_p7, %s5810_s11, %s103_s18  }
   0xd   : > { %p164_p10 = pnand %p5374_p6, %p163_p9 }
   0xf   : > { %167 = sbr.rel (%p164_p10) target bundleno = 1782 (0x6f6), region = 28 }
  0x14   : > { %p199_p11 = scmp.lt.s32.totalorder %s5814_s12, 1  ;;  %v5824_v0 = vmov 36   ;;  %v5825_v1 = vmov 37   ;;  %s5826_s4 = smov 124   ;;  %v5830_v3 = vmov 40   ;;  %v5831_v4 = vmov 41  }
  0x15   : > { %5646 = vset.pattern.permute.xlu0 %v5824_v0  ;;  %5647 = vset.pattern.permute.xlu1 %v5825_v1  ;;  %s5827_s5 = smov 122   ;;  %s5828_s6 = smov 116   ;;  %v5834_v5 = vmov 44   ;;  %v5835_v6 = vmov 45   ;;  %v5837_v7 = vmov 1   ;;  %v5838_v8 = vmov 48  }
  0x16   : > { %s200_s23 = scalar_select %p199_p11, %s5814_s12, 1  ;;  %v8074_v22 = vmov 0  }
  0x17   : > { %s5829_s7 = smov 114   ;;  %s5832_s8 = smov 108  }
  0x18   : > { %s5376_s24 = sshll.u32 %s200_s23, 3  ;;  %s5512_s25 = smul.u32 40, %s200_s23 }
  0x19   : > { %s5946_s28 = scalar_lea.vmem %s8071_s0, %s5376_s24  ;;  %s5833_s15 = smov 106  }
  0x1a   : > { %s5951_s3 = scalar_lea.vmem %s8072_s1, %s5512_s25  ;;  %v5954_v2 = vld [vmem:[%s5946_s28] sm:$0xff]  ;;  %s5836_s16 = smov 100  }
  0x1b   : > { %225 = vrot.lane.b32.xlu0 %v5954_v2, %s5826_s4  ;;  %441 = vrot.lane.b32.xlu1 %v5954_v2, %s5827_s5  ;;  %v222_v9 = vmul.f32 8.0, %v5954_v2  ;;  %s5840_s18 = smov 112   ;;  %s5841_s20 = smov 120  }
  0x1c   : > { %s5842_s23 = smov 98   ;;  %s5843_s24 = smov 104  }
  0x1d   : > { %v5973_v10 = vadd.f32 -0.5, %v222_v9  ;;  %s5844_s25 = smov 96   ;;  %s5851_s26 = smov 16  }
  0x1e   : > { %s5852_s27 = smov 8   ;;  %s5853_s29 = smov 24  }
  0x1f   : > { %256 = vperm.xlu0 %5646, %v5954_v2   ;;  %472 = vperm.xlu1 %5647, %v5954_v2   ;;  %s5854_s30 = smov 32   ;;  %s5855_s4 = smov 40  }
  0x20   : > { %s5856_s5 = smov 48  }
  0x23   : > { %844 = vrot.lane.b32.xlu0 %v5954_v2, %s5828_s6  ;;  %1060 = vrot.lane.b32.xlu1 %v5954_v2, %s5829_s7  ;;  %s5857_s6 = smov 56   ;;  %s5869_s7 = smov 12  }
  0x24   : > { %5648 = vset.pattern.permute.xlu0 %v5830_v3  ;;  %5649 = vset.pattern.permute.xlu1 %v5831_v4 }
  0x27   : > { %875 = vperm.xlu0 %5648, %v5954_v2   ;;  %1091 = vperm.xlu1 %5649, %v5954_v2  }
  0x2b   : > { %1456 = vrot.lane.b32.xlu0 %v5954_v2, %s5832_s8  ;;  %1672 = vrot.lane.b32.xlu1 %v5954_v2, %s5833_s15  ;;  %s5409_s15 = sshll.u32 %s5814_s12, 7  ;;  %s5870_s12 = smov [#allocation2]  }
  0x2c   : > { %5650 = vset.pattern.permute.xlu0 %v5834_v5  ;;  %5651 = vset.pattern.permute.xlu1 %v5835_v6 }
  0x2f   : > { %1487 = vperm.xlu0 %5650, %v5954_v2   ;;  %1703 = vperm.xlu1 %5651, %v5954_v2  }
  0x33   : > { %2068 = vrot.lane.b32.xlu0 %v5954_v2, %s5836_s16  ;;  %5652 = vset.pattern.permute.xlu1 %v5837_v7 }
  0x34   : > { %5675 = vset.pattern.permute.xlu0 %v5838_v8 }
  0x37   : > { %2099 = vperm.xlu0 %5675, %v5954_v2  }
  0x3b   : > { %5676 = vset.pattern.permute.xlu0 %v5837_v7 }
  0x8d   : > { %v226_v11 = vpop.permute.xlu0 %225  ;;  %v5975_v12 = vpop.permute.xlu1 %441 }
  0x8e   : > { %v228_v13 = vadd.f32 %v5973_v10, %v226_v11  ;;  %v444_v14 = vadd.f32 %v5973_v10, %v5975_v12 }
  0x90   : > { %v229_v15 = vfloor.f32 %v228_v13  ;;  %v445_v16 = vfloor.f32 %v444_v14 }
  0x92   : > { %v5980_v17 = vsub.f32 %v228_v13, %v229_v15  ;;  %v5513_v18 = vtrunc.f32 %v229_v15  ;;  %v5515_v19 = vtrunc.f32 %v445_v16  ;;  %v5995_v25 = vsub.f32 %v444_v14, %v445_v16 }
  0x94   : > { %250 = vperm.xlu1 %5652, %v5980_v17   ;;  %v5983_v20 = vcvt.f32.s32 %v5513_v18  ;;  %v5986_v21 = vcvt.f32.s32 %v5515_v19  ;;  %v236_v53 = vsub.f32 1.0, %v5980_v17  ;;  %v452_v57 = vsub.f32 1.0, %v5995_v25 }
  0x96   : > { %233 = vperm.xlu0 %5676, %v5983_v20   ;;  %v6059_v0 = vadd.s32 1, %v5983_v20  ;;  %v459_v1 = vadd.s32 1, %v5986_v21 }
  0x98   : > { %5653 = vset.pattern.permute.xlu1 %v8074_v22 }
  0x99   : > { %274 = vperm.xlu1 %5653, %v5980_v17  }
  0x9a   : > { %v5990_v23 = vpop.permute.xlu0 %256  ;;  %v5992_v24 = vpop.permute.xlu1 %472  ;;  %449 = vperm.xlu0 %5676, %v5986_v21  }
  0x9d   : > { %5654 = vset.pattern.permute.xlu1 %v5837_v7 }
  0x9e   : > { %v845_v26 = vpop.permute.xlu0 %844  ;;  %v5998_v27 = vpop.permute.xlu1 %1060  ;;  %466 = vperm.xlu0 %5676, %v5995_v25  }
  0x9f   : > { %v847_v28 = vadd.f32 %v5973_v10, %v845_v26  ;;  %v1063_v29 = vadd.f32 %v5973_v10, %v5998_v27 }
  0xa1   : > { %v848_v30 = vfloor.f32 %v847_v28  ;;  %v1064_v31 = vfloor.f32 %v1063_v29 }
  0xa2   : > { %v6004_v32 = vpop.permute.xlu0 %875  ;;  %v6006_v33 = vpop.permute.xlu1 %1091 }
  0xa3   : > { %v849_v34 = vsub.f32 %v847_v28, %v848_v30  ;;  %v5519_v35 = vtrunc.f32 %v1064_v31  ;;  %v6019_v44 = vsub.f32 %v1063_v29, %v1064_v31  ;;  %v5517_v58 = vtrunc.f32 %v848_v30 }
  0xa5   : > { %869 = vperm.xlu1 %5654, %v849_v34   ;;  %v855_v36 = vsub.f32 1.0, %v849_v34  ;;  %v6011_v40 = vcvt.f32.s32 %v5519_v35  ;;  %v5518_v59 = vcvt.f32.s32 %v5517_v58  ;;  %v1071_v60 = vsub.f32 1.0, %v6019_v44 }
  0xa6   : > { %v1457_v37 = vpop.permute.xlu0 %1456  ;;  %v6008_v38 = vpop.permute.xlu1 %1672 }
  0xa7   : > { %8122 = vst [vmem:[#allocation5_spill] sm:$0xff] %v6008_v38  ;;  %v1459_v39 = vadd.f32 %v5973_v10, %v1457_v37  ;;  %858 = vperm.xlu0 %5676, %v855_v36   ;;  %v1675_v41 = vadd.f32 %v5973_v10, %v6008_v38  ;;  %v6066_v3 = vadd.s32 1, %v5518_v59  ;;  %v1078_v4 = vadd.s32 1, %v6011_v40 }
  0xa9   : > { %v1460_v42 = vfloor.f32 %v1459_v39  ;;  %5655 = vset.pattern.permute.xlu1 %v8074_v22  ;;  %v1676_v45 = vfloor.f32 %v1675_v41 }
  0xaa   : > { %893 = vperm.xlu1 %5655, %v849_v34   ;;  %v6016_v43 = vpop.permute.xlu0 %1487  ;;  %v6071_v5 = vpop.permute.xlu1 %1703 }
  0xab   : > { %1068 = vperm.xlu0 %5676, %v6011_v40   ;;  %v1461_v46 = vsub.f32 %v1459_v39, %v1460_v42  ;;  %v5523_v48 = vtrunc.f32 %v1676_v45  ;;  %v6037_v55 = vsub.f32 %v1675_v41, %v1676_v45  ;;  %v5521_v61 = vtrunc.f32 %v1460_v42 }
  0xad   : > { %v1467_v50 = vsub.f32 1.0, %v1461_v46  ;;  %v6027_v51 = vcvt.f32.s32 %v5523_v48  ;;  %v5522_v62 = vcvt.f32.s32 %v5521_v61  ;;  %v1683_v63 = vsub.f32 1.0, %v6037_v55 }
  0xae   : > { %5656 = vset.pattern.permute.xlu1 %v5837_v7  ;;  %v2069_v47 = vpop.permute.xlu0 %2068 }
  0xaf   : > { %1085 = vperm.xlu0 %5676, %v6019_v44   ;;  %1481 = vperm.xlu1 %5656, %v1461_v46   ;;  %v6024_v49 = vadd.f32 %v5973_v10, %v2069_v47  ;;  %v6074_v6 = vadd.s32 1, %v5522_v62  ;;  %v1690_v9 = vadd.s32 1, %v6027_v51 }
  0xb1   : > { %v2072_v52 = vfloor.f32 %v6024_v49 }
  0xb3   : > { %1470 = vperm.xlu0 %5676, %v1467_v50   ;;  %5657 = vset.pattern.permute.xlu1 %v8074_v22  ;;  %v6035_v54 = vsub.f32 %v6024_v49, %v2072_v52  ;;  %v5525_v14 = vtrunc.f32 %v2072_v52 }
  0xb4   : > { %1505 = vperm.xlu1 %5657, %v1461_v46  }
  0xb5   : > { %v2079_v56 = vsub.f32 1.0, %v6035_v54  ;;  %v5526_v16 = vcvt.f32.s32 %v5525_v14 }
  0xb7   : > { %1680 = vperm.xlu0 %5676, %v6027_v51   ;;  %v6091_v17 = vadd.s32 1, %v5526_v16 }
  0xb8   : > { %5658 = vset.pattern.permute.xlu1 %v5837_v7 }
  0xb9   : > { %239 = vperm.xlu1 %5658, %v236_v53  }
  0xbb   : > { %1697 = vperm.xlu0 %5676, %v6037_v55  }
  0xbd   : > { %5659 = vset.pattern.permute.xlu1 %v8074_v22 }
  0xbe   : > { %261 = vperm.xlu1 %5659, %v5983_v20   ;;  %v6099_v20 = vpop.permute.xlu0 %2099 }
  0xbf   : > { %2082 = vperm.xlu0 %5676, %v2079_v56  }
  0xc2   : > { %265 = vperm.xlu1 %5659, %v236_v53   ;;  %v2680_v53 = vmul.f32 4.0, %v5954_v2 }
  0xc3   : > { %3529 = vrot.lane.b32.xlu0 %v5954_v2, %s5840_s18 }
  0xc6   : > { %5660 = vset.pattern.permute.xlu1 %v5837_v7 }
  0xc7   : > { %455 = vperm.xlu1 %5660, %v452_v57  }
  0xcb   : > { %5661 = vset.pattern.permute.xlu1 %v8074_v22 }
  0xcc   : > { %481 = vperm.xlu1 %5661, %v452_v57   ;;  %v6143_v57 = vadd.f32 -0.5, %v2680_v53 }
  0xce   : > { %8125 = vst [vmem:[#allocation8_spill] sm:$0xff] %v6143_v57 }
  0xd0   : > { %5662 = vset.pattern.permute.xlu1 %v5837_v7 }
  0xd1   : > { %852 = vperm.xlu1 %5662, %v5518_v59  }
  0xd5   : > { %5663 = vset.pattern.permute.xlu1 %v8074_v22 }
  0xd6   : > { %880 = vperm.xlu1 %5663, %v5518_v59  }
  0xda   : > { %884 = vperm.xlu1 %5663, %v855_v36  }
  0xde   : > { %5664 = vset.pattern.permute.xlu1 %v5837_v7 }
  0xdf   : > { %1074 = vperm.xlu1 %5664, %v1071_v60  }
  0xe3   : > { %5665 = vset.pattern.permute.xlu1 %v8074_v22 }
  0xe4   : > { %1100 = vperm.xlu1 %5665, %v1071_v60   ;;  %v220_v60 = vlaneseq }
  0xe8   : > { %5666 = vset.pattern.permute.xlu1 %v5837_v7 }
  0xe9   : > { %1464 = vperm.xlu1 %5666, %v5522_v62  }
  0xed   : > { %5667 = vset.pattern.permute.xlu1 %v8074_v22 }
  0xee   : > { %1492 = vperm.xlu1 %5667, %v5522_v62  }
  0xf2   : > { %1496 = vperm.xlu1 %5667, %v1467_v50  }
  0xf6   : > { %5668 = vset.pattern.permute.xlu1 %v5837_v7 }
  0xf7   : > { %1686 = vperm.xlu1 %5668, %v1683_v63  }
  0xfb   : > { %245 = vperm.xlu1 %5668, %v6059_v0  }
  0xff   : > { %461 = vperm.xlu1 %5668, %v459_v1  }
 0x103   : > { %5669 = vset.pattern.permute.xlu1 %v8074_v22 }
 0x104   : > { %486 = vperm.xlu1 %5669, %v459_v1   ;;  %v6153_v1 = vand.u32 127, %v220_v60 }
 0x108   : > { %5670 = vset.pattern.permute.xlu1 %v5837_v7 }
 0x109   : > { %864 = vperm.xlu1 %5670, %v6066_v3  }
 0x10d   : > { %1080 = vperm.xlu1 %5670, %v1078_v4  }
 0x10f   : > { %v6076_v8 = vpop.permute.xlu1 %250 }
 0x111   : > { %5671 = vset.pattern.permute.xlu1 %v8074_v22  ;;  %v234_v29 = vpop.permute.xlu0 %233 }
 0x112   : > { %1105 = vperm.xlu1 %5671, %v1078_v4   ;;  %vm235_vm0 = vcmp.eq.s32.totalorder %v6153_v1, %v234_v29 }
 0x114   : > { %v6081_v11 = vpop.permute.xlu1 %274 }
 0x115   : > { %v450_v31 = vpop.permute.xlu0 %449 }
 0x116   : > { %5672 = vset.pattern.permute.xlu1 %v5837_v7  ;;  %vm451_vm3 = vcmp.eq.s32.totalorder %v6153_v1, %v450_v31 }
 0x117   : > { %1476 = vperm.xlu1 %5672, %v6074_v6  }
 0x119   : > { %v467_v35 = vpop.permute.xlu0 %466 }
 0x11b   : > { %1692 = vperm.xlu1 %5672, %v1690_v9  }
 0x11f   : > { %5673 = vset.pattern.permute.xlu1 %v8074_v22 }
 0x120   : > { %v6084_v13 = vpop.permute.xlu1 %869  ;;  %1712 = vperm.xlu1 %5673, %v1683_v63  }
 0x122   : > { %v6114_v37 = vpop.permute.xlu0 %858 }
 0x124   : > { %1717 = vperm.xlu1 %5673, %v1690_v9   ;;  %v6160_v9 = vshrl.u32 %v220_v60, 7 }
 0x125   : > { %v6088_v15 = vpop.permute.xlu1 %893 }
 0x126   : > { %v6118_v41 = vpop.permute.xlu0 %1068  ;;  %v6169_v38 = vsub.s32 1, %v6160_v9  ;;  %v6175_v29 = vsub.s32 3, %v6160_v9  ;;  %v6196_v31 = vsub.s32 6, %v6160_v9 }
 0x127   : > { %vm1070_vm7 = vcmp.eq.s32.totalorder %v6153_v1, %v6118_v41 }
 0x128   : > { %5674 = vset.pattern.permute.xlu1 %v5837_v7  ;;  %8128 = vst [vmem:[#allocation11_spill] sm:$0xff] %v6169_v38  ;;  %8129 = vst [vmem:[#allocation12_spill] sm:$0xff] %v6175_v29 }
 0x129   : > { %2076 = vperm.xlu1 %5674, %v5526_v16   ;;  %8134 = vst [vmem:[#allocation17_spill] sm:$0xff] %v6196_v31 }
 0x12a   : > { %v6093_v18 = vpop.permute.xlu1 %1481  ;;  %v6124_v46 = vpop.permute.xlu0 %1085 }
 0x12d   : > { %2088 = vperm.xlu1 %5674, %v6091_v17  }
 0x12e   : > { %v6128_v48 = vpop.permute.xlu0 %1470 }
 0x12f   : > { %v6096_v19 = vpop.permute.xlu1 %1505 }
 0x130   : > { %8123 = vst [vmem:[#allocation6_spill] sm:$0xff] %v6096_v19 }
 0x131   : > { %2093 = vperm.xlu1 %5674, %v6035_v54  }
 0x132   : > { %v6132_v49 = vpop.permute.xlu0 %1680 }
 0x133   : > { %vm1682_vm11 = vcmp.eq.s32.totalorder %v6153_v1, %v6132_v49 }
 0x134   : > { %v240_v26 = vpop.permute.xlu1 %239 }
 0x135   : > { %5677 = vset.pattern.permute.xlu1 %v8074_v22  ;;  %v6166_v22 = vsub.s32 0, %v6160_v9 }
 0x136   : > { %2104 = vperm.xlu1 %5677, %v5526_v16   ;;  %v6136_v52 = vpop.permute.xlu0 %1697  ;;  %v242_v16 = vsel %vm235_vm0, %v240_v26, 0.0  ;;  %v6178_v26 = vsub.s32 2, %v6160_v9 }
 0x138   : > { %8130 = vst [vmem:[#allocation13_spill] sm:$0xff] %v6178_v26 }
 0x139   : > { %v6102_v28 = vpop.permute.xlu1 %261 }
 0x13a   : > { %2108 = vperm.xlu1 %5677, %v2079_v56   ;;  %v6141_v56 = vpop.permute.xlu0 %2082  ;;  %vm263_vm0 = vcmp.eq.s32.totalorder %v6153_v1, %v6102_v28 }
 0x13d   : > { %v6106_v30 = vpop.permute.xlu1 %265 }
 0x13e   : > { %2117 = vperm.xlu1 %5677, %v6035_v54   ;;  %v3530_v59 = vpop.permute.xlu0 %3529 }
 0x13f   : > { %v6148_v61 = vadd.f32 %v6143_v57, %v3530_v59 }
 0x141   : > { %v8077_v62 = vfloor.f32 %v6148_v61 }
 0x142   : > { %v456_v34 = vpop.permute.xlu1 %455  ;;  %2895 = vrot.lane.b32.xlu1 %v5954_v2, %s5841_s20 }
 0x143   : > { %5678 = vset.pattern.permute.xlu1 %v5837_v7  ;;  %v6158_v4 = vsub.f32 %v6148_v61, %v8077_v62 }
 0x145   : > { %8127 = vst [vmem:[#allocation10_spill] sm:$0xff] %v6158_v4 }
 0x147   : > { %v6112_v36 = vpop.permute.xlu1 %481 }
 0x14c   : > { %v6116_v39 = vpop.permute.xlu1 %852 }
 0x14d   : > { %vm854_vm5 = vcmp.eq.s32.totalorder %v6153_v1, %v6116_v39 }
 0x151   : > { %v6120_v42 = vpop.permute.xlu1 %880 }
 0x155   : > { %v6122_v45 = vpop.permute.xlu1 %884 }
 0x15a   : > { %v6126_v47 = vpop.permute.xlu1 %1074 }
 0x15f   : > { %v6130_v7 = vpop.permute.xlu1 %1100 }
 0x160   : > { %8124 = vst [vmem:[#allocation7_spill] sm:$0xff] %v6130_v7 }
 0x164   : > { %v6134_v50 = vpop.permute.xlu1 %1464 }
 0x165   : > { %vm1466_vm9 = vcmp.eq.s32.totalorder %v6153_v1, %v6134_v50 }
 0x169   : > { %v6139_v54 = vpop.permute.xlu1 %1492 }
 0x16d   : > { %v6145_v58 = vpop.permute.xlu1 %1496 }
 0x16e   : > { %8126 = vst [vmem:[#allocation9_spill] sm:$0xff] %v6145_v58 }
 0x172   : > { %v6151_v63 = vpop.permute.xlu1 %1686 }
 0x176   : > { %v246_v14 = vpop.permute.xlu1 %245 }
 0x177   : > { %vm247_vm1 = vcmp.eq.s32.totalorder %v6153_v1, %v246_v14 }
 0x178   : > { %v253_v53 = vsel %vm247_vm1, %v6076_v8, 0.0  ;;  %v6182_v8 = vsub.s32 5, %v6160_v9 }
 0x179   : > { %v254_v59 = vadd.f32 %v253_v53, %v242_v16  ;;  %v6188_v16 = vsub.s32 4, %v6160_v9 }
 0x17a   : > { %v462_v4 = vpop.permute.xlu1 %461  ;;  %8131 = vst [vmem:[#allocation14_spill] sm:$0xff] %v6182_v8 }
 0x17b   : > { %v259_v62 = vmul.f32 %v5990_v23, %v254_v59  ;;  %vm463_vm2 = vcmp.eq.s32.totalorder %v6153_v1, %v462_v4  ;;  %8132 = vst [vmem:[#allocation15_spill] sm:$0xff] %v6188_v16  ;;  %v458_v59 = vsel %vm451_vm3, %v456_v34, 0.0  ;;  %v6191_v4 = vsub.s32 7, %v6160_v9 }
 0x17c   : > { %v469_v53 = vsel %vm463_vm2, %v467_v35, 0.0 }
 0x17d   : > { %v289_v60 = vrot.slane %v259_v62, %v6169_v38  ;;  %v282_v19 = vrot.slane %v259_v62, %v6166_v22  ;;  %v303_v23 = vrot.slane %v259_v62, %v6175_v29  ;;  %v296_v14 = vrot.slane %v259_v62, %v6178_v26  ;;  %8133 = vst [vmem:[#allocation16_spill] sm:$0xff] %v6191_v4 }
 0x17e   : > { %v310_v7 = vrot.slane %v259_v62, %v6188_v16  ;;  %v324_v34 = vrot.slane %v259_v62, %v6196_v31 }
 0x17f   : > { %291 = vbcast.lane.b32.xlu0 %v289_v60, 256  ;;  %284 = vbcast.lane.b32.xlu1 %v282_v19, 256  ;;  %v470_v19 = vadd.f32 %v469_v53, %v458_v59  ;;  %v317_v60 = vrot.slane %v259_v62, %v6182_v8  ;;  %v6198_v58 = vpop.permute.xlu1 %486 }
 0x180   : > { %vm488_vm3 = vcmp.eq.s32.totalorder %v6153_v1, %v6198_v58 }
 0x181   : > { %v475_v35 = vmul.f32 %v5992_v24, %v470_v19  ;;  %v861_v19 = vsel %vm854_vm5, %v6114_v37, 0.0  ;;  %vm1494_vm5 = vcmp.eq.s32.totalorder %v6153_v1, %v6139_v54 }
 0x183   : > { %305 = vbcast.lane.b32.xlu0 %v303_v23, 256  ;;  %298 = vbcast.lane.b32.xlu1 %v296_v14, 256  ;;  %v331_v23 = vrot.slane %v259_v62, %v6191_v4  ;;  %v505_v53 = vrot.slane %v475_v35, %v6169_v38  ;;  %v498_v59 = vrot.slane %v475_v35, %v6166_v22 }
 0x184   : > { %v865_v14 = vpop.permute.xlu1 %864  ;;  %v519_v24 = vrot.slane %v475_v35, %v6175_v29  ;;  %v547_v39 = vrot.slane %v475_v35, %v6191_v4 }
 0x185   : > { %vm866_vm4 = vcmp.eq.s32.totalorder %v6153_v1, %v865_v14 }
 0x186   : > { %v872_v62 = vsel %vm866_vm4, %v6084_v13, 0.0  ;;  %vm882_vm4 = vcmp.eq.s32.totalorder %v6153_v1, %v6120_v42 }
 0x187   : > { %319 = vbcast.lane.b32.xlu0 %v317_v60, 256  ;;  %312 = vbcast.lane.b32.xlu1 %v310_v7, 256  ;;  %v512_v7 = vrot.slane %v475_v35, %v6178_v26  ;;  %v873_v60 = vadd.f32 %v872_v62, %v861_v19 }
 0x188   : > { %v1081_v13 = vpop.permute.xlu1 %1080 }
 0x189   : > { %v878_v14 = vmul.f32 %v6004_v32, %v873_v60  ;;  %vm1082_vm6 = vcmp.eq.s32.totalorder %v6153_v1, %v1081_v13 }
 0x18b   : > { %333 = vbcast.lane.b32.xlu0 %v331_v23, 256  ;;  %326 = vbcast.lane.b32.xlu1 %v324_v34, 256  ;;  %v533_v23 = vrot.slane %v475_v35, %v6182_v8  ;;  %v526_v34 = vrot.slane %v475_v35, %v6188_v16  ;;  %v901_v37 = vrot.slane %v878_v14, %v6166_v22 }
 0x18c   : > { %v922_v32 = vrot.slane %v878_v14, %v6175_v29  ;;  %v936_v60 = vrot.slane %v878_v14, %v6182_v8 }
 0x18d   : > { %v6226_v19 = vpop.permute.xlu1 %1105 }
 0x18f   : > { %507 = vbcast.lane.b32.xlu0 %v505_v53, 256  ;;  %500 = vbcast.lane.b32.xlu1 %v498_v59, 256  ;;  %v540_v53 = vrot.slane %v475_v35, %v6196_v31  ;;  %v908_v59 = vrot.slane %v878_v14, %v6169_v38  ;;  %v1088_v35 = vsel %vm1082_vm6, %v6124_v46, 0.0 }
 0x192   : > { %v1477_v46 = vpop.permute.xlu1 %1476 }
 0x193   : > { %521 = vbcast.lane.b32.xlu0 %v519_v24, 256  ;;  %514 = vbcast.lane.b32.xlu1 %v512_v7, 256  ;;  %v915_v24 = vrot.slane %v878_v14, %v6178_v26  ;;  %v1077_v7 = vsel %vm1070_vm7, %v6126_v47, 0.0  ;;  %vm1478_vm8 = vcmp.eq.s32.totalorder %v6153_v1, %v1477_v46  ;;  %v1689_v46 = vsel %vm1682_vm11, %v6151_v63, 0.0 }
 0x194   : > { %v1089_v62 = vadd.f32 %v1088_v35, %v1077_v7  ;;  %vm1107_vm7 = vcmp.eq.s32.totalorder %v6153_v1, %v6226_v19 }
 0x196   : > { %v1094_v41 = vmul.f32 %v6006_v33, %v1089_v62  ;;  %v1693_v13 = vpop.permute.xlu1 %1692 }
 0x197   : > { %535 = vbcast.lane.b32.xlu0 %v533_v23, 256  ;;  %528 = vbcast.lane.b32.xlu1 %v526_v34, 256  ;;  %v929_v23 = vrot.slane %v878_v14, %v6188_v16  ;;  %v950_v34 = vrot.slane %v878_v14, %v6191_v4  ;;  %vm1694_vm10 = vcmp.eq.s32.totalorder %v6153_v1, %v1693_v13 }
 0x198   : > { %v1124_v47 = vrot.slane %v1094_v41, %v6169_v38  ;;  %v1138_v33 = vrot.slane %v1094_v41, %v6175_v29  ;;  %v1145_v35 = vrot.slane %v1094_v41, %v6188_v16  ;;  %v1166_v62 = vrot.slane %v1094_v41, %v6191_v4 }
 0x19b   : > { %549 = vbcast.lane.b32.xlu0 %v547_v39, 256  ;;  %542 = vbcast.lane.b32.xlu1 %v540_v53, 256  ;;  %v943_v39 = vrot.slane %v878_v14, %v6196_v31  ;;  %v1117_v53 = vrot.slane %v1094_v41, %v6166_v22  ;;  %v1484_v14 = vsel %vm1478_vm8, %v6093_v18, 0.0  ;;  %v6244_v7 = vpop.permute.xlu1 %1712 }
 0x19f   : > { %910 = vbcast.lane.b32.xlu0 %v908_v59, 256  ;;  %903 = vbcast.lane.b32.xlu1 %v901_v37, 256  ;;  %v1131_v59 = vrot.slane %v1094_v41, %v6178_v26  ;;  %v1473_v37 = vsel %vm1466_vm9, %v6128_v48, 0.0  ;;  %v6249_v18 = vpop.permute.xlu1 %1717 }
 0x1a3   : > { %924 = vbcast.lane.b32.xlu0 %v922_v32, 256  ;;  %917 = vbcast.lane.b32.xlu1 %v915_v24, 256  ;;  %v1485_v32 = vadd.f32 %v1484_v14, %v1473_v37  ;;  %v1152_v24 = vrot.slane %v1094_v41, %v6182_v8 }
 0x1a5   : > { %v1490_v50 = vmul.f32 %v6016_v43, %v1485_v32 }
 0x1a7   : > { %938 = vbcast.lane.b32.xlu0 %v936_v60, 256  ;;  %931 = vbcast.lane.b32.xlu1 %v929_v23, 256  ;;  %v1159_v60 = vrot.slane %v1094_v41, %v6196_v31  ;;  %v1520_v48 = vrot.slane %v1490_v50, %v6169_v38  ;;  %v1513_v23 = vrot.slane %v1490_v50, %v6166_v22  ;;  %v1700_v41 = vsel %vm1694_vm10, %v6136_v52, 0.0 }
 0x1a8   : > { %v1534_v43 = vrot.slane %v1490_v50, %v6175_v29  ;;  %v1541_v13 = vrot.slane %v1490_v50, %v6188_v16  ;;  %v1555_v14 = vrot.slane %v1490_v50, %v6196_v31  ;;  %vm1719_vm10 = vcmp.eq.s32.totalorder %v6153_v1, %v6249_v18 }
 0x1ab   : > { %952 = vbcast.lane.b32.xlu0 %v950_v34, 256  ;;  %945 = vbcast.lane.b32.xlu1 %v943_v39, 256  ;;  %v1527_v34 = vrot.slane %v1490_v50, %v6178_v26  ;;  %v2077_v39 = vpop.permute.xlu1 %2076 }
 0x1ac   : > { %vm2078_vm13 = vcmp.eq.s32.totalorder %v6153_v1, %v2077_v39 }
 0x1af   : > { %1126 = vbcast.lane.b32.xlu0 %v1124_v47, 256  ;;  %1119 = vbcast.lane.b32.xlu1 %v1117_v53, 256  ;;  %v1701_v47 = vadd.f32 %v1700_v41, %v1689_v46  ;;  %v1548_v53 = vrot.slane %v1490_v50, %v6182_v8 }
 0x1b1   : > { %v1706_v49 = vmul.f32 %v6071_v5, %v1701_v47 }
 0x1b3   : > { %1140 = vbcast.lane.b32.xlu0 %v1138_v33, 256  ;;  %1133 = vbcast.lane.b32.xlu1 %v1131_v59, 256  ;;  %v2089_v33 = vpop.permute.xlu1 %2088  ;;  %v1562_v59 = vrot.slane %v1490_v50, %v6191_v4  ;;  %v1736_v52 = vrot.slane %v1706_v49, %v6169_v38  ;;  %v1729_v63 = vrot.slane %v1706_v49, %v6166_v22 }
 0x1b4   : > { %vm2090_vm12 = vcmp.eq.s32.totalorder %v6153_v1, %v2089_v33  ;;  %v1750_v5 = vrot.slane %v1706_v49, %v6175_v29  ;;  %v1743_v32 = vrot.slane %v1706_v49, %v6178_v26 }
 0x1b7   : > { %1154 = vbcast.lane.b32.xlu0 %v1152_v24, 256  ;;  %1147 = vbcast.lane.b32.xlu1 %v1145_v35, 256  ;;  %v2094_v37 = vpop.permute.xlu1 %2093  ;;  %v2085_v35 = vsel %vm2078_vm13, %v6141_v56, 0.0 }
 0x1b8   : > { %v2096_v24 = vsel %vm2090_vm12, %v2094_v37, 0.0 }
 0x1b9   : > { %v2097_v50 = vadd.f32 %v2096_v24, %v2085_v35 }
 0x1bb   : > { %1168 = vbcast.lane.b32.xlu0 %v1166_v62, 256  ;;  %1161 = vbcast.lane.b32.xlu1 %v1159_v60, 256  ;;  %v1764_v62 = vrot.slane %v1706_v49, %v6182_v8  ;;  %v1757_v60 = vrot.slane %v1706_v49, %v6188_v16 }
 0x1bf   : > { %1522 = vbcast.lane.b32.xlu0 %v1520_v48, 256  ;;  %1515 = vbcast.lane.b32.xlu1 %v1513_v23, 256  ;;  %v6275_v48 = vmul.f32 %v6099_v20, %v2097_v50  ;;  %v1778_v23 = vrot.slane %v1706_v49, %v6191_v4 }
 0x1c1   : > { %v2132_v56 = vrot.slane %v6275_v48, %v6169_v38  ;;  %v2125_v41 = vrot.slane %v6275_v48, %v6166_v22  ;;  %v2146_v20 = vrot.slane %v6275_v48, %v6175_v29  ;;  %v2139_v39 = vrot.slane %v6275_v48, %v6178_v26 }
 0x1c2   : > { %v2160_v47 = vrot.slane %v6275_v48, %v6182_v8 }
 0x1c3   : > { %1536 = vbcast.lane.b32.xlu0 %v1534_v43, 256  ;;  %1529 = vbcast.lane.b32.xlu1 %v1527_v34, 256  ;;  %v1771_v43 = vrot.slane %v1706_v49, %v6196_v31  ;;  %v6279_v34 = vpop.permute.xlu1 %2104  ;;  %v2167_v49 = vrot.slane %v6275_v48, %v6196_v31 }
 0x1c4   : > { %8135 = vst [vmem:[#allocation18_spill] sm:$0xff] %v6279_v34 }
 0x1c7   : > { %1550 = vbcast.lane.b32.xlu0 %v1548_v53, 256  ;;  %1543 = vbcast.lane.b32.xlu1 %v1541_v13, 256  ;;  %v6289_v46 = vpop.permute.xlu1 %2108  ;;  %v2153_v53 = vrot.slane %v6275_v48, %v6188_v16 }
 0x1c8   : > { %8136 = vst [vmem:[#allocation19_spill] sm:$0xff] %v6289_v46 }
 0x1cb   : > { %1564 = vbcast.lane.b32.xlu0 %v1562_v59, 256  ;;  %1557 = vbcast.lane.b32.xlu1 %v1555_v14, 256  ;;  %v6295_v13 = vpop.permute.xlu1 %2117 }
 0x1cc   : > { %8137 = vst [vmem:[#allocation20_spill] sm:$0xff] %v6295_v13 }
 0x1cf   : > { %1738 = vbcast.lane.b32.xlu0 %v1736_v52, 256  ;;  %1731 = vbcast.lane.b32.xlu1 %v1729_v63, 256  ;;  %v6299_v33 = vpop.permute.xlu1 %2895 }
 0x1d3   : > { %1752 = vbcast.lane.b32.xlu0 %v1750_v5, 256  ;;  %1745 = vbcast.lane.b32.xlu1 %v1743_v32, 256 }
 0x1d7   : > { %1766 = vbcast.lane.b32.xlu0 %v1764_v62, 256  ;;  %1759 = vbcast.lane.b32.xlu1 %v1757_v60, 256 }
 0x1db   : > { %1780 = vbcast.lane.b32.xlu0 %v1778_v23, 256  ;;  %1773 = vbcast.lane.b32.xlu1 %v1771_v43, 256 }
 0x1df   : > { %2134 = vbcast.lane.b32.xlu0 %v2132_v56, 256  ;;  %2127 = vbcast.lane.b32.xlu1 %v2125_v41, 256 }
 0x1e3   : > { %2148 = vbcast.lane.b32.xlu0 %v2146_v20, 256  ;;  %2141 = vbcast.lane.b32.xlu1 %v2139_v39, 256 }
 0x1e7   : > { %2162 = vbcast.lane.b32.xlu0 %v2160_v47, 256  ;;  %2155 = vbcast.lane.b32.xlu1 %v2153_v53, 256 }
 0x1eb   : > { %2169 = vbcast.lane.b32.xlu1 %v2167_v49, 256 }
 0x1ef   : > { %2284 = vrot.lane.b32.xlu1 %v5954_v2, %s5842_s23 }
 0x1f1   : > { %v6302_v59 = vpop.permute.xlu1 %284  ;;  %v6347_v46 = vpop.permute.xlu0 %291 }
 0x1f3   : > { %4170 = vrot.lane.b32.xlu1 %v5954_v2, %s5843_s24 }
 0x1f5   : > { %v6306_v14 = vpop.permute.xlu1 %298  ;;  %v6353_v31 = vpop.permute.xlu0 %305 }
 0x1f7   : > { %4811 = vrot.lane.b32.xlu1 %v5954_v2, %s5844_s25 }
 0x1f9   : > { %v6309_v52 = vpop.permute.xlu1 %312  ;;  %v6357_v8 = vpop.permute.xlu0 %319 }
 0x1fd   : > { %v6311_v63 = vpop.permute.xlu1 %326 }
 0x201   : > { %v6313_v37 = vpop.permute.xlu1 %500 }
 0x205   : > { %v6315_v5 = vpop.permute.xlu1 %514 }
 0x209   : > { %v6317_v32 = vpop.permute.xlu1 %528 }
 0x20d   : > { %v6319_v24 = vpop.permute.xlu1 %542 }
 0x211   : > { %v6321_v35 = vpop.permute.xlu1 %903 }
 0x215   : > { %v6323_v50 = vpop.permute.xlu1 %917 }
 0x219   : > { %v6325_v62 = vpop.permute.xlu1 %931 }
 0x21d   : > { %v6327_v60 = vpop.permute.xlu1 %945 }
 0x21e   : > { %8138 = vst [vmem:[#allocation21_spill] sm:$0xff] %v6327_v60 }
 0x221   : > { %v6329_v23 = vpop.permute.xlu1 %1119 }
 0x222   : > { %8139 = vst [vmem:[#allocation22_spill] sm:$0xff] %v6329_v23 }
 0x225   : > { %v6331_v43 = vpop.permute.xlu1 %1133 }
 0x226   : > { %8140 = vst [vmem:[#allocation23_spill] sm:$0xff] %v6331_v43 }
 0x229   : > { %v6333_v56 = vpop.permute.xlu1 %1147 }
 0x22a   : > { %8141 = vst [vmem:[#allocation24_spill] sm:$0xff] %v6333_v56 }
 0x22d   : > { %v6335_v41 = vpop.permute.xlu1 %1161 }
 0x22e   : > { %8142 = vst [vmem:[#allocation25_spill] sm:$0xff] %v6335_v41 }
 0x231   : > { %v6337_v20 = vpop.permute.xlu1 %1515 }
 0x232   : > { %8143 = vst [vmem:[#allocation26_spill] sm:$0xff] %v6337_v20 }
 0x235   : > { %v6339_v39 = vpop.permute.xlu1 %1529 }
 0x236   : > { %8144 = vst [vmem:[#allocation27_spill] sm:$0xff] %v6339_v39 }
 0x239   : > { %v6341_v47 = vpop.permute.xlu1 %1543 }
 0x23a   : > { %8145 = vst [vmem:[#allocation28_spill] sm:$0xff] %v6341_v47  ;;  %v6363_v47 = vpop.permute.xlu0 %333 }
 0x23d   : > { %v6343_v53 = vpop.permute.xlu1 %1557 }
 0x23e   : > { %8146 = vst [vmem:[#allocation29_spill] sm:$0xff] %v6343_v53 }
 0x241   : > { %v6345_v49 = vpop.permute.xlu1 %1731 }
 0x242   : > { %8147 = vst [vmem:[#allocation30_spill] sm:$0xff] %v6345_v49  ;;  %v6367_v49 = vpop.permute.xlu0 %507 }
 0x245   : > { %v6349_v13 = vpop.permute.xlu1 %1745 }
 0x246   : > { %8148 = vst [vmem:[#allocation31_spill] sm:$0xff] %v6349_v13 }
 0x249   : > { %v6351_v34 = vpop.permute.xlu1 %1759 }
 0x24a   : > { %8149 = vst [vmem:[#allocation32_spill] sm:$0xff] %v6351_v34 }
 0x24d   : > { %v6355_v16 = vpop.permute.xlu1 %1773 }
 0x24e   : > { %8150 = vst [vmem:[#allocation33_spill] sm:$0xff] %v6355_v16  ;;  %v6375_v16 = vpop.permute.xlu0 %521 }
 0x251   : > { %v6359_v29 = vpop.permute.xlu1 %2127 }
 0x252   : > { %8151 = vst [vmem:[#allocation34_spill] sm:$0xff] %v6359_v29 }
 0x255   : > { %v6361_v39 = vpop.permute.xlu1 %2141 }
 0x256   : > { %8152 = vst [vmem:[#allocation35_spill] sm:$0xff] %v6361_v39  ;;  %v6377_v39 = vpop.permute.xlu0 %535 }
 0x259   : > { %v6365_v53 = vpop.permute.xlu1 %2155 }
 0x25a   : > { %8153 = vst [vmem:[#allocation36_spill] sm:$0xff] %v6365_v53  ;;  %v6379_v23 = vpop.permute.xlu0 %549 }
 0x25d   : > { %v6369_v20 = vpop.permute.xlu1 %2169 }
 0x25e   : > { %8154 = vst [vmem:[#allocation37_spill] sm:$0xff] %v6369_v20  ;;  %v5845_v20 = vmov 49  }
 0x261   : > { %v6371_v13 = vpop.permute.xlu1 %2284 }
 0x262   : > { %8155 = vst [vmem:[#allocation38_spill] sm:$0xff] %v6371_v13  ;;  %v2287_v34 = vadd.f32 %v5973_v10, %v6371_v13  ;;  %v6382_v10 = vpop.permute.xlu0 %910  ;;  %v8156_v13 = vmov 0  }
 0x264   : > { %v2288_v41 = vfloor.f32 %v2287_v34 }
 0x266   : > { %v5527_v60 = vtrunc.f32 %v2288_v41  ;;  %v2289_v29 = vsub.f32 %v2287_v34, %v2288_v41  ;;  %v6387_v34 = vpop.permute.xlu0 %924  ;;  %v8088_v41 = vmov 3  }
 0x268   : > { %v5528_v43 = vcvt.f32.s32 %v5527_v60  ;;  %v2295_v53 = vsub.f32 1.0, %v2289_v29 }
 0x26a   : > { %2292 = vperm.xlu0 %5676, %v5528_v43   ;;  %v2302_v56 = vadd.s32 1, %v5528_v43  ;;  %v6391_v60 = vpop.permute.xlu0 %938 }
 0x26c   : > { %2304 = vperm.xlu1 %5678, %v2302_v56  }
 0x26e   : > { %2298 = vperm.xlu0 %5676, %v2295_v53  }
 0x270   : > { %5680 = vset.pattern.permute.xlu1 %v5845_v20  ;;  %v6396_v20 = vpop.permute.xlu0 %952 }
 0x271   : > { %2315 = vperm.xlu1 %5680, %v5954_v2   ;;  %v2174_v2 = vrot.slane %v6275_v48, %v6191_v4  ;;  %8157 = vst [vmem:[#allocation39_spill] sm:$0xff] %v6396_v20 }
 0x272   : > { %2309 = vperm.xlu0 %5676, %v2289_v29  }
 0x275   : > { %5681 = vset.pattern.permute.xlu1 %v8156_v13 }
 0x276   : > { %2324 = vperm.xlu1 %5681, %v2295_v53   ;;  %5679 = vset.pattern.permute.xlu0 %v8156_v13 }
 0x277   : > { %270 = vperm.xlu0 %5679, %v6059_v0   ;;  %v6400_v0 = vpop.permute.xlu0 %1126 }
 0x27a   : > { %2329 = vperm.xlu1 %5681, %v2302_v56  }
 0x27b   : > { %477 = vperm.xlu0 %5679, %v5986_v21   ;;  %v6403_v21 = vpop.permute.xlu0 %1140 }
 0x27e   : > { %5682 = vset.pattern.permute.xlu1 %v8088_v41 }
 0x27f   : > { %490 = vperm.xlu0 %5679, %v5995_v25   ;;  %v6407_v25 = vpop.permute.xlu0 %1154 }
 0x283   : > { %2176 = vbcast.lane.b32.xlu0 %v2174_v2, 256  ;;  %v6410_v48 = vpop.permute.xlu0 %1168  ;;  %v5847_v2 = vmov 39  }
 0x284   : > { %8158 = vst [vmem:[#allocation40_spill] sm:$0xff] %v6410_v48 }
 0x287   : > { %889 = vperm.xlu0 %5679, %v6066_v3  }
 0x28b   : > { %1096 = vperm.xlu0 %5679, %v6011_v40   ;;  %v6413_v40 = vpop.permute.xlu0 %1522 }
 0x28c   : > { %8159 = vst [vmem:[#allocation41_spill] sm:$0xff] %v6413_v40 }
 0x28f   : > { %1109 = vperm.xlu0 %5679, %v6019_v44   ;;  %v6415_v3 = vpop.permute.xlu0 %1536 }
 0x290   : > { %8160 = vst [vmem:[#allocation42_spill] sm:$0xff] %v6415_v3 }
 0x293   : > { %1501 = vperm.xlu0 %5679, %v6074_v6   ;;  %v6417_v44 = vpop.permute.xlu0 %1550 }
 0x294   : > { %8161 = vst [vmem:[#allocation43_spill] sm:$0xff] %v6417_v44 }
 0x297   : > { %1708 = vperm.xlu0 %5679, %v6027_v51   ;;  %v6419_v13 = vpop.permute.xlu0 %1564 }
 0x298   : > { %8162 = vst [vmem:[#allocation44_spill] sm:$0xff] %v6419_v13  ;;  %v5848_v13 = vmov 1966171168  }
 0x29b   : > { %1721 = vperm.xlu0 %5679, %v6037_v55   ;;  %v6421_v6 = vpop.permute.xlu0 %1738 }
 0x29c   : > { %8163 = vst [vmem:[#allocation45_spill] sm:$0xff] %v6421_v6 }
 0x29f   : > { %2113 = vperm.xlu0 %5679, %v6091_v17   ;;  %v6423_v51 = vpop.permute.xlu0 %1752 }
 0x2a0   : > { %8164 = vst [vmem:[#allocation46_spill] sm:$0xff] %v6423_v51  ;;  %v338_v51 = vunpack.c.l.s4 %v5848_v13 }
 0x2a3   : > { %2320 = vperm.xlu0 %5679, %v5528_v43   ;;  %v6425_v56 = vpop.permute.xlu0 %1766  ;;  %v6433_v43 = vpop.permute.xlu1 %4170 }
 0x2a4   : > { %8165 = vst [vmem:[#allocation47_spill] sm:$0xff] %v6425_v56  ;;  %8169 = vst [vmem:[#allocation51_spill] sm:$0xff] %v6433_v43 }
 0x2a7   : > { %2333 = vperm.xlu0 %5679, %v2289_v29   ;;  %v6427_v55 = vpop.permute.xlu0 %1780  ;;  %v6437_v4 = vpop.permute.xlu1 %4811 }
 0x2a8   : > { %8166 = vst [vmem:[#allocation48_spill] sm:$0xff] %v6427_v55  ;;  %8171 = vst [vmem:[#allocation53_spill] sm:$0xff] %v6437_v4  ;;  %v2682_v55 = vadd.f32 %v6143_v57, %v5975_v12 }
 0x2ab   : > { %v6429_v53 = vpop.permute.xlu0 %2134  ;;  %5684 = vset.pattern.permute.xlu0 %v5847_v2  ;;  %v2683_v2 = vfloor.f32 %v2682_v55 }
 0x2ac   : > { %8167 = vst [vmem:[#allocation49_spill] sm:$0xff] %v6429_v53  ;;  %v339_v53 = vunpack.c.0.s8 %v338_v51  ;;  %v2898_v51 = vadd.f32 %v6143_v57, %v6299_v33 }
 0x2ad   : > { %v5529_v4 = vtrunc.f32 %v2683_v2  ;;  %v6466_v33 = vsub.f32 %v2682_v55, %v2683_v2 }
 0x2ae   : > { %v6446_v13 = vsub.s32 %v339_v53, %v6160_v9  ;;  %v2899_v20 = vfloor.f32 %v2898_v51 }
 0x2af   : > { %v6431_v17 = vpop.permute.xlu0 %2148  ;;  %v6461_v28 = vcvt.f32.s32 %v5529_v4  ;;  %8174 = vst [vmem:[#allocation56_spill] sm:$0xff] %v6466_v33 }
 0x2b0   : > { %8168 = vst [vmem:[#allocation50_spill] sm:$0xff] %v6431_v17 }
 0x2b1   : > { %8173 = vst [vmem:[#allocation55_spill] sm:$0xff] %v6461_v28 }
 0x2b3   : > { %v6435_v29 = vpop.permute.xlu0 %2162 }
 0x2b4   : > { %8170 = vst [vmem:[#allocation52_spill] sm:$0xff] %v6435_v29 }
 0x2e5   : > { %v2293_v41 = vpop.permute.xlu0 %2292 }
 0x2e6   : > { %vm2294_vm14 = vcmp.eq.s32.totalorder %v6153_v1, %v2293_v41 }
 0x2e7   : > { %v2305_v3 = vpop.permute.xlu1 %2304 }
 0x2e8   : > { %vm2306_vm15 = vcmp.eq.s32.totalorder %v6153_v1, %v2305_v3  ;;  %v3316_v3 = vadd.f32 %v6143_v57, %v5998_v27 }
 0x2e9   : > { %v2299_v6 = vpop.permute.xlu0 %2298 }
 0x2ea   : > { %v2301_v43 = vsel %vm2294_vm14, %v2299_v6, 0.0  ;;  %v3317_v27 = vfloor.f32 %v3316_v3 }
 0x2ec   : > { %v2316_v44 = vpop.permute.xlu1 %2315 }
 0x2ed   : > { %v2310_v17 = vpop.permute.xlu0 %2309 }
 0x2ee   : > { %v2312_v29 = vsel %vm2306_vm15, %v2310_v17, 0.0 }
 0x2ef   : > { %v2313_v56 = vadd.f32 %v2312_v29, %v2301_v43  ;;  %v5849_v29 = vmov 1983009808  }
 0x2f1   : > { %v6443_v40 = vmul.f32 %v2316_v44, %v2313_v56  ;;  %v268_v44 = vsel %vm263_vm0, %v6106_v30, 0.0  ;;  %v660_v30 = vunpack.c.l.s4 %v5849_v29 }
 0x2f2   : > { %v271_v48 = vpop.permute.xlu0 %270 }
 0x2f3   : > { %8172 = vst [vmem:[#allocation54_spill] sm:$0xff] %v6443_v40  ;;  %vm272_vm1 = vcmp.eq.s32.totalorder %v6153_v1, %v271_v48  ;;  %v2348_v12 = vrot.slane %v6443_v40, %v6169_v38  ;;  %v2341_v41 = vrot.slane %v6443_v40, %v6166_v22  ;;  %v2355_v43 = vrot.slane %v6443_v40, %v6178_v26 }
 0x2f4   : > { %v277_v6 = vsel %vm272_vm1, %v6081_v11, 0.0  ;;  %v5850_v38 = vmov 1934713408  }
 0x2f5   : > { %v278_v56 = vadd.f32 %v277_v6, %v268_v44  ;;  %2350 = vbcast.lane.b32.xlu0 %v2348_v12, 256  ;;  %2343 = vbcast.lane.b32.xlu1 %v2341_v41, 256  ;;  %v724_v11 = vunpack.c.l.s4 %v5850_v38  ;;  %v6470_v12 = vadd.s32 1, %v6461_v28  ;;  %v5531_v41 = vtrunc.f32 %v2899_v20 }
 0x2f6   : > { %v478_v48 = vpop.permute.xlu0 %477  ;;  %v5533_v38 = vtrunc.f32 %v3317_v27 }
 0x2f7   : > { %v336_v53 = vcombine.high %v278_v56, %v278_v56  ;;  %v343_v17 = vrot.slane %v278_v56, %v6446_v13  ;;  %vm479_vm2 = vcmp.eq.s32.totalorder %v6153_v1, %v478_v48  ;;  %8175 = vst [vmem:[#allocation57_spill] sm:$0xff] %v6470_v12  ;;  %v6475_v56 = vsub.f32 %v3316_v3, %v3317_v27 }
 0x2f8   : > { %v725_v55 = vunpack.c.0.s8 %v724_v11  ;;  %v484_v2 = vsel %vm479_vm2, %v6112_v36, 0.0  ;;  %v6482_v58 = vcvt.f32.s32 %v5531_v41  ;;  %v6486_v27 = vsub.f32 %v2898_v51, %v2899_v20 }
 0x2f9   : > { %2357 = vbcast.lane.b32.xlu1 %v2355_v43, 256  ;;  %v350_v44 = vrot.slane %v336_v53, %v6446_v13  ;;  %v351_v6 = vcombine.high %v343_v17, %v343_v17  ;;  %v661_v43 = vunpack.c.0.s8 %v660_v30  ;;  %v359_v48 = vrot.slane %v343_v17, %v6446_v13 }
 0x2fa   : > { %v491_v4 = vpop.permute.xlu0 %490  ;;  %8177 = vst [vmem:[#allocation59_spill] sm:$0xff] %v6482_v58  ;;  %v6488_v11 = vcvt.f32.s32 %v5533_v38  ;;  %v887_v20 = vsel %vm882_vm4, %v6122_v45, 0.0 }
 0x2fb   : > { %v493_v29 = vsel %vm488_vm3, %v491_v4, 0.0  ;;  %v352_v57 = vcombine.high %v350_v44, %v350_v44  ;;  %v373_v53 = vrot.slane %v351_v6, %v6446_v13  ;;  %v6494_v17 = vsub.s32 %v661_v43, %v6160_v9 }
 0x2fc   : > { %v494_v40 = vadd.f32 %v493_v29, %v484_v2  ;;  %v6497_v4 = vsub.s32 %v725_v55, %v6160_v9  ;;  %v366_v41 = vrot.slane %v350_v44, %v6446_v13  ;;  %v381_v51 = vcombine.high %v359_v48, %v359_v48 }
 0x2fd   : > { %2699 = vperm.xlu1 %5682, %v6470_v12   ;;  %v380_v42 = vrot.slane %v352_v57, %v6446_v13  ;;  %v383_v43 = vcombine.high %v373_v53, %v373_v53  ;;  %v8179_v9 = vfloor.f32 %v6148_v61  ;;  %v392_v36 = vrot.slane %v373_v53, %v6166_v22  ;;  %v8181_v53 = vld [vmem:[#allocation9_spill] sm:$0xff] }
 0x2fe   : > { %v6480_v26 = vpop.permute.xlu0 %2176  ;;  %v552_v30 = vcombine.high %v494_v40, %v494_v40  ;;  %8178 = vst [vmem:[#allocation60_spill] sm:$0xff] %v6497_v4  ;;  %v559_v6 = vrot.slane %v494_v40, %v6446_v13  ;;  %v382_v40 = vcombine.high %v366_v41, %v366_v41  ;;  %v396_v57 = vrot.slane %v381_v51, %v6166_v22 }
 0x2ff   : > { %8176 = vst [vmem:[#allocation58_spill] sm:$0xff] %v6480_v26  ;;  %v5535_v44 = vtrunc.f32 %v8179_v9  ;;  %v8180_v26 = vsub.f32 1.0, %v6466_v33  ;;  %v400_v2 = vrot.slane %v383_v43, %v6166_v22  ;;  %v8182_v33 = vsub.f32 1.0, %v6486_v27 }
 0x300   : > { %v566_v38 = vrot.slane %v552_v30, %v6446_v13  ;;  %v567_v55 = vcombine.high %v559_v6, %v559_v6  ;;  %v575_v45 = vrot.slane %v559_v6, %v6446_v13  ;;  %v388_v30 = vrot.slane %v359_v48, %v6166_v22 }
 0x301   : > { %2903 = vperm.xlu1 %5682, %v6482_v58   ;;  %v384_v6 = vcombine.high %v380_v42, %v380_v42  ;;  %v404_v58 = vrot.slane %v366_v41, %v6166_v22  ;;  %v408_v48 = vrot.slane %v380_v42, %v6166_v22  ;;  %v6530_v51 = vcvt.f32.s32 %v5535_v44 }
 0x302   : > { %v890_v29 = vpop.permute.xlu0 %889  ;;  %v568_v3 = vcombine.high %v566_v38, %v566_v38  ;;  %v597_v61 = vcombine.high %v575_v45, %v575_v45  ;;  %v425_v43 = vmul.f32 %v388_v30, %v6302_v59  ;;  %v426_v54 = vmul.f32 %v392_v36, %v6347_v46 }
 0x303   : > { %vm891_vm6 = vcmp.eq.s32.totalorder %v6153_v1, %v890_v29  ;;  %v582_v29 = vrot.slane %v566_v38, %v6446_v13  ;;  %v412_v38 = vrot.slane %v382_v40, %v6166_v22  ;;  %v428_v40 = vmul.f32 %v400_v2, %v6353_v31 }
 0x304   : > { %v896_v9 = vsel %vm891_vm6, %v6088_v15, 0.0  ;;  %v589_v15 = vrot.slane %v567_v55, %v6446_v13  ;;  %v596_v41 = vrot.slane %v568_v3, %v6446_v13  ;;  %v612_v44 = vrot.slane %v597_v61, %v6166_v22 }
 0x305   : > { %2693 = vperm.xlu1 %5682, %v8180_v26   ;;  %v6526_v26 = vsel %vm1494_vm5, %v8181_v53, 0.0  ;;  %v897_v42 = vadd.f32 %v896_v9, %v887_v20  ;;  %v427_v53 = vmul.f32 %v396_v57, %v6306_v14  ;;  %v598_v28 = vcombine.high %v582_v29, %v582_v29 }
 0x306   : > { %v1097_v12 = vpop.permute.xlu0 %1096  ;;  %v416_v55 = vrot.slane %v384_v6, %v6166_v22  ;;  %v429_v59 = vmul.f32 %v404_v58, %v6309_v52  ;;  %v430_v3 = vmul.f32 %v408_v48, %v6357_v8  ;;  %v599_v20 = vcombine.high %v589_v15, %v589_v15 }
 0x307   : > { %v604_v30 = vrot.slane %v575_v45, %v6166_v22  ;;  %vm1098_vm8 = vcmp.eq.s32.totalorder %v6153_v1, %v1097_v12  ;;  %v600_v46 = vcombine.high %v596_v41, %v596_v41  ;;  %v608_v14 = vrot.slane %v589_v15, %v6166_v22  ;;  %v8183_v12 = vld [vmem:[#allocation7_spill] sm:$0xff] }
 0x308   : > { %v955_v36 = vcombine.high %v897_v42, %v897_v42  ;;  %v962_v57 = vrot.slane %v897_v42, %v6446_v13  ;;  %v431_v31 = vmul.f32 %v412_v38, %v6311_v63  ;;  %v624_v52 = vrot.slane %v596_v41, %v6166_v22 }
 0x309   : > { %2909 = vperm.xlu1 %5682, %v8182_v33   ;;  %v620_v33 = vrot.slane %v582_v29, %v6166_v22  ;;  %v628_v8 = vrot.slane %v598_v28, %v6166_v22  ;;  %v643_v58 = vmul.f32 %v612_v44, %v6315_v5  ;;  %v1103_v29 = vsel %vm1098_vm8, %v8183_v12, 0.0 }
 0x30a   : > { %v1110_v4 = vpop.permute.xlu0 %1109  ;;  %v969_v45 = vrot.slane %v955_v36, %v6446_v13  ;;  %v970_v2 = vcombine.high %v962_v57, %v962_v57  ;;  %v616_v9 = vrot.slane %v599_v20, %v6166_v22  ;;  %v641_v6 = vmul.f32 %v604_v30, %v6313_v37 }
 0x30b   : > { %v1112_v61 = vsel %vm1107_vm7, %v1110_v4, 0.0  ;;  %v645_v63 = vmul.f32 %v620_v33, %v6317_v32  ;;  %v432_v28 = vmul.f32 %v416_v55, %v6363_v47  ;;  %v632_v5 = vrot.slane %v600_v46, %v6166_v22 }
 0x30c   : > { %v1113_v48 = vadd.f32 %v1112_v61, %v1103_v29  ;;  %v642_v38 = vmul.f32 %v608_v14, %v6367_v49  ;;  %v978_v41 = vrot.slane %v962_v57, %v6446_v13  ;;  %v646_v19 = vmul.f32 %v624_v52, %v6377_v39  ;;  %v8185_v14 = vld [vmem:[#allocation6_spill] sm:$0xff] }
 0x30d   : > { %3321 = vperm.xlu1 %5682, %v6488_v11   ;;  %v647_v4 = vmul.f32 %v628_v8, %v6319_v24  ;;  %v6571_v32 = vadd.f32 %v643_v58, %v427_v53  ;;  %v971_v44 = vcombine.high %v969_v45, %v969_v45  ;;  %v992_v47 = vrot.slane %v970_v2, %v6446_v13 }
 0x30e   : > { %v1502_v15 = vpop.permute.xlu0 %1501  ;;  %v1171_v42 = vcombine.high %v1113_v48, %v1113_v48  ;;  %v1178_v37 = vrot.slane %v1113_v48, %v6446_v13  ;;  %v644_v49 = vmul.f32 %v616_v9, %v6375_v16  ;;  %v6576_v55 = vadd.f32 %v641_v6, %v425_v43 }
 0x30f   : > { %vm1503_vm9 = vcmp.eq.s32.totalorder %v6153_v1, %v1502_v15  ;;  %v6578_v20 = vadd.f32 %v645_v63, %v429_v59  ;;  %v648_v24 = vmul.f32 %v632_v5, %v6379_v23  ;;  %v6582_v30 = vadd.f32 %v642_v38, %v426_v54 }
 0x310   : > { %v1185_v39 = vrot.slane %v1171_v42, %v6446_v13  ;;  %v985_v53 = vrot.slane %v969_v45, %v6446_v13  ;;  %v1000_v33 = vcombine.high %v978_v41, %v978_v41  ;;  %v8184_v46 = vsub.f32 1.0, %v6475_v56 }
 0x311   : > { %3537 = vperm.xlu1 %5682, %v6530_v51   ;;  %v6589_v16 = vadd.f32 %v646_v19, %v430_v3  ;;  %v6591_v43 = vadd.f32 %v647_v4, %v431_v31  ;;  %v1186_v59 = vcombine.high %v1178_v37, %v1178_v37  ;;  %v1508_v36 = vsel %vm1503_vm9, %v8185_v14, 0.0 }
 0x312   : > { %v1709_v57 = vpop.permute.xlu0 %1708  ;;  %v657_v23 = vcombine.low %v6576_v55, %v6571_v32  ;;  %v999_v54 = vrot.slane %v971_v44, %v6446_v13  ;;  %v1002_v52 = vcombine.high %v992_v47, %v992_v47  ;;  %v1007_v8 = vrot.slane %v978_v41, %v6166_v22 }
 0x313   : > { %v6598_v58 = vadd.f32 %v644_v49, %v428_v40  ;;  %v1187_v45 = vcombine.high %v1185_v39, %v1185_v39  ;;  %v1194_v3 = vrot.slane %v1178_v37, %v6446_v13  ;;  %v1208_v31 = vrot.slane %v1186_v59, %v6446_v13 }
 0x314   : > { %v1001_v2 = vcombine.high %v985_v53, %v985_v53  ;;  %v1011_v12 = vrot.slane %v992_v47, %v6166_v22  ;;  %v1015_v29 = vrot.slane %v1000_v33, %v6166_v22  ;;  %v1509_v61 = vadd.f32 %v1508_v36, %v6526_v26 }
 0x315   : > { %3327 = vperm.xlu1 %5682, %v8184_v46   ;;  %v658_v9 = vcombine.high %v6576_v55, %v6571_v32  ;;  %v1023_v6 = vrot.slane %v985_v53, %v6166_v22  ;;  %v1201_v40 = vrot.slane %v1185_v39, %v6446_v13  ;;  %v6609_v63 = vadd.f32 %v648_v24, %v432_v28 }
 0x316   : > { %v1003_v48 = vcombine.high %v999_v54, %v999_v54  ;;  %v1019_v15 = vrot.slane %v1002_v52, %v6166_v22  ;;  %v1044_v5 = vmul.f32 %v1007_v8, %v6321_v35  ;;  %v6614_v38 = vrot.slane %v657_v23, %v6494_v17  ;;  %v1722_v42 = vpop.permute.xlu0 %1721  ;;  %v8186_v52 = vld [vmem:[#allocation22_spill] sm:$0xff] }
 0x317   : > { %v1027_v41 = vrot.slane %v999_v54, %v6166_v22  ;;  %v1215_v26 = vrot.slane %v1187_v45, %v6446_v13  ;;  %v1216_v19 = vcombine.high %v1194_v3, %v1194_v3  ;;  %v1218_v4 = vcombine.high %v1208_v31, %v1208_v31 }
 0x318   : > { %v1031_v37 = vrot.slane %v1001_v2, %v6166_v22  ;;  %v1045_v28 = vmul.f32 %v1011_v12, %v6382_v10  ;;  %v1046_v44 = vmul.f32 %v1015_v29, %v6323_v50  ;;  %v1567_v47 = vcombine.high %v1509_v61, %v1509_v61 }
 0x319   : > { %v1048_v49 = vmul.f32 %v1023_v6, %v6325_v62  ;;  %v1217_v35 = vcombine.high %v1201_v40, %v1201_v40  ;;  %v1223_v39 = vrot.slane %v1194_v3, %v6166_v22  ;;  %vm1710_vm11 = vcmp.eq.s32.totalorder %v6153_v1, %v1709_v57  ;;  %v8187_v3 = vld [vmem:[#allocation24_spill] sm:$0xff] }
 0x31a   : > { %v1035_v24 = vrot.slane %v1003_v48, %v6166_v22  ;;  %v1227_v53 = vrot.slane %v1208_v31, %v6166_v22  ;;  %v1239_v33 = vrot.slane %v1201_v40, %v6166_v22  ;;  %v1724_v10 = vsel %vm1719_vm10, %v1722_v42, 0.0  ;;  %v8189_v48 = vld [vmem:[#allocation21_spill] sm:$0xff] }
 0x31b   : > { %v1047_v50 = vmul.f32 %v1019_v15, %v6387_v34  ;;  %v1219_v46 = vcombine.high %v1215_v26, %v1215_v26  ;;  %v1231_v62 = vrot.slane %v1216_v19, %v6166_v22  ;;  %v1235_v59 = vrot.slane %v1218_v4, %v6166_v22 }
 0x31c   : > { %v1243_v14 = vrot.slane %v1215_v26, %v6166_v22  ;;  %v1574_v36 = vrot.slane %v1509_v61, %v6446_v13  ;;  %v1581_v57 = vrot.slane %v1567_v47, %v6446_v13  ;;  %v1715_v23 = vsel %vm1710_vm11, %v6244_v7, 0.0  ;;  %v8188_v61 = vld [vmem:[#allocation23_spill] sm:$0xff] }
 0x31d   : > { %v1049_v54 = vmul.f32 %v1027_v41, %v6391_v60  ;;  %v1247_v18 = vrot.slane %v1217_v35, %v6166_v22  ;;  %v1260_v8 = vmul.f32 %v1223_v39, %v8186_v52  ;;  %v1725_v34 = vadd.f32 %v1724_v10, %v1715_v23  ;;  %v8191_v35 = vld [vmem:[#allocation39_spill] sm:$0xff] }
 0x31e   : > { %v1261_v45 = vmul.f32 %v1227_v53, %v6400_v0  ;;  %v1264_v31 = vmul.f32 %v1239_v33, %v8187_v3  ;;  %v1582_v2 = vcombine.high %v1574_v36, %v1574_v36  ;;  %v1583_v12 = vcombine.high %v1581_v57, %v1581_v57  ;;  %v8190_v0 = vld [vmem:[#allocation25_spill] sm:$0xff] }
 0x31f   : > { %v1251_v29 = vrot.slane %v1219_v46, %v6166_v22  ;;  %v1262_v6 = vmul.f32 %v1231_v62, %v8188_v61  ;;  %v1590_v40 = vrot.slane %v1574_v36, %v6446_v13  ;;  %v1783_v7 = vcombine.high %v1725_v34, %v1725_v34 }
 0x320   : > { %v1050_v60 = vmul.f32 %v1031_v37, %v8189_v48  ;;  %v1263_v15 = vmul.f32 %v1235_v59, %v6403_v21  ;;  %v1265_v41 = vmul.f32 %v1243_v14, %v6407_v25  ;;  %v1790_v26 = vrot.slane %v1725_v34, %v6446_v13  ;;  %v8192_v25 = vld [vmem:[#allocation40_spill] sm:$0xff] }
 0x321   : > { %v1266_v19 = vmul.f32 %v1247_v18, %v8190_v0  ;;  %v1597_v4 = vrot.slane %v1581_v57, %v6446_v13  ;;  %v1604_v42 = vrot.slane %v1582_v2, %v6446_v13  ;;  %v1797_v47 = vrot.slane %v1783_v7, %v6446_v13  ;;  %v8193_v7 = vld [vmem:[#allocation26_spill] sm:$0xff] }
 0x322   : > { %v6654_v39 = vmul.f32 %v1035_v24, %v8191_v35  ;;  %v6656_v53 = vadd.f32 %v1260_v8, %v1044_v5  ;;  %v6658_v37 = vadd.f32 %v1261_v45, %v1045_v28  ;;  %v1611_v21 = vrot.slane %v1583_v12, %v6446_v13 }
 0x323   : > { %v6662_v33 = vmul.f32 %v1251_v29, %v8192_v25  ;;  %v6664_v10 = vadd.f32 %v1262_v6, %v1046_v44  ;;  %v6666_v46 = vadd.f32 %v1264_v31, %v1048_v49  ;;  %v1612_v62 = vcombine.high %v1590_v40, %v1590_v40 }
 0x324   : > { %v6668_v59 = vadd.f32 %v1263_v15, %v1047_v50  ;;  %v6670_v14 = vadd.f32 %v1265_v41, %v1049_v54  ;;  %v1798_v24 = vcombine.high %v1790_v26, %v1790_v26  ;;  %v673_v5 = vcombine.low %v6582_v30, %v6598_v58 }
 0x325   : > { %v6674_v28 = vadd.f32 %v1266_v19, %v1050_v60  ;;  %v1613_v36 = vcombine.high %v1597_v4, %v1597_v4  ;;  %v1614_v57 = vcombine.high %v1604_v42, %v1604_v42  ;;  %v1799_v23 = vcombine.high %v1797_v47, %v1797_v47  ;;  %v8194_v60 = vld [vmem:[#allocation28_spill] sm:$0xff]  ;;  %v8196_v19 = vld [vmem:[#allocation27_spill] sm:$0xff] }
 0x326   : > { %v1615_v18 = vcombine.high %v1611_v21, %v1611_v21  ;;  %v1619_v44 = vrot.slane %v1590_v40, %v6166_v22  ;;  %v1635_v49 = vrot.slane %v1597_v4, %v6166_v22  ;;  %v1806_v52 = vrot.slane %v1790_v26, %v6446_v13  ;;  %v8195_v26 = vld [vmem:[#allocation41_spill] sm:$0xff] }
 0x327   : > { %v1276_v50 = vcombine.low %v6656_v53, %v6664_v10  ;;  %v1623_v54 = vrot.slane %v1604_v42, %v6166_v22  ;;  %v1627_v8 = vrot.slane %v1612_v62, %v6166_v22  ;;  %v1639_v34 = vrot.slane %v1611_v21, %v6166_v22  ;;  %v8197_v42 = vld [vmem:[#allocation43_spill] sm:$0xff] }
 0x328   : > { %v1277_v45 = vcombine.high %v6656_v53, %v6664_v10  ;;  %v1813_v3 = vrot.slane %v1797_v47, %v6446_v13  ;;  %v1820_v31 = vrot.slane %v1798_v24, %v6446_v13  ;;  %v681_v2 = vrot.slane %v673_v5, %v6494_v17  ;;  %v8198_v5 = vld [vmem:[#allocation42_spill] sm:$0xff] }
 0x329   : > { %v1631_v12 = vrot.slane %v1614_v57, %v6166_v22  ;;  %v1643_v29 = vrot.slane %v1613_v36, %v6166_v22  ;;  %v1827_v61 = vrot.slane %v1799_v23, %v6446_v13  ;;  %v689_v6 = vcombine.low %v6578_v20, %v6591_v43  ;;  %v8199_v57 = vld [vmem:[#allocation29_spill] sm:$0xff] }
 0x32a   : > { %v1647_v40 = vrot.slane %v1615_v18, %v6166_v22  ;;  %v1656_v48 = vmul.f32 %v1619_v44, %v8193_v7  ;;  %v1660_v15 = vmul.f32 %v1635_v49, %v8194_v60  ;;  %v1828_v41 = vcombine.high %v1806_v52, %v1806_v52  ;;  %v8200_v49 = vld [vmem:[#allocation44_spill] sm:$0xff] }
 0x32b   : > { %v1657_v0 = vmul.f32 %v1623_v54, %v8195_v26  ;;  %v1658_v4 = vmul.f32 %v1627_v8, %v8196_v19  ;;  %v1661_v47 = vmul.f32 %v1639_v34, %v8197_v42  ;;  %v1835_v35 = vrot.slane %v1806_v52, %v6166_v22  ;;  %v8203_v42 = vld [vmem:[#allocation32_spill] sm:$0xff] }
 0x32c   : > { %v1829_v21 = vcombine.high %v1813_v3, %v1813_v3  ;;  %v1830_v25 = vcombine.high %v1820_v31, %v1820_v31  ;;  %v1839_v62 = vrot.slane %v1820_v31, %v6166_v22  ;;  %v1851_v24 = vrot.slane %v1813_v3, %v6166_v22  ;;  %v8201_v31 = vld [vmem:[#allocation30_spill] sm:$0xff] }
 0x32d   : > { %v1659_v36 = vmul.f32 %v1631_v12, %v8198_v5  ;;  %v1662_v23 = vmul.f32 %v1643_v29, %v8199_v57  ;;  %v1831_v18 = vcombine.high %v1827_v61, %v1827_v61  ;;  %v705_v44 = vcombine.low %v6589_v16, %v6609_v63  ;;  %v8204_v57 = vld [vmem:[#allocation31_spill] sm:$0xff] }
 0x32e   : > { %v6708_v54 = vmul.f32 %v1647_v40, %v8200_v49  ;;  %v1843_v8 = vrot.slane %v1828_v41, %v6166_v22  ;;  %v1855_v52 = vrot.slane %v1827_v61, %v6166_v22  ;;  %v697_v34 = vrot.slane %v689_v6, %v6494_v17  ;;  %v8202_v40 = vld [vmem:[#allocation45_spill] sm:$0xff]  ;;  %v8205_v49 = vld [vmem:[#allocation47_spill] sm:$0xff] }
 0x32f   : > { %v1872_v7 = vmul.f32 %v1835_v35, %v8201_v31  ;;  %v713_v3 = vrot.slane %v705_v44, %v6494_v17  ;;  %v722_v12 = vcombine.high %v6614_v38, %v681_v2  ;;  %v721_v29 = vcombine.low %v6614_v38, %v681_v2 }
 0x330   : > { %v1847_v60 = vrot.slane %v1830_v25, %v6166_v22  ;;  %v1859_v26 = vrot.slane %v1829_v21, %v6166_v22  ;;  %v1873_v19 = vmul.f32 %v1839_v62, %v8202_v40  ;;  %v1876_v41 = vmul.f32 %v1851_v24, %v8203_v42  ;;  %v8206_v21 = vld [vmem:[#allocation60_spill] sm:$0xff] }
 0x331   : > { %v1863_v61 = vrot.slane %v1831_v18, %v6166_v22  ;;  %v754_v5 = vcombine.high %v697_v34, %v713_v3  ;;  %v753_v6 = vcombine.low %v697_v34, %v713_v3  ;;  %v674_v35 = vcombine.high %v6582_v30, %v6598_v58  ;;  %v8209_v58 = vld [vmem:[#allocation46_spill] sm:$0xff]  ;;  %v8210_v3 = vld [vmem:[#allocation33_spill] sm:$0xff] }
 0x332   : > { %v1874_v44 = vmul.f32 %v1843_v8, %v8204_v57  ;;  %v1877_v31 = vmul.f32 %v1855_v52, %v8205_v49  ;;  %v690_v38 = vcombine.high %v6578_v20, %v6591_v43  ;;  %v706_v2 = vcombine.high %v6589_v16, %v6609_v63 }
 0x333   : > { %v736_v25 = vrot.slane %v722_v12, %v8206_v21  ;;  %v768_v62 = vrot.slane %v754_v5, %v8206_v21  ;;  %v6733_v24 = vrot.slane %v721_v29, %v8206_v21  ;;  %v6736_v18 = vrot.slane %v753_v6, %v8206_v21 }
 0x334   : > { %v672_v30 = vrot.slane %v658_v9, %v6494_v17  ;;  %v688_v20 = vrot.slane %v674_v35, %v6494_v17  ;;  %v704_v43 = vrot.slane %v690_v38, %v6494_v17  ;;  %v720_v16 = vrot.slane %v706_v2, %v6494_v17 }
 0x335   : > { %8207 = vst [vmem:[#allocation9_spill] sm:$0xff] %v6733_v24  ;;  %8208 = vst [vmem:[#allocation7_spill] sm:$0xff] %v6736_v18  ;;  %v1875_v63 = vmul.f32 %v1847_v60, %v8209_v58  ;;  %v6746_v8 = vadd.f32 %v1872_v7, %v1656_v48  ;;  %v787_v52 = vcombine.low %v736_v25, %v768_v62  ;;  %v8211_v60 = vld [vmem:[#allocation48_spill] sm:$0xff] }
 0x336   : > { %v786_v34 = vcombine.high %v6733_v24, %v6736_v18  ;;  %v1878_v12 = vmul.f32 %v1859_v26, %v8210_v3  ;;  %v6751_v29 = vadd.f32 %v1873_v19, %v1657_v0  ;;  %v737_v32 = vcombine.low %v672_v30, %v688_v20 }
 0x337   : > { %v769_v55 = vcombine.low %v704_v43, %v720_v16  ;;  %v6753_v9 = vadd.f32 %v1876_v41, %v1660_v15  ;;  %798 = vrot.lane.b32.xlu0 %v787_v52, %s5851_s26  ;;  %v738_v48 = vcombine.high %v672_v30, %v688_v20  ;;  %v770_v7 = vcombine.high %v704_v43, %v720_v16 }
 0x338   : > { %794 = vrot.lane.b32.xlu1 %v786_v34, %s5852_s27  ;;  %v1879_v40 = vmul.f32 %v1863_v61, %v8211_v60  ;;  %v745_v42 = vrot.slane %v737_v32, %v8206_v21  ;;  %v1275_v0 = vadd.f32 %v6662_v33, %v6654_v39  ;;  %v6762_v19 = vadd.f32 %v1874_v44, %v1658_v4 }
 0x339   : > { %v777_v26 = vrot.slane %v769_v55, %v8206_v21  ;;  %v788_v15 = vcombine.high %v736_v25, %v768_v62  ;;  %v784_v41 = vrot.slane %v770_v7, %v8206_v21  ;;  %v1292_v5 = vcombine.low %v6658_v37, %v6668_v59 }
 0x33a   : > { %v6767_v6 = vadd.f32 %v1875_v63, %v1659_v36  ;;  %v6769_v35 = vadd.f32 %v1877_v31, %v1661_v47  ;;  %v752_v57 = vrot.slane %v738_v48, %v8206_v21  ;;  %v6772_v49 = vadd.f32 %v1878_v12, %v1662_v23 }
 0x33b   : > { %v789_v61 = vcombine.low %v745_v42, %v777_v26  ;;  %v1284_v39 = vrot.slane %v1276_v50, %v6494_v17  ;;  %v1300_v33 = vrot.slane %v1292_v5, %v6494_v17  ;;  %v1308_v4 = vcombine.low %v6666_v46, %v6674_v28 }
 0x33c   : > { %802 = vrot.lane.b32.xlu1 %v788_v15, %s5853_s29  ;;  %v791_v47 = vcombine.low %v752_v57, %v784_v41  ;;  %v790_v36 = vcombine.high %v745_v42, %v777_v26  ;;  %v1324_v23 = vcombine.low %v6670_v14, %v1275_v0  ;;  %v1293_v44 = vcombine.high %v6658_v37, %v6668_v59 }
 0x33d   : > { %806 = vrot.lane.b32.xlu0 %v789_v61, %s5854_s30  ;;  %v1316_v31 = vrot.slane %v1308_v4, %v6494_v17  ;;  %v1341_v38 = vcombine.high %v1284_v39, %v1300_v33  ;;  %v1340_v2 = vcombine.low %v1284_v39, %v1300_v33  ;;  %v1309_v50 = vcombine.high %v6666_v46, %v6674_v28 }
 0x33e   : > { %v1332_v25 = vrot.slane %v1324_v23, %v6494_v17  ;;  %v1307_v62 = vrot.slane %v1293_v44, %v6494_v17  ;;  %v1325_v30 = vcombine.high %v6670_v14, %v1275_v0  ;;  %v1887_v20 = vadd.f32 %v1879_v40, %v6708_v54 }
 0x33f   : > { %v1888_v43 = vcombine.low %v6746_v8, %v6762_v19  ;;  %v792_v37 = vcombine.high %v752_v57, %v784_v41  ;;  %v1355_v59 = vrot.slane %v1341_v38, %v8206_v21  ;;  %v1291_v46 = vrot.slane %v1277_v45, %v6494_v17 }
 0x340   : > { %810 = vrot.lane.b32.xlu1 %v790_v36, %s5855_s4  ;;  %v1373_v14 = vcombine.high %v1316_v31, %v1332_v25  ;;  %v1372_v28 = vcombine.low %v1316_v31, %v1332_v25  ;;  %v1323_v54 = vrot.slane %v1309_v50, %v6494_v17  ;;  %v1339_v16 = vrot.slane %v1325_v30, %v6494_v17 }
 0x341   : > { %814 = vrot.lane.b32.xlu0 %v791_v47, %s5856_s5  ;;  %v6805_v58 = vrot.slane %v1340_v2, %v8206_v21  ;;  %v1904_v63 = vcombine.low %v6751_v29, %v6767_v6  ;;  %v1920_v52 = vcombine.low %v6753_v9, %v6772_v49  ;;  %v1936_v53 = vcombine.low %v6769_v35, %v1887_v20 }
 0x342   : > { %v1387_v10 = vrot.slane %v1373_v14, %v8206_v21  ;;  %v6814_v45 = vrot.slane %v1372_v28, %v8206_v21  ;;  %v1356_v34 = vcombine.low %v1291_v46, %v1307_v62  ;;  %v1388_v3 = vcombine.low %v1323_v54, %v1339_v16 }
 0x343   : > { %8212 = vst [vmem:[#allocation6_spill] sm:$0xff] %v6805_v58  ;;  %v1389_v12 = vcombine.high %v1323_v54, %v1339_v16  ;;  %v1912_v7 = vrot.slane %v1904_v63, %v6494_v17  ;;  %v1357_v60 = vcombine.high %v1291_v46, %v1307_v62  ;;  %v1928_v40 = vrot.slane %v1920_v52, %v6494_v17 }
 0x344   : > { %8213 = vst [vmem:[#allocation22_spill] sm:$0xff] %v6814_v45  ;;  %818 = vrot.lane.b32.xlu1 %v792_v37, %s5857_s6  ;;  %v1406_v32 = vcombine.low %v1355_v59, %v1387_v10  ;;  %v1405_v55 = vcombine.high %v6805_v58, %v6814_v45  ;;  %v1396_v48 = vrot.slane %v1388_v3, %v8206_v21  ;;  %v6871_v3 = vld [vmem:[%s5946_s28] sm:$0xff]  ;;  %s5868_s28 = smov 4  }
 0x345   : > { %v1944_v42 = vrot.slane %v1936_v53, %v6494_v17  ;;  %v1364_v26 = vrot.slane %v1356_v34, %v8206_v21  ;;  %v1896_v0 = vrot.slane %v1888_v43, %v6494_v17  ;;  %v1905_v15 = vcombine.high %v6751_v29, %v6767_v6 }
 0x346   : > { %1417 = vrot.lane.b32.xlu0 %v1406_v32, %s5851_s26  ;;  %v1921_v41 = vcombine.high %v6753_v9, %v6772_v49  ;;  %v1889_v5 = vcombine.high %v6746_v8, %v6762_v19  ;;  %v1403_v39 = vrot.slane %v1389_v12, %v8206_v21  ;;  %v1937_v4 = vcombine.high %v6769_v35, %v1887_v20 }
 0x347   : > { %v1985_v61 = vcombine.high %v1928_v40, %v1944_v42  ;;  %v1408_v57 = vcombine.low %v1364_v26, %v1396_v48  ;;  %v1953_v33 = vcombine.high %v1896_v0, %v1912_v7  ;;  %v1407_v47 = vcombine.high %v1355_v59, %v1387_v10 }
 0x348   : > { %1413 = vrot.lane.b32.xlu1 %v1405_v55, %s5852_s27  ;;  %v1371_v36 = vrot.slane %v1357_v60, %v8206_v21  ;;  %v1919_v9 = vrot.slane %v1905_v15, %v6494_v17  ;;  %v1935_v8 = vrot.slane %v1921_v41, %v6494_v17  ;;  %v1951_v19 = vrot.slane %v1937_v4, %v6494_v17  ;;  %v8217_v55 = vld [vmem:[#allocation55_spill] sm:$0xff]  ;;  %v8219_v60 = vld [vmem:[#allocation10_spill] sm:$0xff]  ;;  %v6887_v15 = vpop.permute.xlu1 %2324  ;;  %v8223_v41 = vld [vmem:[#allocation56_spill] sm:$0xff] }
 0x349   : > { %v1999_v29 = vrot.slane %v1985_v61, %v8206_v21  ;;  %v1903_v6 = vrot.slane %v1889_v5, %v6494_v17  ;;  %v1967_v35 = vrot.slane %v1953_v33, %v8206_v21  ;;  %v1984_v44 = vcombine.low %v1928_v40, %v1944_v42  ;;  %v8220_v42 = vld [vmem:[#allocation5_spill] sm:$0xff]  ;;  %8222 = vst [vmem:[#allocation21_spill] sm:$0xff] %v6887_v15 }
 0x34a   : > { %1425 = vrot.lane.b32.xlu0 %v1408_v57, %s5854_s30  ;;  %v1410_v49 = vcombine.low %v1371_v36, %v1403_v39  ;;  %v2000_v23 = vcombine.low %v1935_v8, %v1951_v19  ;;  %v1409_v31 = vcombine.high %v1364_v26, %v1396_v48  ;;  %v1952_v50 = vcombine.low %v1896_v0, %v1912_v7  ;;  %v8218_v48 = vld [vmem:[#allocation59_spill] sm:$0xff]  ;;  %v8221_v26 = vld [vmem:[#allocation8_spill] sm:$0xff] }
 0x34b   : > { %v2018_v38 = vcombine.low %v1967_v35, %v1999_v29  ;;  %v1968_v2 = vcombine.low %v1903_v6, %v1919_v9  ;;  %v6848_v62 = vrot.slane %v1984_v44, %v8206_v21  ;;  %v2001_v30 = vcombine.high %v1935_v8, %v1951_v19 }
 0x34c   : > { %1421 = vrot.lane.b32.xlu1 %v1407_v47, %s5853_s29  ;;  %v2008_v25 = vrot.slane %v2000_v23, %v8206_v21  ;;  %v1411_v20 = vcombine.high %v1371_v36, %v1403_v39  ;;  %v6853_v37 = vrot.slane %v1952_v50, %v8206_v21  ;;  %v1969_v59 = vcombine.high %v1903_v6, %v1919_v9  ;;  %v6892_v33 = vpop.permute.xlu1 %2329  ;;  %v8225_v47 = vld [vmem:[#allocation51_spill] sm:$0xff] }
 0x34d   : > { %8214 = vst [vmem:[#allocation24_spill] sm:$0xff] %v6848_v62  ;;  %v1976_v43 = vrot.slane %v1968_v2, %v8206_v21  ;;  %v2015_v28 = vrot.slane %v2001_v30, %v8206_v21  ;;  %v2019_v10 = vcombine.high %v1967_v35, %v1999_v29  ;;  %v8216_v32 = vmov 3   ;;  %8224 = vst [vmem:[#allocation25_spill] sm:$0xff] %v6892_v33 }
 0x34e   : > { %1433 = vrot.lane.b32.xlu0 %v1410_v49, %s5856_s5  ;;  %8215 = vst [vmem:[#allocation23_spill] sm:$0xff] %v6853_v37  ;;  %v2017_v63 = vcombine.high %v6853_v37, %v6848_v62  ;;  %v1983_v52 = vrot.slane %v1969_v59, %v8206_v21  ;;  %v6879_v7 = vadd.s32 1, %v8218_v48  ;;  %v3540_v40 = vsub.f32 1.0, %v8219_v60  ;;  %v8257_v37 = vld [vmem:[#allocation11_spill] sm:$0xff] }
 0x34f   : > { %v2020_v14 = vcombine.low %v1976_v43, %v2008_v25  ;;  %v2021_v34 = vcombine.high %v1976_v43, %v2008_v25  ;;  %v3957_v0 = vadd.f32 %v8221_v26, %v8220_v42  ;;  %v5858_v5 = vmov 38   ;;  %v8229_v43 = vld [vmem:[#allocation53_spill] sm:$0xff] }
 0x350   : > { %1429 = vrot.lane.b32.xlu1 %v1409_v31, %s5855_s4  ;;  %v2022_v53 = vcombine.low %v1983_v52, %v2015_v28  ;;  %v2023_v12 = vcombine.high %v1983_v52, %v2015_v28  ;;  %v5859_v57 = vmov 42   ;;  %v6896_v4 = vadd.s32 1, %v6488_v11  ;;  %v8228_v31 = vld [vmem:[#allocation38_spill] sm:$0xff] }
 0x351   : > { %v3958_v61 = vfloor.f32 %v3957_v0  ;;  %v4173_v36 = vadd.f32 %v8221_v26, %v8225_v47  ;;  %v5860_v9 = vmov 43   ;;  %v6904_v8 = vadd.s32 1, %v6530_v51 }
 0x352   : > { %2029 = vrot.lane.b32.xlu0 %v2018_v38, %s5851_s26  ;;  %v4598_v38 = vadd.f32 %v8221_v26, %v8228_v31  ;;  %v4814_v59 = vadd.f32 %v8221_v26, %v8229_v43  ;;  %v5862_v31 = vmov 50  }
 0x353   : > { %v5537_v39 = vtrunc.f32 %v3958_v61  ;;  %v4174_v6 = vfloor.f32 %v4173_v36  ;;  %v6918_v44 = vsub.f32 %v3957_v0, %v3958_v61 }
 0x354   : > { %1437 = vrot.lane.b32.xlu1 %v1411_v20, %s5857_s6  ;;  %v4599_v25 = vfloor.f32 %v4598_v38 }
 0x355   : > { %v6901_v29 = vcvt.f32.s32 %v5537_v39  ;;  %v5539_v49 = vtrunc.f32 %v4174_v6  ;;  %v6928_v30 = vsub.f32 %v4173_v36, %v4174_v6  ;;  %v8111_v20 = vsub.f32 1.0, %v6918_v44 }
 0x356   : > { %2037 = vrot.lane.b32.xlu0 %v2020_v14, %s5854_s30  ;;  %v5541_v14 = vtrunc.f32 %v4599_v25  ;;  %v5861_v6 = vmov 46  }
 0x357   : > { %v6911_v35 = vadd.s32 1, %v6901_v29  ;;  %v6922_v2 = vcvt.f32.s32 %v5539_v49 }
 0x358   : > { %2025 = vrot.lane.b32.xlu1 %v2017_v63, %s5852_s27  ;;  %v8110_v63 = vsub.f32 1.0, %v6928_v30 }
 0x359   : > { %v6937_v28 = vadd.s32 1, %v6922_v2 }
 0x35a   : > { %2045 = vrot.lane.b32.xlu0 %v2022_v53, %s5856_s5  ;;  %v4815_v53 = vfloor.f32 %v4814_v59 }
 0x35c   : > { %2033 = vrot.lane.b32.xlu1 %v2019_v10, %s5853_s29  ;;  %v5543_v10 = vtrunc.f32 %v4815_v53  ;;  %v6957_v26 = vsub.f32 %v4814_v59, %v4815_v53  ;;  %v5865_v53 = vmov 2  }
 0x35e   : > { %2926 = vperm.xlu0 %5684, %v6871_v3   ;;  %v6953_v42 = vcvt.f32.s32 %v5543_v10  ;;  %v8108_v47 = vsub.f32 1.0, %v6957_v26 }
 0x360   : > { %2041 = vrot.lane.b32.xlu1 %v2021_v34, %s5855_s4  ;;  %v6945_v34 = vcvt.f32.s32 %v5541_v14  ;;  %v6971_v39 = vadd.s32 1, %v6953_v42  ;;  %v5864_v14 = vmov 51  }
 0x362   : > { %5685 = vset.pattern.permute.xlu0 %v8216_v32  ;;  %v6960_v0 = vadd.s32 1, %v6945_v34 }
 0x363   : > { %2687 = vperm.xlu0 %5685, %v8217_v55  }
 0x364   : > { %2049 = vrot.lane.b32.xlu1 %v2023_v12, %s5857_s6 }
 0x367   : > { %2915 = vperm.xlu0 %5685, %v6879_v7   ;;  %v6906_v19 = vpop.permute.xlu1 %2343 }
 0x368   : > { %3543 = vperm.xlu1 %5682, %v3540_v40   ;;  %8226 = vst [vmem:[#allocation39_spill] sm:$0xff] %v6906_v19 }
 0x36b   : > { %2704 = vperm.xlu0 %5685, %v8223_v41   ;;  %v6916_v23 = vpop.permute.xlu1 %2357 }
 0x36c   : > { %5683 = vset.pattern.permute.xlu1 %v5858_v5  ;;  %8227 = vst [vmem:[#allocation40_spill] sm:$0xff] %v6916_v23 }
 0x36d   : > { %2710 = vperm.xlu1 %5683, %v6871_v3  }
 0x36f   : > { %2920 = vperm.xlu0 %5685, %v6486_v27  }
 0x371   : > { %5686 = vset.pattern.permute.xlu1 %v5859_v57  ;;  %v6968_v57 = vpop.permute.xlu0 %2113 }
 0x372   : > { %3344 = vperm.xlu1 %5686, %v6871_v3  }
 0x373   : > { %3333 = vperm.xlu0 %5685, %v6896_v4  }
 0x376   : > { %5687 = vset.pattern.permute.xlu1 %v5860_v9  ;;  %v6979_v9 = vpop.permute.xlu0 %2320 }
 0x377   : > { %3560 = vperm.xlu1 %5687, %v6871_v3   ;;  %3549 = vperm.xlu0 %5685, %v6904_v8  }
 0x378   : > { %v6926_v50 = vpop.permute.xlu1 %2699 }
 0x379   : > { %vm2701_vm13 = vcmp.eq.s32.totalorder %v6153_v1, %v6926_v50 }
 0x37b   : > { %5688 = vset.pattern.permute.xlu1 %v8216_v32  ;;  %3338 = vperm.xlu0 %5685, %v6475_v56   ;;  %v6951_v32 = vsub.f32 %v4598_v38, %v4599_v25  ;;  %v6986_v38 = vpop.permute.xlu0 %2333  ;;  %v5863_v25 = vmov 47  }
 0x37c   : > { %3974 = vperm.xlu1 %5688, %v6911_v35   ;;  %v6940_v52 = vpop.permute.xlu1 %2903  ;;  %8230 = vst [vmem:[#allocation26_spill] sm:$0xff] %v6986_v38 }
 0x37d   : > { %v8109_v5 = vsub.f32 1.0, %v6951_v32  ;;  %vm2905_vm15 = vcmp.eq.s32.totalorder %v6153_v1, %v6940_v52 }
 0x37f   : > { %3554 = vperm.xlu0 %5685, %v8219_v60   ;;  %v6992_v59 = vpop.permute.xlu0 %2350 }
 0x380   : > { %4178 = vperm.xlu1 %5688, %v6922_v2   ;;  %v6949_v12 = vpop.permute.xlu1 %2693  ;;  %8231 = vst [vmem:[#allocation28_spill] sm:$0xff] %v6992_v59 }
 0x383   : > { %3962 = vperm.xlu0 %5685, %v6901_v29  }
 0x384   : > { %3968 = vperm.xlu1 %5688, %v8111_v20   ;;  %v6963_v61 = vpop.permute.xlu1 %2909 }
 0x387   : > { %4190 = vperm.xlu0 %5685, %v6937_v28  }
 0x388   : > { %4184 = vperm.xlu1 %5688, %v8110_v63   ;;  %v6977_v36 = vpop.permute.xlu1 %3321 }
 0x389   : > { %vm3323_vm1 = vcmp.eq.s32.totalorder %v6153_v1, %v6977_v36 }
 0x38b   : > { %3979 = vperm.xlu0 %5685, %v6918_v44  }
 0x38c   : > { %4603 = vperm.xlu1 %5688, %v6945_v34   ;;  %v6983_v49 = vpop.permute.xlu1 %3537 }
 0x38d   : > { %vm3539_vm3 = vcmp.eq.s32.totalorder %v6153_v1, %v6983_v49 }
 0x38f   : > { %4195 = vperm.xlu0 %5685, %v6928_v30  }
 0x390   : > { %4819 = vperm.xlu1 %5688, %v6953_v42   ;;  %v6989_v43 = vpop.permute.xlu1 %3327 }
 0x393   : > { %4615 = vperm.xlu0 %5685, %v6960_v0  }
 0x394   : > { %4609 = vperm.xlu1 %5688, %v8109_v5  }
 0x397   : > { %4831 = vperm.xlu0 %5685, %v6971_v39  }
 0x398   : > { %4825 = vperm.xlu1 %5688, %v8108_v47  }
 0x39b   : > { %4620 = vperm.xlu0 %5685, %v6951_v32  }
 0x39c   : > { %5689 = vset.pattern.permute.xlu1 %v5861_v6 }
 0x39d   : > { %3985 = vperm.xlu1 %5689, %v6871_v3  }
 0x39f   : > { %4836 = vperm.xlu0 %5685, %v6957_v26  }
 0x3a1   : > { %5691 = vset.pattern.permute.xlu1 %v5862_v31  ;;  %v8234_v31 = vld [vmem:[#allocation57_spill] sm:$0xff] }
 0x3a2   : > { %4626 = vperm.xlu1 %5691, %v6871_v3  }
 0x3a3   : > { %5690 = vset.pattern.permute.xlu0 %v5863_v25 }
 0x3a4   : > { %4201 = vperm.xlu0 %5690, %v6871_v3  }
 0x3a6   : > { %5692 = vset.pattern.permute.xlu1 %v5864_v14  ;;  %v8238_v14 = vsub.f32 1.0, %v8223_v41 }
 0x3a7   : > { %4842 = vperm.xlu1 %5692, %v6871_v3  }
 0x3a8   : > { %5693 = vset.pattern.permute.xlu0 %v5865_v53 }
 0x3a9   : > { %v6995_v10 = vpop.permute.xlu0 %798  ;;  %2715 = vperm.xlu0 %5693, %v8217_v55  }
 0x3aa   : > { %8232 = vst [vmem:[#allocation41_spill] sm:$0xff] %v6995_v10  ;;  %v6998_v6 = vpop.permute.xlu1 %794 }
 0x3ab   : > { %8233 = vst [vmem:[#allocation27_spill] sm:$0xff] %v6998_v6  ;;  %5694 = vset.pattern.permute.xlu1 %v5865_v53 }
 0x3ac   : > { %2724 = vperm.xlu1 %5694, %v8234_v31  }
 0x3ad   : > { %2940 = vperm.xlu0 %5693, %v6879_v7   ;;  %v8241_v7 = vsub.f32 1.0, %v6486_v27 }
 0x3ae   : > { %v7002_v25 = vpop.permute.xlu1 %802 }
 0x3af   : > { %8235 = vst [vmem:[#allocation43_spill] sm:$0xff] %v7002_v25  ;;  %v7004_v16 = vpop.permute.xlu0 %806 }
 0x3b0   : > { %8236 = vst [vmem:[#allocation42_spill] sm:$0xff] %v7004_v16  ;;  %2931 = vperm.xlu1 %5694, %v8218_v48  }
 0x3b1   : > { %2728 = vperm.xlu0 %5693, %v8223_v41  }
 0x3b2   : > { %v7008_v3 = vpop.permute.xlu1 %810 }
 0x3b3   : > { %8237 = vst [vmem:[#allocation29_spill] sm:$0xff] %v7008_v3  ;;  %v7012_v55 = vpop.permute.xlu0 %814 }
 0x3b4   : > { %2719 = vperm.xlu1 %5694, %v8238_v14   ;;  %8239 = vst [vmem:[#allocation44_spill] sm:$0xff] %v7012_v55 }
 0x3b5   : > { %2944 = vperm.xlu0 %5693, %v6486_v27  }
 0x3b6   : > { %v7015_v53 = vpop.permute.xlu1 %818 }
 0x3b7   : > { %8240 = vst [vmem:[#allocation30_spill] sm:$0xff] %v7015_v53 }
 0x3b8   : > { %2935 = vperm.xlu1 %5694, %v8241_v7   ;;  %v7019_v31 = vpop.permute.xlu0 %1417 }
 0x3b9   : > { %8242 = vst [vmem:[#allocation45_spill] sm:$0xff] %v7019_v31  ;;  %3358 = vperm.xlu0 %5693, %v6896_v4   ;;  %v8248_v4 = vsub.f32 1.0, %v6475_v56 }
 0x3ba   : > { %v7022_v48 = vpop.permute.xlu1 %1413 }
 0x3bb   : > { %8243 = vst [vmem:[#allocation32_spill] sm:$0xff] %v7022_v48 }
 0x3bc   : > { %3349 = vperm.xlu1 %5694, %v6488_v11   ;;  %v7025_v54 = vpop.permute.xlu0 %1425 }
 0x3bd   : > { %8244 = vst [vmem:[#allocation31_spill] sm:$0xff] %v7025_v54  ;;  %3574 = vperm.xlu0 %5693, %v6904_v8   ;;  %v8262_v54 = vld [vmem:[#allocation16_spill] sm:$0xff] }
 0x3be   : > { %v7028_v41 = vpop.permute.xlu1 %1421 }
 0x3bf   : > { %8245 = vst [vmem:[#allocation47_spill] sm:$0xff] %v7028_v41  ;;  %v8263_v41 = vld [vmem:[#allocation17_spill] sm:$0xff] }
 0x3c0   : > { %3565 = vperm.xlu1 %5694, %v6530_v51   ;;  %v7034_v14 = vpop.permute.xlu0 %1433 }
 0x3c1   : > { %3362 = vperm.xlu0 %5693, %v6475_v56   ;;  %8247 = vst [vmem:[#allocation46_spill] sm:$0xff] %v7034_v14  ;;  %v8259_v14 = vld [vmem:[#allocation13_spill] sm:$0xff] }
 0x3c2   : > { %v7032_v27 = vpop.permute.xlu1 %1429 }
 0x3c3   : > { %8246 = vst [vmem:[#allocation60_spill] sm:$0xff] %v7032_v27 }
 0x3c4   : > { %3353 = vperm.xlu1 %5694, %v8248_v4   ;;  %v7043_v8 = vpop.permute.xlu0 %2029 }
 0x3c5   : > { %3578 = vperm.xlu0 %5693, %v8219_v60   ;;  %8250 = vst [vmem:[#allocation48_spill] sm:$0xff] %v7043_v8 }
 0x3c6   : > { %v7039_v11 = vpop.permute.xlu1 %1437 }
 0x3c7   : > { %8249 = vst [vmem:[#allocation33_spill] sm:$0xff] %v7039_v11 }
 0x3c8   : > { %3569 = vperm.xlu1 %5694, %v3540_v40   ;;  %v7047_v51 = vpop.permute.xlu0 %2037 }
 0x3c9   : > { %8252 = vst [vmem:[#allocation59_spill] sm:$0xff] %v7047_v51 }
 0x3ca   : > { %v7045_v7 = vpop.permute.xlu1 %2025 }
 0x3cb   : > { %8251 = vst [vmem:[#allocation55_spill] sm:$0xff] %v7045_v7 }
 0x3cc   : > { %v7051_v47 = vpop.permute.xlu0 %2045 }
 0x3cd   : > { %8254 = vst [vmem:[#allocation5_spill] sm:$0xff] %v7051_v47 }
 0x3ce   : > { %v7049_v46 = vpop.permute.xlu1 %2033 }
 0x3cf   : > { %8253 = vst [vmem:[#allocation10_spill] sm:$0xff] %v7049_v46 }
 0x3d2   : > { %v7053_v5 = vpop.permute.xlu1 %2041 }
 0x3d3   : > { %8255 = vst [vmem:[#allocation8_spill] sm:$0xff] %v7053_v5 }
 0x3d6   : > { %v7055_v4 = vpop.permute.xlu1 %2049 }
 0x3d7   : > { %8256 = vst [vmem:[#allocation56_spill] sm:$0xff] %v7055_v4 }
 0x3d9   : > { %v2927_v56 = vpop.permute.xlu0 %2926 }
 0x3de   : > { %v2688_v63 = vpop.permute.xlu0 %2687 }
 0x3df   : > { %vm2689_vm12 = vcmp.eq.s32.totalorder %v6153_v1, %v2688_v63  ;;  %v8258_v63 = vld [vmem:[#allocation12_spill] sm:$0xff] }
 0x3e0   : > { %v2696_v40 = vsel %vm2689_vm12, %v6949_v12, 0.0 }
 0x3e2   : > { %v2916_v20 = vpop.permute.xlu0 %2915 }
 0x3e3   : > { %v7057_v62 = vpop.permute.xlu1 %3543  ;;  %vm2917_vm14 = vcmp.eq.s32.totalorder %v6153_v1, %v2916_v20 }
 0x3e6   : > { %v2705_v60 = vpop.permute.xlu0 %2704 }
 0x3e7   : > { %v2707_v51 = vsel %vm2701_vm13, %v2705_v60, 0.0 }
 0x3e8   : > { %v2711_v46 = vpop.permute.xlu1 %2710  ;;  %v2708_v47 = vadd.f32 %v2707_v51, %v2696_v40  ;;  %v8261_v40 = vld [vmem:[#allocation15_spill] sm:$0xff] }
 0x3ea   : > { %v2713_v8 = vmul.f32 %v2711_v46, %v2708_v47  ;;  %v2921_v5 = vpop.permute.xlu0 %2920  ;;  %v2912_v47 = vsel %vm2905_vm15, %v6963_v61, 0.0 }
 0x3eb   : > { %v2923_v12 = vsel %vm2917_vm14, %v2921_v5, 0.0 }
 0x3ec   : > { %v2743_v7 = vrot.slane %v2713_v8, %v8257_v37  ;;  %v2736_v4 = vrot.slane %v2713_v8, %v6166_v22  ;;  %v2757_v50 = vrot.slane %v2713_v8, %v8258_v63  ;;  %v2750_v55 = vrot.slane %v2713_v8, %v8259_v14 }
 0x3ed   : > { %v3345_v11 = vpop.permute.xlu1 %3344  ;;  %v2924_v51 = vadd.f32 %v2923_v12, %v2912_v47  ;;  %v2764_v20 = vrot.slane %v2713_v8, %v8261_v40  ;;  %v2785_v16 = vrot.slane %v2713_v8, %v8262_v54  ;;  %v2778_v52 = vrot.slane %v2713_v8, %v8263_v41 }
 0x3ee   : > { %v3334_v53 = vpop.permute.xlu0 %3333  ;;  %2745 = vbcast.lane.b32.xlu0 %v2743_v7, 256  ;;  %2738 = vbcast.lane.b32.xlu1 %v2736_v4, 256  ;;  %v8260_v7 = vld [vmem:[#allocation14_spill] sm:$0xff] }
 0x3ef   : > { %v2771_v4 = vrot.slane %v2713_v8, %v8260_v7  ;;  %v2929_v5 = vmul.f32 %v2927_v56, %v2924_v51  ;;  %vm3335_vm0 = vcmp.eq.s32.totalorder %v6153_v1, %v3334_v53 }
 0x3f1   : > { %v2959_v61 = vrot.slane %v2929_v5, %v8257_v37  ;;  %v2973_v56 = vrot.slane %v2929_v5, %v8258_v63  ;;  %v2966_v8 = vrot.slane %v2929_v5, %v8259_v14  ;;  %v2980_v53 = vrot.slane %v2929_v5, %v8261_v40 }
 0x3f2   : > { %v7068_v60 = vpop.permute.xlu1 %3560  ;;  %v3550_v46 = vpop.permute.xlu0 %3549  ;;  %2759 = vbcast.lane.b32.xlu0 %v2757_v50, 256  ;;  %2752 = vbcast.lane.b32.xlu1 %v2750_v55, 256  ;;  %v2952_v50 = vrot.slane %v2929_v5, %v6166_v22  ;;  %v3001_v36 = vrot.slane %v2929_v5, %v8262_v54 }
 0x3f3   : > { %vm3551_vm2 = vcmp.eq.s32.totalorder %v6153_v1, %v3550_v46 }
 0x3f6   : > { %v3339_v27 = vpop.permute.xlu0 %3338  ;;  %2773 = vbcast.lane.b32.xlu0 %v2771_v4, 256  ;;  %2766 = vbcast.lane.b32.xlu1 %v2764_v20, 256  ;;  %v3330_v20 = vsel %vm3323_vm1, %v6989_v43, 0.0 }
 0x3f7   : > { %v7075_v3 = vpop.permute.xlu1 %3974 }
 0x3f8   : > { %vm3976_vm4 = vcmp.eq.s32.totalorder %v6153_v1, %v7075_v3 }
 0x3fa   : > { %v3555_v25 = vpop.permute.xlu0 %3554  ;;  %2787 = vbcast.lane.b32.xlu0 %v2785_v16, 256  ;;  %2780 = vbcast.lane.b32.xlu1 %v2778_v52, 256  ;;  %v3341_v16 = vsel %vm3335_vm0, %v3339_v27, 0.0 }
 0x3fb   : > { %v7079_v55 = vpop.permute.xlu1 %4178  ;;  %v3342_v52 = vadd.f32 %v3341_v16, %v3330_v20 }
 0x3fc   : > { %vm4180_vm7 = vcmp.eq.s32.totalorder %v6153_v1, %v7079_v55 }
 0x3fe   : > { %v7083_v12 = vpop.permute.xlu0 %3962  ;;  %2961 = vbcast.lane.b32.xlu0 %v2959_v61, 256  ;;  %2954 = vbcast.lane.b32.xlu1 %v2952_v50, 256  ;;  %v2987_v61 = vrot.slane %v2929_v5, %v8260_v7  ;;  %v3347_v50 = vmul.f32 %v3345_v11, %v3342_v52 }
 0x3ff   : > { %v7085_v47 = vpop.permute.xlu1 %3968  ;;  %vm3964_vm5 = vcmp.eq.s32.totalorder %v6153_v1, %v7083_v12 }
 0x400   : > { %v3377_v43 = vrot.slane %v3347_v50, %v8257_v37  ;;  %v3391_v11 = vrot.slane %v3347_v50, %v8258_v63  ;;  %v3384_v52 = vrot.slane %v3347_v50, %v8259_v14  ;;  %v3398_v46 = vrot.slane %v3347_v50, %v8261_v40 }
 0x401   : > { %v3412_v49 = vrot.slane %v3347_v50, %v8263_v41 }
 0x402   : > { %v7092_v51 = vpop.permute.xlu0 %4190  ;;  %2975 = vbcast.lane.b32.xlu0 %v2973_v56, 256  ;;  %2968 = vbcast.lane.b32.xlu1 %v2966_v8, 256  ;;  %v2994_v56 = vrot.slane %v2929_v5, %v8263_v41  ;;  %v3370_v8 = vrot.slane %v3347_v50, %v6166_v22  ;;  %v3546_v5 = vsel %vm3539_vm3, %v7057_v62, 0.0 }
 0x403   : > { %v7094_v4 = vpop.permute.xlu1 %4184  ;;  %vm4192_vm6 = vcmp.eq.s32.totalorder %v6153_v1, %v7092_v51 }
 0x406   : > { %2989 = vbcast.lane.b32.xlu0 %v2987_v61, 256  ;;  %2982 = vbcast.lane.b32.xlu1 %v2980_v53, 256  ;;  %v7099_v27 = vpop.permute.xlu0 %3979  ;;  %v3557_v61 = vsel %vm3551_vm2, %v3555_v25, 0.0 }
 0x407   : > { %v7101_v31 = vpop.permute.xlu1 %4603  ;;  %v3558_v53 = vadd.f32 %v3557_v61, %v3546_v5 }
 0x408   : > { %vm4605_vm13 = vcmp.eq.s32.totalorder %v6153_v1, %v7101_v31 }
 0x409   : > { %v3563_v25 = vmul.f32 %v7068_v60, %v3558_v53 }
 0x40a   : > { %3003 = vbcast.lane.b32.xlu0 %v3001_v36, 256  ;;  %2996 = vbcast.lane.b32.xlu1 %v2994_v56, 256  ;;  %v7107_v16 = vpop.permute.xlu0 %4195 }
 0x40b   : > { %v7109_v20 = vpop.permute.xlu1 %4819  ;;  %v3586_v61 = vrot.slane %v3563_v25, %v6166_v22  ;;  %v3607_v60 = vrot.slane %v3563_v25, %v8258_v63  ;;  %v3600_v53 = vrot.slane %v3563_v25, %v8259_v14 }
 0x40c   : > { %vm4821_vm15 = vcmp.eq.s32.totalorder %v6153_v1, %v7109_v20 }
 0x40e   : > { %3379 = vbcast.lane.b32.xlu0 %v3377_v43, 256  ;;  %3372 = vbcast.lane.b32.xlu1 %v3370_v8, 256  ;;  %v7117_v36 = vpop.permute.xlu0 %4615  ;;  %v3405_v43 = vrot.slane %v3347_v50, %v8260_v7  ;;  %v3419_v8 = vrot.slane %v3347_v50, %v8262_v54  ;;  %v3621_v50 = vrot.slane %v3563_v25, %v8260_v7 }
 0x40f   : > { %v7119_v56 = vpop.permute.xlu1 %4609  ;;  %vm4617_vm12 = vcmp.eq.s32.totalorder %v6153_v1, %v7117_v36 }
 0x412   : > { %3393 = vbcast.lane.b32.xlu0 %v3391_v11, 256  ;;  %3386 = vbcast.lane.b32.xlu1 %v3384_v52, 256  ;;  %v7126_v11 = vpop.permute.xlu0 %4831  ;;  %v3593_v52 = vrot.slane %v3563_v25, %v8257_v37 }
 0x413   : > { %v7128_v62 = vpop.permute.xlu1 %4825  ;;  %vm4833_vm14 = vcmp.eq.s32.totalorder %v6153_v1, %v7126_v11 }
 0x414   : > { %v4828_v11 = vsel %vm4821_vm15, %v7128_v62, 0.0 }
 0x416   : > { %3407 = vbcast.lane.b32.xlu0 %v3405_v43, 256  ;;  %3400 = vbcast.lane.b32.xlu1 %v3398_v46, 256  ;;  %v7132_v5 = vpop.permute.xlu0 %4620  ;;  %v3614_v46 = vrot.slane %v3563_v25, %v8261_v40 }
 0x418   : > { %v3986_v43 = vpop.permute.xlu1 %3985 }
 0x41a   : > { %3421 = vbcast.lane.b32.xlu0 %v3419_v8, 256  ;;  %3414 = vbcast.lane.b32.xlu1 %v3412_v49, 256  ;;  %v7138_v8 = vpop.permute.xlu0 %4836 }
 0x41d   : > { %v7140_v49 = vpop.permute.xlu1 %4626 }
 0x41e   : > { %3595 = vbcast.lane.b32.xlu0 %v3593_v52, 256  ;;  %3588 = vbcast.lane.b32.xlu1 %v3586_v61, 256  ;;  %v3635_v52 = vrot.slane %v3563_v25, %v8262_v54  ;;  %v3628_v61 = vrot.slane %v3563_v25, %v8263_v41  ;;  %v8264_v25 = vsub.f32 1.0, %v6918_v44 }
 0x41f   : > { %v4202_v10 = vpop.permute.xlu0 %4201 }
 0x422   : > { %3609 = vbcast.lane.b32.xlu0 %v3607_v60, 256  ;;  %3602 = vbcast.lane.b32.xlu1 %v3600_v53, 256  ;;  %v7144_v45 = vpop.permute.xlu1 %4842 }
 0x424   : > { %v2716_v60 = vpop.permute.xlu0 %2715 }
 0x425   : > { %vm2717_vm8 = vcmp.eq.s32.totalorder %v6153_v1, %v2716_v60 }
 0x426   : > { %3623 = vbcast.lane.b32.xlu0 %v3621_v50, 256  ;;  %3616 = vbcast.lane.b32.xlu1 %v3614_v46, 256 }
 0x427   : > { %v7148_v53 = vpop.permute.xlu1 %2724 }
 0x428   : > { %v7155_v50 = vpop.permute.xlu0 %2940  ;;  %vm2726_vm10 = vcmp.eq.s32.totalorder %v6153_v1, %v7148_v53 }
 0x429   : > { %vm2942_vm11 = vcmp.eq.s32.totalorder %v6153_v1, %v7155_v50  ;;  %v4623_v50 = vsel %vm4617_vm12, %v7132_v5, 0.0  ;;  %v4839_v5 = vsel %vm4833_vm14, %v7138_v8, 0.0 }
 0x42a   : > { %3637 = vbcast.lane.b32.xlu0 %v3635_v52, 256  ;;  %3630 = vbcast.lane.b32.xlu1 %v3628_v61, 256 }
 0x42b   : > { %v2932_v46 = vpop.permute.xlu1 %2931 }
 0x42c   : > { %vm2933_vm9 = vcmp.eq.s32.totalorder %v6153_v1, %v2932_v46 }
 0x42e   : > { %3999 = vperm.xlu0 %5693, %v6911_v35   ;;  %3990 = vperm.xlu1 %5694, %v6901_v29   ;;  %v8265_v35 = vsub.f32 1.0, %v6928_v30  ;;  %v2729_v29 = vpop.permute.xlu0 %2728 }
 0x42f   : > { %v2720_v52 = vpop.permute.xlu1 %2719  ;;  %v2731_v60 = vsel %vm2726_vm10, %v2729_v29, 0.0 }
 0x430   : > { %v2722_v55 = vsel %vm2717_vm8, %v2720_v52, 0.0 }
 0x432   : > { %4215 = vperm.xlu0 %5693, %v6937_v28   ;;  %4206 = vperm.xlu1 %5694, %v6922_v2   ;;  %v2945_v2 = vpop.permute.xlu0 %2944  ;;  %v3971_v28 = vsel %vm3964_vm5, %v7085_v47, 0.0 }
 0x436   : > { %4003 = vperm.xlu0 %5693, %v6918_v44   ;;  %3994 = vperm.xlu1 %5694, %v8264_v25   ;;  %v3982_v44 = vsel %vm3976_vm4, %v7099_v27, 0.0  ;;  %v7173_v3 = vpop.permute.xlu0 %3358  ;;  %vm5867_vm4 = vmmov 0  }
 0x437   : > { %v3983_v61 = vadd.f32 %v3982_v44, %v3971_v28  ;;  %v4187_v28 = vsel %vm4180_vm7, %v7094_v4, 0.0  ;;  %vm3360_vm0 = vcmp.eq.s32.totalorder %v6153_v1, %v7173_v3 }
 0x43a   : > { %4219 = vperm.xlu0 %5693, %v6928_v30   ;;  %4210 = vperm.xlu1 %5694, %v8265_v35   ;;  %v2936_v30 = vpop.permute.xlu1 %2935  ;;  %v7182_v27 = vpop.permute.xlu0 %3574 }
 0x43b   : > { %v2938_v4 = vsel %vm2933_vm9, %v2936_v30, 0.0  ;;  %vm3576_vm2 = vcmp.eq.s32.totalorder %v6153_v1, %v7182_v27  ;;  %vm2115_vm9 = vcmp.eq.s32.totalorder %v6153_v1, %v6968_v57 }
 0x43e   : > { %4640 = vperm.xlu0 %5693, %v6960_v0   ;;  %4631 = vperm.xlu1 %5694, %v6945_v34   ;;  %v8266_v34 = vsub.f32 1.0, %v6951_v32  ;;  %v3988_v0 = vmul.f32 %v3986_v43, %v3983_v61  ;;  %v7175_v12 = vpop.permute.xlu1 %3349 }
 0x43f   : > { %vm3351_vm1 = vcmp.eq.s32.totalorder %v6153_v1, %v7175_v12 }
 0x440   : > { %v4011_v47 = vrot.slane %v3988_v0, %v6166_v22  ;;  %v4032_v43 = vrot.slane %v3988_v0, %v8258_v63  ;;  %v4025_v25 = vrot.slane %v3988_v0, %v8259_v14  ;;  %v4046_v35 = vrot.slane %v3988_v0, %v8260_v7 }
 0x441   : > { %v4039_v44 = vrot.slane %v3988_v0, %v8261_v40 }
 0x442   : > { %4856 = vperm.xlu0 %5693, %v6971_v39   ;;  %4847 = vperm.xlu1 %5694, %v6953_v42   ;;  %v8267_v42 = vsub.f32 1.0, %v6957_v26  ;;  %v4018_v39 = vrot.slane %v3988_v0, %v8257_v37 }
 0x446   : > { %4644 = vperm.xlu0 %5693, %v6951_v32   ;;  %4635 = vperm.xlu1 %5694, %v8266_v34   ;;  %v7184_v32 = vpop.permute.xlu1 %3565  ;;  %v7196_v34 = vpop.permute.xlu0 %3362 }
 0x447   : > { %vm3567_vm3 = vcmp.eq.s32.totalorder %v6153_v1, %v7184_v32 }
 0x44a   : > { %4860 = vperm.xlu0 %5693, %v6957_v26   ;;  %4851 = vperm.xlu1 %5694, %v8267_v42   ;;  %v4198_v26 = vsel %vm4192_vm6, %v7107_v16, 0.0  ;;  %v7198_v42 = vpop.permute.xlu1 %3353  ;;  %v4053_v16 = vrot.slane %v3988_v0, %v8263_v41 }
 0x44b   : > { %v4199_v61 = vadd.f32 %v4198_v26, %v4187_v28  ;;  %v2947_v26 = vsel %vm2942_vm11, %v2945_v2, 0.0  ;;  %vm2322_vm11 = vcmp.eq.s32.totalorder %v6153_v1, %v6979_v9  ;;  %v8275_v9 = vld [vmem:[#allocation21_spill] sm:$0xff] }
 0x44c   : > { %v2948_v46 = vadd.f32 %v2947_v26, %v2938_v4 }
 0x44d   : > { %v4204_v51 = vmul.f32 %v4202_v10, %v4199_v61 }
 0x44e   : > { %4020 = vbcast.lane.b32.xlu0 %v4018_v39, 256  ;;  %4013 = vbcast.lane.b32.xlu1 %v4011_v47, 256  ;;  %v4060_v39 = vrot.slane %v3988_v0, %v8262_v54  ;;  %v7206_v47 = vpop.permute.xlu0 %3578  ;;  %v2732_v0 = vadd.f32 %v2731_v60, %v2722_v55  ;;  %v3013_v2 = vrot.slane %v2948_v46, %v6446_v13 }
 0x44f   : > { %v4234_v10 = vrot.slane %v4204_v51, %v8257_v37  ;;  %v4248_v30 = vrot.slane %v4204_v51, %v8258_v63  ;;  %v4262_v36 = vrot.slane %v4204_v51, %v8260_v7  ;;  %v4840_v60 = vadd.f32 %v4839_v5, %v4828_v11 }
 0x450   : > { %v2790_v29 = vcombine.high %v2732_v0, %v2732_v0  ;;  %v4276_v20 = vrot.slane %v4204_v51, %v8262_v54  ;;  %v4269_v26 = vrot.slane %v4204_v51, %v8263_v41 }
 0x452   : > { %4034 = vbcast.lane.b32.xlu0 %v4032_v43, 256  ;;  %4027 = vbcast.lane.b32.xlu1 %v4025_v25, 256  ;;  %v7208_v43 = vpop.permute.xlu1 %3569  ;;  %v4227_v25 = vrot.slane %v4204_v51, %v6166_v22  ;;  %v2804_v4 = vrot.slane %v2790_v29, %v6446_v13  ;;  %v3029_v29 = vrot.slane %v3013_v2, %v6446_v13 }
 0x456   : > { %4048 = vbcast.lane.b32.xlu0 %v4046_v35, 256  ;;  %4041 = vbcast.lane.b32.xlu1 %v4039_v44, 256  ;;  %v4241_v35 = vrot.slane %v4204_v51, %v8259_v14  ;;  %v2797_v44 = vrot.slane %v2732_v0, %v6446_v13 }
 0x458   : > { %v2805_v31 = vcombine.high %v2797_v44, %v2797_v44 }
 0x45a   : > { %4062 = vbcast.lane.b32.xlu0 %v4060_v39, 256  ;;  %4055 = vbcast.lane.b32.xlu1 %v4053_v16, 256  ;;  %v4255_v39 = vrot.slane %v4204_v51, %v8261_v40  ;;  %v4612_v16 = vsel %vm4605_vm13, %v7119_v56, 0.0  ;;  %v7254_v62 = vrot.slane %v2805_v31, %v6446_v13 }
 0x45b   : > { %v4624_v55 = vadd.f32 %v4623_v50, %v4612_v16 }
 0x45c   : > { %v2837_v11 = vcombine.high %v7254_v62, %v7254_v62 }
 0x45d   : > { %v7242_v0 = vmul.f32 %v7140_v49, %v4624_v55 }
 0x45e   : > { %4236 = vbcast.lane.b32.xlu0 %v4234_v10, 256  ;;  %4229 = vbcast.lane.b32.xlu1 %v4227_v25, 256  ;;  %v3006_v10 = vcombine.high %v2948_v46, %v2948_v46  ;;  %v3021_v25 = vcombine.high %v3013_v2, %v3013_v2  ;;  %v7257_v46 = vrot.slane %v2797_v44, %v6446_v13 }
 0x45f   : > { %v4652_v44 = vrot.slane %v7242_v0, %v6166_v22  ;;  %v4666_v16 = vrot.slane %v7242_v0, %v8259_v14  ;;  %v4687_v5 = vrot.slane %v7242_v0, %v8260_v7  ;;  %v4680_v2 = vrot.slane %v7242_v0, %v8261_v40 }
 0x460   : > { %v7214_v52 = vpop.permute.xlu0 %2745  ;;  %v7216_v53 = vpop.permute.xlu1 %2738  ;;  %v3020_v49 = vrot.slane %v3006_v10, %v6446_v13  ;;  %v3043_v50 = vrot.slane %v3021_v25, %v6446_v13  ;;  %v4701_v55 = vrot.slane %v7242_v0, %v8262_v54  ;;  %v4694_v31 = vrot.slane %v7242_v0, %v8263_v41 }
 0x461   : > { %v2835_v10 = vcombine.high %v7257_v46, %v7257_v46  ;;  %v2842_v25 = vrot.slane %v7257_v46, %v6166_v22 }
 0x462   : > { %4250 = vbcast.lane.b32.xlu0 %v4248_v30, 256  ;;  %4243 = vbcast.lane.b32.xlu1 %v4241_v35, 256  ;;  %v7251_v30 = vmul.f32 %v7144_v45, %v4840_v60  ;;  %v2806_v35 = vcombine.high %v2804_v4, %v2804_v4  ;;  %v4659_v45 = vrot.slane %v7242_v0, %v8257_v37 }
 0x463   : > { %v3022_v58 = vcombine.high %v3020_v49, %v3020_v49  ;;  %v3036_v18 = vrot.slane %v3020_v49, %v6446_v13  ;;  %v2850_v24 = vrot.slane %v2835_v10, %v6166_v22  ;;  %v3062_v59 = vrot.slane %v3043_v50, %v6166_v22 }
 0x464   : > { %v7229_v28 = vpop.permute.xlu0 %2759  ;;  %v7231_v61 = vpop.permute.xlu1 %2752  ;;  %v7289_v60 = vrot.slane %v2806_v35, %v6446_v13  ;;  %v2846_v35 = vrot.slane %v7254_v62, %v6166_v22 }
 0x465   : > { %v3050_v46 = vrot.slane %v3022_v58, %v6446_v13  ;;  %v3052_v15 = vcombine.high %v3036_v18, %v3036_v18  ;;  %v3365_v58 = vsel %vm3360_vm0, %v7196_v34, 0.0 }
 0x466   : > { %4264 = vbcast.lane.b32.xlu0 %v4262_v36, 256  ;;  %4257 = vbcast.lane.b32.xlu1 %v4255_v39, 256  ;;  %v4673_v39 = vrot.slane %v7242_v0, %v8258_v63  ;;  %v2820_v0 = vrot.slane %v2804_v4, %v6446_v13  ;;  %v2854_v4 = vrot.slane %v2837_v11, %v6166_v22 }
 0x467   : > { %v2862_v49 = vrot.slane %v7289_v60, %v6166_v22  ;;  %v3058_v11 = vrot.slane %v3029_v29, %v6166_v22  ;;  %v3078_v34 = vrot.slane %v3050_v46, %v6166_v22 }
 0x468   : > { %v7244_v56 = vpop.permute.xlu0 %2773  ;;  %v7246_v8 = vpop.permute.xlu1 %2766  ;;  %v2836_v19 = vcombine.high %v2820_v0, %v2820_v0 }
 0x46a   : > { %4278 = vbcast.lane.b32.xlu0 %v4276_v20, 256  ;;  %4271 = vbcast.lane.b32.xlu1 %v4269_v26, 256  ;;  %v3053_v20 = vcombine.high %v3043_v50, %v3043_v50  ;;  %v3051_v26 = vcombine.high %v3029_v29, %v3029_v29  ;;  %v2858_v50 = vrot.slane %v2820_v0, %v6166_v22 }
 0x46b   : > { %v2866_v3 = vrot.slane %v2836_v19, %v6166_v22  ;;  %v3572_v19 = vsel %vm3567_vm3, %v7208_v43, 0.0  ;;  %vm3194_vm3 = vcmask 97280  }
 0x46c   : > { %v7262_v36 = vpop.permute.xlu0 %2787  ;;  %v7264_v51 = vpop.permute.xlu1 %2780  ;;  %v3070_v6 = vrot.slane %v3053_v20, %v6166_v22  ;;  %v3066_v62 = vrot.slane %v3051_v26, %v6166_v22  ;;  %v2881_v20 = vmul.f32 %v2850_v24, %v7231_v61  ;;  %v3356_v61 = vsel %vm3351_vm1, %v7198_v42, 0.0 }
 0x46d   : > { %v2883_v27 = vmul.f32 %v2858_v50, %v7246_v8  ;;  %v3366_v32 = vadd.f32 %v3365_v58, %v3356_v61  ;;  %vm3191_vm1 = vcmask 31744  }
 0x46e   : > { %4661 = vbcast.lane.b32.xlu0 %v4659_v45, 256  ;;  %4654 = vbcast.lane.b32.xlu1 %v4652_v44, 256  ;;  %v2838_v44 = vcombine.high %v7289_v60, %v7289_v60  ;;  %v3054_v60 = vcombine.high %v3050_v46, %v3050_v46 }
 0x470   : > { %v2962_v48 = vpop.permute.xlu0 %2961  ;;  %v2955_v45 = vpop.permute.xlu1 %2954  ;;  %v2870_v29 = vrot.slane %v2838_v44, %v6166_v22  ;;  %v8268_v44 = vrot.slane %v7251_v30, %v8257_v37  ;;  %v4889_v37 = vrot.slane %v7251_v30, %v8258_v63 }
 0x471   : > { %v3096_v26 = vmul.f32 %v3062_v59, %v2962_v48  ;;  %v3095_v33 = vmul.f32 %v3058_v11, %v2955_v45 }
 0x472   : > { %4675 = vbcast.lane.b32.xlu0 %v4673_v39, 256  ;;  %4668 = vbcast.lane.b32.xlu1 %v4666_v16, 256  ;;  %v2882_v16 = vmul.f32 %v2854_v4, %v7229_v28  ;;  %v2879_v28 = vmul.f32 %v2842_v25, %v7216_v53  ;;  %v3082_v53 = vrot.slane %v3052_v15, %v6166_v22 }
 0x473   : > { %v2885_v15 = vmul.f32 %v2866_v3, %v7264_v51 }
 0x474   : > { %v2976_v10 = vpop.permute.xlu0 %2975  ;;  %v2969_v39 = vpop.permute.xlu1 %2968 }
 0x475   : > { %v3098_v23 = vmul.f32 %v3070_v6, %v2976_v10  ;;  %v3097_v38 = vmul.f32 %v3066_v62, %v2969_v39  ;;  %v2880_v6 = vmul.f32 %v2846_v35, %v7214_v52  ;;  %v3581_v52 = vsel %vm3576_vm2, %v7206_v47, 0.0 }
 0x476   : > { %4689 = vbcast.lane.b32.xlu0 %v4687_v5, 256  ;;  %4682 = vbcast.lane.b32.xlu1 %v4680_v2, 256  ;;  %v3074_v5 = vrot.slane %v3036_v18, %v6166_v22  ;;  %v3086_v18 = vrot.slane %v3054_v60, %v6166_v22  ;;  %v2884_v2 = vmul.f32 %v2862_v49, %v7244_v56  ;;  %vm821_vm2 = vcmask 64512  }
 0x477   : > { %v3106_v4 = vadd.f32 %v3098_v23, %v2882_v16  ;;  %v3105_v24 = vadd.f32 %v3097_v38, %v2881_v20  ;;  %v3104_v23 = vadd.f32 %v3096_v26, %v2880_v6  ;;  %v3103_v38 = vadd.f32 %v3095_v33, %v2879_v28 }
 0x478   : > { %v2990_v59 = vpop.permute.xlu0 %2989  ;;  %v2983_v48 = vpop.permute.xlu1 %2982  ;;  %v3582_v43 = vadd.f32 %v3581_v52, %v3572_v19  ;;  %v8269_v56 = vrot.slane %v7251_v30, %v6166_v22  ;;  %v4882_v10 = vrot.slane %v7251_v30, %v8259_v14  ;;  %v3431_v20 = vrot.slane %v3366_v32, %v6446_v13 }
 0x479   : > { %v3100_v12 = vmul.f32 %v3078_v34, %v2990_v59  ;;  %v3099_v42 = vmul.f32 %v3074_v5, %v2983_v48  ;;  %v3119_v47 = vcombine.low %v3104_v23, %v3106_v4  ;;  %v3111_v25 = vcombine.low %v3103_v38, %v3105_v24 }
 0x47a   : > { %4703 = vbcast.lane.b32.xlu0 %v4701_v55, 256  ;;  %4696 = vbcast.lane.b32.xlu1 %v4694_v31, 256  ;;  %v2886_v31 = vmul.f32 %v2870_v29, %v7262_v36  ;;  %v3647_v26 = vrot.slane %v3582_v43, %v6446_v13  ;;  %v4903_v14 = vrot.slane %v7251_v30, %v8260_v7 }
 0x47b   : > { %v3108_v8 = vadd.f32 %v3100_v12, %v2884_v2  ;;  %v3107_v35 = vadd.f32 %v3099_v42, %v2883_v27  ;;  %v7356_v36 = vrot.slane %v3119_v47, %v6494_v17  ;;  %v7359_v51 = vrot.slane %v3111_v25, %v6494_v17  ;;  %v8270_v25 = vld [vmem:[#allocation54_spill] sm:$0xff] }
 0x47c   : > { %v3004_v33 = vpop.permute.xlu0 %3003  ;;  %v2997_v55 = vpop.permute.xlu1 %2996  ;;  %v4896_v28 = vrot.slane %v7251_v30, %v8261_v40  ;;  %v3424_v4 = vcombine.high %v3366_v32, %v3366_v32  ;;  %v3439_v59 = vcombine.high %v3431_v20, %v3431_v20  ;;  %v3640_v48 = vcombine.high %v3582_v43, %v3582_v43 }
 0x47d   : > { %v3102_v0 = vmul.f32 %v3086_v18, %v3004_v33  ;;  %v3101_v45 = vmul.f32 %v3082_v53, %v2997_v55  ;;  %v3143_v29 = vcombine.low %v7359_v51, %v7356_v36  ;;  %v3655_v61 = vcombine.high %v3647_v26, %v3647_v26 }
 0x47e   : > { %4877 = vbcast.lane.b32.xlu0 %v8268_v44, 256  ;;  %4870 = vbcast.lane.b32.xlu1 %v8269_v56, 256  ;;  %v4917_v52 = vrot.slane %v7251_v30, %v8262_v54  ;;  %v4910_v23 = vrot.slane %v7251_v30, %v8263_v41  ;;  %v3438_v53 = vrot.slane %v3424_v4, %v6446_v13 }
 0x47f   : > { %v3110_v62 = vadd.f32 %v3102_v0, %v2886_v31  ;;  %v3109_v46 = vadd.f32 %v3101_v45, %v2885_v15  ;;  %v7397_v38 = vrot.slane %v3143_v29, %v8206_v21  ;;  %v3447_v19 = vrot.slane %v3431_v20, %v6446_v13 }
 0x480   : > { %v7361_v49 = vpop.permute.xlu0 %3379  ;;  %v7363_v11 = vpop.permute.xlu1 %3372  ;;  %v3461_v12 = vrot.slane %v3439_v59, %v6446_v13  ;;  %v3654_v18 = vrot.slane %v3640_v48, %v6446_v13  ;;  %v3677_v2 = vrot.slane %v3655_v61, %v6446_v13  ;;  %v3663_v30 = vrot.slane %v3647_v26, %v6446_v13 }
 0x481   : > { %v3135_v39 = vcombine.low %v3108_v8, %v3110_v62  ;;  %v3127_v16 = vcombine.low %v3107_v35, %v3109_v46  ;;  %v2369_v33 = vrot.slane %v8270_v25, %v8261_v40  ;;  %v2362_v55 = vrot.slane %v8270_v25, %v8258_v63 }
 0x482   : > { %4891 = vbcast.lane.b32.xlu0 %v4889_v37, 256  ;;  %4884 = vbcast.lane.b32.xlu1 %v4882_v10, 256  ;;  %v3469_v31 = vcombine.high %v3447_v19, %v3447_v19  ;;  %v3440_v15 = vcombine.high %v3438_v53, %v3438_v53  ;;  %v3471_v0 = vcombine.high %v3461_v12, %v3461_v12 }
 0x483   : > { %v7372_v58 = vrot.slane %v3135_v39, %v6494_v17  ;;  %v7375_v50 = vrot.slane %v3127_v16, %v6494_v17  ;;  %v3687_v45 = vcombine.high %v3677_v2, %v3677_v2  ;;  %v3685_v32 = vcombine.high %v3663_v30, %v3663_v30 }
 0x484   : > { %v3394_v60 = vpop.permute.xlu0 %3393  ;;  %v3387_v6 = vpop.permute.xlu1 %3386  ;;  %v3656_v43 = vcombine.high %v3654_v18, %v3654_v18  ;;  %v2383_v8 = vrot.slane %v8270_v25, %v8263_v41  ;;  %v2376_v35 = vrot.slane %v8270_v25, %v8260_v7  ;;  %v3484_v40 = vrot.slane %v3469_v31, %v6166_v22 }
 0x485   : > { %v3159_v24 = vcombine.low %v7375_v50, %v7372_v58  ;;  %v3468_v63 = vrot.slane %v3440_v15, %v6446_v13  ;;  %v3454_v62 = vrot.slane %v3438_v53, %v6446_v13  ;;  %v2390_v46 = vrot.slane %v8270_v25, %v8262_v54 }
 0x486   : > { %4905 = vbcast.lane.b32.xlu0 %v4903_v14, 256  ;;  %4898 = vbcast.lane.b32.xlu1 %v4896_v28, 256  ;;  %v3488_v37 = vrot.slane %v3471_v0, %v6166_v22  ;;  %v3696_v10 = vrot.slane %v3677_v2, %v6166_v22  ;;  %v3692_v39 = vrot.slane %v3663_v30, %v6166_v22 }
 0x487   : > { %v7386_v3 = vrot.slane %v3159_v24, %v8206_v21  ;;  %v3704_v41 = vrot.slane %v3687_v45, %v6166_v22  ;;  %v3700_v7 = vrot.slane %v3685_v32, %v6166_v22  ;;  %v3684_v16 = vrot.slane %v3656_v43, %v6446_v13 }
 0x488   : > { %v7388_v34 = vpop.permute.xlu0 %3407  ;;  %v7390_v5 = vpop.permute.xlu1 %3400  ;;  %v3670_v20 = vrot.slane %v3654_v18, %v6446_v13  ;;  %v3480_v26 = vrot.slane %v3461_v12, %v6166_v22  ;;  %v3476_v54 = vrot.slane %v3447_v19, %v6166_v22  ;;  %v3516_v24 = vmul.f32 %v3488_v37, %v3394_v60 }
 0x489   : > { %v3515_v59 = vmul.f32 %v3484_v40, %v3387_v6  ;;  %v3472_v53 = vcombine.high %v3468_v63, %v3468_v63  ;;  %v3470_v2 = vcombine.high %v3454_v62, %v3454_v62  ;;  %v3688_v12 = vcombine.high %v3684_v16, %v3684_v16 }
 0x48a   : > { %4919 = vbcast.lane.b32.xlu0 %v4917_v52, 256  ;;  %4912 = vbcast.lane.b32.xlu1 %v4910_v23, 256  ;;  %v3514_v52 = vmul.f32 %v3480_v26, %v7361_v49  ;;  %v3513_v23 = vmul.f32 %v3476_v54, %v7363_v11  ;;  %v3686_v25 = vcombine.high %v3670_v20, %v3670_v20 }
 0x48b   : > { %v3496_v60 = vrot.slane %v3468_v63, %v6166_v22  ;;  %v3492_v6 = vrot.slane %v3454_v62, %v6166_v22  ;;  %v3712_v15 = vrot.slane %v3684_v16, %v6166_v22  ;;  %v3708_v49 = vrot.slane %v3670_v20, %v6166_v22 }
 0x48c   : > { %v7407_v27 = vpop.permute.xlu0 %3421  ;;  %v7409_v47 = vpop.permute.xlu1 %3414  ;;  %v3504_v11 = vrot.slane %v3472_v53, %v6166_v22  ;;  %v3500_v0 = vrot.slane %v3470_v2, %v6166_v22  ;;  %v8118_v53 = vmov 0.0  }
 0x48d   : > { %v3517_v40 = vmul.f32 %v3492_v6, %v7390_v5  ;;  %5440 = vmatprep.subr.bf16.mxu1 %v8118_v53  ;;  %5458 = vmatprep.subr.bf16.mxu0 %v8118_v53 }
 0x48e   : > { %2371 = vbcast.lane.b32.xlu0 %v2369_v33, 256  ;;  %2364 = vbcast.lane.b32.xlu1 %v2362_v55, 256  ;;  %v3519_v37 = vmul.f32 %v3500_v0, %v7409_v47 }
 0x48f   : > { %5442 = vmatprep.mubr.msk.bf16.mxu1 %vm5867_vm4, %v8118_v53  ;;  %5460 = vmatprep.mubr.msk.bf16.mxu0 %vm5867_vm4, %v8118_v53 }
 0x490   : > { %v3596_v44 = vpop.permute.xlu0 %3595  ;;  %v3589_v56 = vpop.permute.xlu1 %3588 }
 0x491   : > { %v3730_v29 = vmul.f32 %v3696_v10, %v3596_v44  ;;  %v3729_v14 = vmul.f32 %v3692_v39, %v3589_v56  ;;  %v3720_v56 = vrot.slane %v3688_v12, %v6166_v22  ;;  %v3176_v12 = vcombine.high %v7397_v38, %v7386_v3 }
 0x492   : > { %2385 = vbcast.lane.b32.xlu0 %v2383_v8, 256  ;;  %2378 = vbcast.lane.b32.xlu1 %v2376_v35, 256  ;;  %v3716_v8 = vrot.slane %v3686_v25, %v6166_v22  ;;  %v3518_v35 = vmul.f32 %v3496_v60, %v7388_v34  ;;  %v3160_v34 = vcombine.high %v7375_v50, %v7372_v58 }
 0x493   : > { %v3738_v19 = vadd.f32 %v3730_v29, %v3514_v52  ;;  %v3737_v33 = vadd.f32 %v3729_v14, %v3513_v23 }
 0x494   : > { %v3610_v28 = vpop.permute.xlu0 %3609  ;;  %v3603_v4 = vpop.permute.xlu1 %3602 }
 0x495   : > { %v3732_v48 = vmul.f32 %v3704_v41, %v3610_v28  ;;  %v3731_v61 = vmul.f32 %v3700_v7, %v3603_v4 }
 0x496   : > { %2392 = vbcast.lane.b32.xlu1 %v2390_v46, 256  ;;  %v3520_v46 = vmul.f32 %v3504_v11, %v7407_v27  ;;  %v3144_v27 = vcombine.high %v7359_v51, %v7356_v36  ;;  %v5735_v51 = vld [vmem:[%s5951_s3 + $0x20] sm:$0xff]  }
 0x497   : > { %v3740_v18 = vadd.f32 %v3732_v48, %v3516_v24  ;;  %v3739_v30 = vadd.f32 %v3731_v61, %v3515_v59  ;;  %v3174_v24 = vrot.slane %v3160_v34, %v8206_v21  ;;  %5441 = vmatpush3.bf16.msra.mxu1 %v5735_v51 }
 0x498   : > { %v3624_v55 = vpop.permute.xlu0 %3623  ;;  %v3617_v31 = vpop.permute.xlu1 %3616  ;;  %v3158_v58 = vrot.slane %v3144_v27, %v8206_v21  ;;  %5446 = vmatprep.subr.bf16.mxu1 %v8118_v53 }
 0x499   : > { %v3753_v45 = vcombine.low %v3738_v19, %v3740_v18  ;;  %v3745_v32 = vcombine.low %v3737_v33, %v3739_v30  ;;  %v3734_v43 = vmul.f32 %v3712_v15, %v3624_v55  ;;  %v3733_v44 = vmul.f32 %v3708_v49, %v3617_v31  ;;  %v5725_v49 = vld [vmem:[%s5951_s3 + $0x20] sm:$0xff]  }
 0x49a   : > { %v3177_v23 = vcombine.low %v3158_v58, %v3174_v24  ;;  %v3178_v15 = vcombine.high %v3158_v58, %v3174_v24  ;;  %v8271_v58 = vld [vmem:[#allocation18_spill] sm:$0xff] }
 0x49b   : > { %v3760_v41 = vrot.slane %v3753_v45, %v6494_v17  ;;  %v3752_v7 = vrot.slane %v3745_v32, %v6494_v17  ;;  %v3742_v16 = vadd.f32 %v3734_v43, %v3518_v35  ;;  %v3741_v20 = vadd.f32 %v3733_v44, %v3517_v40  ;;  %v5726_v32 = vld [vmem:[%s5951_s3 + $0x18] sm:$0xff]   ;;  %v5727_v43 = vld [vmem:[%s5951_s3 + $0x10] sm:$0xff]  }
 0x49c   : > { %v3638_v63 = vpop.permute.xlu0 %3637  ;;  %v3631_v62 = vpop.permute.xlu1 %3630  ;;  %vm2106_vm10 = vcmp.eq.s32.totalorder %v6153_v1, %v8271_v58 }
 0x49d   : > { %v3736_v10 = vmul.f32 %v3720_v56, %v3638_v63  ;;  %v3735_v39 = vmul.f32 %v3716_v8, %v3631_v62  ;;  %v3777_v47 = vcombine.low %v3752_v7, %v3760_v41  ;;  %v3778_v14 = vcombine.high %v3752_v7, %v3760_v41  ;;  %v5728_v63 = vld [vmem:[%s5951_s3 + $0x8] sm:$0xff]   ;;  %v5729_v62 = vld [vmem:[%s5951_s3] sm:$0xff]  }
 0x49f   : > { %v3744_v26 = vadd.f32 %v3736_v10, %v3520_v46  ;;  %v3743_v54 = vadd.f32 %v3735_v39, %v3519_v37  ;;  %v7457_v61 = vrot.slane %v3777_v47, %v8206_v21  ;;  %v3792_v50 = vrot.slane %v3778_v14, %v8206_v21 }
 0x4a1   : > { %v3769_v5 = vcombine.low %v3742_v16, %v3744_v26  ;;  %v3761_v29 = vcombine.low %v3741_v20, %v3743_v54 }
 0x4a3   : > { %v3776_v28 = vrot.slane %v3769_v5, %v6494_v17  ;;  %v3768_v4 = vrot.slane %v3761_v29, %v6494_v17 }
 0x4a5   : > { %v3793_v59 = vcombine.low %v3768_v4, %v3776_v28  ;;  %v3794_v48 = vcombine.high %v3768_v4, %v3776_v28 }
 0x4a7   : > { %v7462_v52 = vrot.slane %v3793_v59, %v8206_v21  ;;  %v3808_v36 = vrot.slane %v3794_v48, %v8206_v21 }
 0x4a9   : > { %v4000_v2 = vpop.permute.xlu0 %3999  ;;  %v3991_v18 = vpop.permute.xlu1 %3990  ;;  %v3811_v30 = vcombine.low %v3792_v50, %v3808_v36  ;;  %v3810_v25 = vcombine.high %v7457_v61, %v7462_v52  ;;  %v3812_v31 = vcombine.high %v3792_v50, %v3808_v36 }
 0x4aa   : > { %vm4001_vm5 = vcmp.eq.s32.totalorder %v6153_v1, %v4000_v2  ;;  %vm3992_vm6 = vcmp.eq.s32.totalorder %v6153_v1, %v3991_v18 }
 0x4ab   : > { %v5700_v33 = vpack.i.bf16 %v3811_v30, %v3177_v23  ;;  %v5695_v55 = vpack.i.bf16 %v3810_v25, %v3176_v12  ;;  %v5705_v11 = vpack.i.bf16 %v3812_v31, %v3178_v15  ;;  %v8272_v23 = vld [vmem:[#allocation20_spill] sm:$0xff]  ;;  %v8273_v12 = vld [vmem:[#allocation19_spill] sm:$0xff]  ;;  %v8274_v31 = vld [vmem:[#allocation25_spill] sm:$0xff] }
 0x4ac   : > { %v2120_v2 = vsel %vm2115_vm9, %v8272_v23, 0.0  ;;  %v2111_v25 = vsel %vm2106_vm10, %v8273_v12, 0.0  ;;  %vm2331_vm12 = vcmp.eq.s32.totalorder %v6153_v1, %v8274_v31  ;;  %vm831_vm9 = vcmask 392192  }
 0x4ad   : > { %v4216_v60 = vpop.permute.xlu0 %4215  ;;  %5701 = vrot.lane.b32.xlu1 %v5700_v33, %s5852_s27  ;;  %5696 = vrot.lane.b32.xlu0 %v5695_v55, %s5868_s28  ;;  %v4207_v6 = vpop.permute.xlu1 %4206  ;;  %vm833_vm10 = vcmask 457728  }
 0x4ae   : > { %vm4217_vm7 = vcmp.eq.s32.totalorder %v6153_v1, %v4216_v60  ;;  %vm4208_vm8 = vcmp.eq.s32.totalorder %v6153_v1, %v4207_v6  ;;  %v7534_v60 = vadd.f32 %v2120_v2, %v2111_v25 }
 0x4b1   : > { %v4004_v0 = vpop.permute.xlu0 %4003  ;;  %5706 = vrot.lane.b32.xlu0 %v5705_v11, %s5869_s7  ;;  %v3995_v45 = vpop.permute.xlu1 %3994  ;;  %3836 = vrot.lane.b32.xlu1 %v5725_v49, %s5841_s20  ;;  %v2327_v11 = vsel %vm2322_vm11, %v8275_v9, 0.0  ;;  %vm3272_vm11 = vcmask 523264  }
 0x4b2   : > { %v4006_v44 = vsel %vm4001_vm5, %v4004_v0, 0.0  ;;  %v3997_v56 = vsel %vm3992_vm6, %v3995_v45, 0.0  ;;  %v8276_v0 = vld [vmem:[#allocation26_spill] sm:$0xff]  ;;  %vm823_vm5 = vcmask 130048   ;;  %vm825_vm6 = vcmask 195584  }
 0x4b3   : > { %v4007_v8 = vadd.f32 %v4006_v44, %v3997_v56  ;;  %v2336_v45 = vsel %vm2331_vm12, %v8276_v0, 0.0 }
 0x4b5   : > { %v4220_v35 = vpop.permute.xlu0 %4219  ;;  %v4211_v40 = vpop.permute.xlu1 %4210  ;;  %3908 = vrot.lane.b32.xlu0 %v5726_v32, %s5841_s20  ;;  %3906 = vrot.lane.b32.xlu1 %v5727_v43, %s5841_s20  ;;  %v4072_v27 = vrot.slane %v4007_v8, %v6446_v13  ;;  %v4065_v14 = vcombine.high %v4007_v8, %v4007_v8 }
 0x4b6   : > { %v4222_v46 = vsel %vm4217_vm7, %v4220_v35, 0.0  ;;  %v4213_v37 = vsel %vm4208_vm8, %v4211_v40, 0.0  ;;  %vm827_vm7 = vcmask 261120   ;;  %vm829_vm8 = vcmask 326656  }
 0x4b7   : > { %v4223_v10 = vadd.f32 %v4222_v46, %v4213_v37  ;;  %v4080_v24 = vcombine.high %v4072_v27, %v4072_v27  ;;  %v4079_v50 = vrot.slane %v4065_v14, %v6446_v13  ;;  %v4088_v18 = vrot.slane %v4072_v27, %v6446_v13 }
 0x4b8   : > { %v7548_v46 = vrot.slane %v7534_v60, %v6446_v13  ;;  %v7550_v37 = vadd.f32 %v2336_v45, %v2327_v11 }
 0x4b9   : > { %v7494_v39 = vpop.permute.xlu0 %4640  ;;  %v7496_v41 = vpop.permute.xlu1 %4631  ;;  %3904 = vrot.lane.b32.xlu0 %v5728_v63, %s5841_s20  ;;  %3902 = vrot.lane.b32.xlu1 %v5729_v62, %s5841_s20  ;;  %v4288_v47 = vrot.slane %v4223_v10, %v6446_v13  ;;  %v4281_v59 = vcombine.high %v4223_v10, %v4223_v10  ;;  %v4102_v30 = vrot.slane %v4080_v24, %v6446_v13 }
 0x4ba   : > { %v4081_v6 = vcombine.high %v4079_v50, %v4079_v50  ;;  %v4117_v32 = vrot.slane %v4088_v18, %v6166_v22  ;;  %v4110_v56 = vcombine.high %v4088_v18, %v4088_v18  ;;  %v4095_v27 = vrot.slane %v4079_v50, %v6446_v13 }
 0x4bb   : > { %v4296_v48 = vcombine.high %v4288_v47, %v4288_v47  ;;  %v4295_v57 = vrot.slane %v4281_v59, %v6446_v13  ;;  %v4304_v55 = vrot.slane %v4288_v47, %v6446_v13  ;;  %v4121_v43 = vrot.slane %v4102_v30, %v6166_v22 }
 0x4bc   : > { %v4112_v44 = vcombine.high %v4102_v30, %v4102_v30  ;;  %v4109_v10 = vrot.slane %v4081_v6, %v6446_v13  ;;  %v4125_v2 = vrot.slane %v4110_v56, %v6166_v22  ;;  %vm4642_vm13 = vcmp.eq.s32.totalorder %v6153_v1, %v7494_v39 }
 0x4bd   : > { %v7500_v7 = vpop.permute.xlu0 %4856  ;;  %v7502_v16 = vpop.permute.xlu1 %4847  ;;  %v4318_v33 = vrot.slane %v4296_v48, %v6446_v13  ;;  %v4297_v8 = vcombine.high %v4295_v57, %v4295_v57  ;;  %v4333_v40 = vrot.slane %v4304_v55, %v6166_v22  ;;  %v4326_v62 = vcombine.high %v4304_v55, %v4304_v55 }
 0x4be   : > { %v4129_v23 = vrot.slane %v4112_v44, %v6166_v22  ;;  %v4311_v30 = vrot.slane %v4295_v57, %v6446_v13  ;;  %vm4633_vm14 = vcmp.eq.s32.totalorder %v6153_v1, %v7496_v41  ;;  %vm4858_vm15 = vcmp.eq.s32.totalorder %v6153_v1, %v7500_v7 }
 0x4bf   : > { %v4337_v35 = vrot.slane %v4318_v33, %v6166_v22  ;;  %v4328_v63 = vcombine.high %v4318_v33, %v4318_v33  ;;  %v4325_v18 = vrot.slane %v4297_v8, %v6446_v13  ;;  %vm4849_vm0 = vcmp.eq.s32.totalorder %v6153_v1, %v7502_v16 }
 0x4c0   : > { %v4113_v25 = vcombine.high %v4109_v10, %v4109_v10  ;;  %v4111_v57 = vcombine.high %v4095_v27, %v4095_v27  ;;  %v4137_v0 = vrot.slane %v4109_v10, %v6166_v22  ;;  %v4133_v45 = vrot.slane %v4095_v27, %v6166_v22 }
 0x4c1   : > { %v7504_v20 = vpop.permute.xlu0 %4644  ;;  %v7506_v26 = vpop.permute.xlu1 %4635  ;;  %v4353_v8 = vrot.slane %v4325_v18, %v6166_v22  ;;  %v2402_v39 = vrot.slane %v7550_v37, %v6446_v13  ;;  %v2194_v41 = vcombine.high %v7548_v46, %v7548_v46 }
 0x4c2   : > { %v4647_v7 = vsel %vm4642_vm13, %v7504_v20, 0.0  ;;  %v4638_v16 = vsel %vm4633_vm14, %v7506_v26, 0.0 }
 0x4c3   : > { %v4648_v20 = vadd.f32 %v4647_v7, %v4638_v16 }
 0x4c5   : > { %v7508_v54 = vpop.permute.xlu0 %4860  ;;  %v7510_v34 = vpop.permute.xlu1 %4851 }
 0x4c9   : > { %v4021_v5 = vpop.permute.xlu0 %4020  ;;  %v4014_v29 = vpop.permute.xlu1 %4013 }
 0x4ca   : > { %v4155_v24 = vmul.f32 %v4121_v43, %v4021_v5  ;;  %v4154_v59 = vmul.f32 %v4117_v32, %v4014_v29  ;;  %v4345_v5 = vrot.slane %v4328_v63, %v6166_v22  ;;  %v4341_v29 = vrot.slane %v4326_v62, %v6166_v22 }
 0x4cb   : > { %v4329_v32 = vcombine.high %v4325_v18, %v4325_v18  ;;  %v4327_v43 = vcombine.high %v4311_v30, %v4311_v30 }
 0x4cd   : > { %v4035_v28 = vpop.permute.xlu0 %4034  ;;  %v4028_v4 = vpop.permute.xlu1 %4027 }
 0x4ce   : > { %v4157_v31 = vmul.f32 %v4129_v23, %v4035_v28  ;;  %v4156_v6 = vmul.f32 %v4125_v2, %v4028_v4  ;;  %v4145_v28 = vrot.slane %v4113_v25, %v6166_v22  ;;  %v4141_v4 = vrot.slane %v4111_v57, %v6166_v22 }
 0x4d1   : > { %v7519_v36 = vpop.permute.xlu0 %4048  ;;  %v7521_v51 = vpop.permute.xlu1 %4041 }
 0x4d2   : > { %v4158_v63 = vmul.f32 %v4133_v45, %v7521_v51  ;;  %v4361_v51 = vrot.slane %v4329_v32, %v6166_v22  ;;  %v2410_v45 = vcombine.high %v2402_v39, %v2402_v39  ;;  %v4713_v32 = vrot.slane %v4648_v20, %v6446_v13 }
 0x4d5   : > { %v7536_v15 = vpop.permute.xlu0 %4062  ;;  %v7538_v49 = vpop.permute.xlu1 %4055 }
 0x4d9   : > { %v4237_v47 = vpop.permute.xlu0 %4236  ;;  %v4230_v14 = vpop.permute.xlu1 %4229 }
 0x4da   : > { %v4371_v48 = vmul.f32 %v4337_v35, %v4237_v47  ;;  %v4370_v58 = vmul.f32 %v4333_v40, %v4230_v14  ;;  %v4349_v35 = vrot.slane %v4311_v30, %v6166_v22  ;;  %v4159_v40 = vmul.f32 %v4137_v0, %v7519_v36 }
 0x4db   : > { %v4854_v36 = vsel %vm4849_vm0, %v7510_v34, 0.0  ;;  %v4160_v34 = vmul.f32 %v4141_v4, %v7538_v49  ;;  %v2202_v49 = vrot.slane %v7548_v46, %v6446_v13  ;;  %v2179_v0 = vcombine.high %v7534_v60, %v7534_v60 }
 0x4dc   : > { %v4379_v50 = vadd.f32 %v4371_v48, %v4155_v24  ;;  %v4378_v12 = vadd.f32 %v4370_v58, %v4154_v59  ;;  %v4863_v59 = vsel %vm4858_vm15, %v7508_v54, 0.0  ;;  %v4357_v48 = vrot.slane %v4327_v43, %v6166_v22 }
 0x4dd   : > { %v4251_v33 = vpop.permute.xlu0 %4250  ;;  %v4244_v55 = vpop.permute.xlu1 %4243  ;;  %v4161_v54 = vmul.f32 %v4145_v28, %v7536_v15  ;;  %v4864_v57 = vadd.f32 %v4863_v59, %v4854_v36  ;;  %v4706_v46 = vcombine.high %v4648_v20, %v4648_v20 }
 0x4de   : > { %v4373_v9 = vmul.f32 %v4345_v5, %v4251_v33  ;;  %v4372_v11 = vmul.f32 %v4341_v29, %v4244_v55 }
 0x4e0   : > { %v4381_v44 = vadd.f32 %v4373_v9, %v4157_v31  ;;  %v4380_v56 = vadd.f32 %v4372_v11, %v4156_v6  ;;  %v4929_v6 = vrot.slane %v4864_v57, %v6446_v13 }
 0x4e1   : > { %v4265_v62 = vpop.permute.xlu0 %4264  ;;  %v4258_v10 = vpop.permute.xlu1 %4257 }
 0x4e2   : > { %v4394_v47 = vcombine.low %v4379_v50, %v4381_v44  ;;  %v4386_v27 = vcombine.low %v4378_v12, %v4380_v56  ;;  %v4375_v14 = vmul.f32 %v4353_v8, %v4265_v62  ;;  %v4374_v24 = vmul.f32 %v4349_v35, %v4258_v10 }
 0x4e3   : > { %v7619_v56 = vrot.slane %v2194_v41, %v6446_v13  ;;  %v4937_v28 = vcombine.high %v4929_v6, %v4929_v6  ;;  %v8278_v41 = vld [vmem:[#allocation34_spill] sm:$0xff] }
 0x4e4   : > { %v4401_v58 = vrot.slane %v4394_v47, %v6494_v17  ;;  %v4393_v23 = vrot.slane %v4386_v27, %v6494_v17  ;;  %v4383_v2 = vadd.f32 %v4375_v14, %v4159_v40  ;;  %v4382_v18 = vadd.f32 %v4374_v24, %v4158_v63 }
 0x4e5   : > { %v4279_v30 = vpop.permute.xlu0 %4278  ;;  %v4272_v50 = vpop.permute.xlu1 %4271  ;;  %v2224_v40 = vcombine.high %v2202_v49, %v2202_v49  ;;  %v4922_v63 = vcombine.high %v4864_v57, %v4864_v57  ;;  %v2193_v47 = vrot.slane %v2179_v0, %v6446_v13  ;;  %v7635_v27 = vrot.slane %v2410_v45, %v6446_v13 }
 0x4e6   : > { %v4418_v12 = vcombine.low %v4393_v23, %v4401_v58  ;;  %v4419_v5 = vcombine.high %v4393_v23, %v4401_v58  ;;  %v4377_v29 = vmul.f32 %v4361_v51, %v4279_v30  ;;  %v4376_v25 = vmul.f32 %v4357_v48, %v4272_v50 }
 0x4e7   : > { %v7638_v14 = vrot.slane %v2402_v39, %v6446_v13  ;;  %v4721_v24 = vcombine.high %v4713_v32, %v4713_v32  ;;  %v2235_v51 = vrot.slane %v7619_v56, %v6166_v22  ;;  %v4720_v48 = vrot.slane %v4706_v46, %v6446_v13 }
 0x4e8   : > { %v4385_v33 = vadd.f32 %v4377_v29, %v4161_v54  ;;  %v4384_v55 = vadd.f32 %v4376_v25, %v4160_v34  ;;  %v7622_v4 = vrot.slane %v4418_v12, %v8206_v21  ;;  %v7625_v60 = vrot.slane %v4419_v5, %v8206_v21 }
 0x4e9   : > { %v7600_v31 = vpop.permute.xlu0 %4661  ;;  %v7602_v1 = vpop.permute.xlu1 %4654  ;;  %v2239_v54 = vrot.slane %v2224_v40, %v6166_v22  ;;  %v4936_v34 = vrot.slane %v4922_v63, %v6446_v13  ;;  %v4959_v30 = vrot.slane %v4937_v28, %v6446_v13  ;;  %v4945_v50 = vrot.slane %v4929_v6, %v6446_v13 }
 0x4ea   : > { %v4410_v26 = vcombine.low %v4383_v2, %v4385_v33  ;;  %v4402_v15 = vcombine.low %v4382_v18, %v4384_v55  ;;  %v2395_v2 = vcombine.high %v7550_v37, %v7550_v37  ;;  %v2231_v18 = vrot.slane %v2202_v49, %v6166_v22  ;;  %v8277_v33 = vld [vmem:[#allocation49_spill] sm:$0xff] }
 0x4eb   : > { %v2440_v12 = vcombine.high %v7638_v14, %v7638_v14  ;;  %v4743_v37 = vrot.slane %v4721_v24, %v6446_v13  ;;  %v4729_v5 = vrot.slane %v4713_v32, %v6446_v13  ;;  %v2195_v57 = vcombine.high %v2193_v47, %v2193_v47 }
 0x4ec   : > { %v4417_v9 = vrot.slane %v4410_v26, %v6494_v17  ;;  %v4409_v11 = vrot.slane %v4402_v15, %v6494_v17  ;;  %v7671_v55 = vmul.f32 %v2235_v51, %v8277_v33  ;;  %v4722_v20 = vcombine.high %v4720_v48, %v4720_v48 }
 0x4ed   : > { %v7614_v43 = vpop.permute.xlu0 %4675  ;;  %v7616_v44 = vpop.permute.xlu1 %4668  ;;  %v7676_v26 = vmul.f32 %v2231_v18, %v8278_v41  ;;  %v7681_v49 = vrot.slane %v2193_v47, %v6446_v13  ;;  %v7684_v6 = vrot.slane %v2395_v2, %v6446_v13  ;;  %v4969_v0 = vcombine.high %v4959_v30, %v4959_v30 }
 0x4ee   : > { %v4434_v8 = vcombine.low %v4409_v11, %v4417_v9  ;;  %v4435_v35 = vcombine.high %v4409_v11, %v4417_v9  ;;  %v8279_v9 = vld [vmem:[#allocation35_spill] sm:$0xff]  ;;  %v4967_v45 = vcombine.high %v4945_v50, %v4945_v50  ;;  %v4938_v32 = vcombine.high %v4936_v34, %v4936_v34 }
 0x4ef   : > { %v7687_v11 = vmul.f32 %v2239_v54, %v8279_v9  ;;  %v7690_v46 = vrot.slane %v2440_v12, %v6166_v22  ;;  %v2226_v28 = vcombine.high %v7619_v56, %v7619_v56  ;;  %v4750_v47 = vrot.slane %v4722_v20, %v6446_v13 }
 0x4f0   : > { %v7628_v62 = vrot.slane %v4434_v8, %v8206_v21  ;;  %v7631_v10 = vrot.slane %v4435_v35, %v8206_v21  ;;  %v4753_v8 = vcombine.high %v4743_v37, %v4743_v37  ;;  %v4751_v35 = vcombine.high %v4729_v5, %v4729_v5 }
 0x4f1   : > { %v7640_v59 = vpop.permute.xlu0 %4689  ;;  %v7642_v36 = vpop.permute.xlu1 %4682  ;;  %v4736_v24 = vrot.slane %v4720_v48, %v6446_v13  ;;  %v2442_v51 = vcombine.high %v7635_v27, %v7635_v27  ;;  %v7699_v2 = vrot.slane %v2195_v57, %v6446_v13  ;;  %v4762_v18 = vrot.slane %v4743_v37, %v6166_v22 }
 0x4f2   : > { %v4758_v54 = vrot.slane %v4729_v5, %v6166_v22  ;;  %v2247_v12 = vrot.slane %v7681_v49, %v6166_v22  ;;  %v7707_v56 = vrot.slane %v7684_v6, %v6446_v13  ;;  %v4986_v33 = vrot.slane %v4969_v0, %v6166_v22 }
 0x4f3   : > { %v4982_v48 = vrot.slane %v4967_v45, %v6166_v22  ;;  %v4966_v20 = vrot.slane %v4938_v32, %v6446_v13  ;;  %v4952_v57 = vrot.slane %v4936_v34, %v6446_v13  ;;  %v4770_v41 = vrot.slane %v4753_v8, %v6166_v22 }
 0x4f4   : > { %v4766_v37 = vrot.slane %v4751_v35, %v6166_v22  ;;  %v4978_v5 = vrot.slane %v4959_v30, %v6166_v22  ;;  %v4974_v9 = vrot.slane %v4945_v50, %v6166_v22  ;;  %v4754_v19 = vcombine.high %v4750_v47, %v4750_v47 }
 0x4f5   : > { %v7666_v29 = vpop.permute.xlu0 %4703  ;;  %v7668_v25 = vpop.permute.xlu1 %4696  ;;  %v4752_v42 = vcombine.high %v4736_v24, %v4736_v24  ;;  %v4798_v45 = vmul.f32 %v4770_v41, %v7614_v43  ;;  %v4970_v58 = vcombine.high %v4966_v20, %v4966_v20  ;;  %v4968_v8 = vcombine.high %v4952_v57, %v4952_v57 }
 0x4f6   : > { %v4797_v32 = vmul.f32 %v4766_v37, %v7616_v44  ;;  %v2243_v35 = vrot.slane %v2226_v28, %v6166_v22  ;;  %v2411_v30 = vcombine.high %v7684_v6, %v7684_v6  ;;  %v4796_v50 = vmul.f32 %v4762_v18, %v7600_v31 }
 0x4f7   : > { %v4795_v15 = vmul.f32 %v4758_v54, %v7602_v1  ;;  %v4778_v43 = vrot.slane %v4750_v47, %v6166_v22  ;;  %v4774_v44 = vrot.slane %v4736_v24, %v6166_v22  ;;  %v4786_v28 = vrot.slane %v4754_v19, %v6166_v22 }
 0x4f8   : > { %v4782_v6 = vrot.slane %v4752_v42, %v6166_v22  ;;  %v4998_v54 = vrot.slane %v4968_v8, %v6166_v22  ;;  %v2439_v8 = vrot.slane %v2411_v30, %v6446_v13 }
 0x4f9   : > { %v4878_v40 = vpop.permute.xlu0 %4877  ;;  %v4871_v63 = vpop.permute.xlu1 %4870  ;;  %v4800_v47 = vmul.f32 %v4778_v43, %v7640_v59  ;;  %v4799_v24 = vmul.f32 %v4774_v44, %v7642_v36  ;;  %v4802_v19 = vmul.f32 %v4786_v28, %v7666_v29  ;;  %v2441_v59 = vcombine.high %v7707_v56, %v7707_v56  ;;  %v8281_v44 = vld [vmem:[#allocation50_spill] sm:$0xff] }
 0x4fa   : > { %v5012_v23 = vmul.f32 %v4978_v5, %v4878_v40  ;;  %v5011_v34 = vmul.f32 %v4974_v9, %v4871_v63  ;;  %v4994_v40 = vrot.slane %v4966_v20, %v6166_v22  ;;  %v4990_v63 = vrot.slane %v4952_v57, %v6166_v22 }
 0x4fb   : > { %v4801_v42 = vmul.f32 %v4782_v6, %v7668_v25  ;;  %v2459_v5 = vrot.slane %v2442_v51, %v6166_v22  ;;  %v2227_v36 = vcombine.high %v7699_v2, %v7699_v2  ;;  %v2251_v51 = vrot.slane %v7699_v2, %v6166_v22  ;;  %v8282_v2 = vld [vmem:[#allocation40_spill] sm:$0xff] }
 0x4fc   : > { %v5019_v31 = vadd.f32 %v5011_v34, %v4795_v15  ;;  %v2463_v43 = vrot.slane %v7707_v56, %v6166_v22  ;;  %v2486_v13 = vmul.f32 %v7690_v46, %v8282_v2  ;;  %v8284_v56 = vrot.slane %v7635_v27, %v6166_v22 }
 0x4fd   : > { %v4892_v16 = vpop.permute.xlu0 %4891  ;;  %v4885_v53 = vpop.permute.xlu1 %4884  ;;  %v2259_v6 = vrot.slane %v2227_v36, %v6166_v22  ;;  %v8286_v46 = vrot.slane %v7638_v14, %v6166_v22 }
 0x4fe   : > { %v5014_v7 = vmul.f32 %v4986_v33, %v4892_v16  ;;  %v5013_v0 = vmul.f32 %v4982_v48, %v4885_v53  ;;  %v5020_v48 = vadd.f32 %v5012_v23, %v4796_v50 }
 0x500   : > { %v5022_v39 = vadd.f32 %v5014_v7, %v4798_v45  ;;  %v5021_v16 = vadd.f32 %v5013_v0, %v4797_v32  ;;  %v5002_v7 = vrot.slane %v4970_v58, %v6166_v22  ;;  %v2225_v58 = vcombine.high %v7681_v49, %v7681_v49 }
 0x501   : > { %v4906_v53 = vpop.permute.xlu0 %4905  ;;  %v4899_v33 = vpop.permute.xlu1 %4898  ;;  %v2471_v49 = vrot.slane %v2441_v59, %v6166_v22 }
 0x502   : > { %v5016_v18 = vmul.f32 %v4994_v40, %v4906_v53  ;;  %v5015_v1 = vmul.f32 %v4990_v63, %v4899_v33  ;;  %v5035_v41 = vcombine.low %v5020_v48, %v5022_v39  ;;  %v5027_v20 = vcombine.low %v5019_v31, %v5021_v16  ;;  %v8280_v53 = vld [vmem:[#allocation36_spill] sm:$0xff] }
 0x503   : > { %v2272_v33 = vmul.f32 %v2247_v12, %v8280_v53  ;;  %v2271_v40 = vmul.f32 %v2243_v35, %v8281_v44  ;;  %v2255_v28 = vrot.slane %v2225_v58, %v6166_v22  ;;  %v8283_v12 = vld [vmem:[#allocation28_spill] sm:$0xff] }
 0x504   : > { %v5024_v39 = vadd.f32 %v5016_v18, %v4800_v47  ;;  %v5023_v9 = vadd.f32 %v5015_v1, %v4799_v24  ;;  %v5042_v29 = vrot.slane %v5035_v41, %v6494_v17  ;;  %v5034_v25 = vrot.slane %v5027_v20, %v6494_v17  ;;  %v8285_v47 = vld [vmem:[#allocation39_spill] sm:$0xff] }
 0x505   : > { %v4920_v37 = vpop.permute.xlu0 %4919  ;;  %v4913_v57 = vpop.permute.xlu1 %4912  ;;  %v2485_v31 = vmul.f32 %v8284_v56, %v8283_v12  ;;  %v2467_v1 = vrot.slane %v2439_v8, %v6166_v22  ;;  %v2484_v24 = vmul.f32 %v8286_v46, %v8285_v47  ;;  %v8292_v56 = vcombine.high %v7625_v60, %v7631_v10 }
 0x506   : > { %v5018_v23 = vmul.f32 %v5002_v7, %v4920_v37  ;;  %v5017_v15 = vmul.f32 %v4998_v54, %v4913_v57  ;;  %v5060_v35 = vcombine.high %v5034_v25, %v5042_v29  ;;  %v2443_v54 = vcombine.high %v2439_v8, %v2439_v8 }
 0x507   : > { %v5059_v41 = vcombine.low %v5034_v25, %v5042_v29  ;;  %v7782_v14 = vadd.f32 %v2485_v31, %v7671_v55  ;;  %v8288_v29 = vld [vmem:[#allocation52_spill] sm:$0xff] }
 0x508   : > { %v5026_v0 = vadd.f32 %v5018_v23, %v4802_v19  ;;  %v5025_v45 = vadd.f32 %v5017_v15, %v4801_v42  ;;  %v8287_v42 = vld [vmem:[#allocation37_spill] sm:$0xff]  ;;  %v7775_v15 = vadd.f32 %v2486_v13, %v7687_v11  ;;  %v5074_v36 = vrot.slane %v5060_v35, %v8206_v21 }
 0x509   : > { %v2372_v32 = vpop.permute.xlu0 %2371  ;;  %v2365_v34 = vpop.permute.xlu1 %2364  ;;  %v2274_v27 = vmul.f32 %v2255_v28, %v8287_v42  ;;  %v7792_v11 = vrot.slane %v5059_v41, %v8206_v21  ;;  %v2273_v25 = vmul.f32 %v2251_v51, %v8288_v29 }
 0x50a   : > { %v5051_v50 = vcombine.low %v5024_v39, %v5026_v0  ;;  %v5043_v16 = vcombine.low %v5023_v9, %v5025_v45  ;;  %v2487_v63 = vmul.f32 %v2459_v5, %v2365_v34  ;;  %v2488_v57 = vmul.f32 %v2463_v43, %v2372_v32  ;;  %v8289_v32 = vld [vmem:[#allocation58_spill] sm:$0xff] }
 0x50b   : > { %v2475_v9 = vrot.slane %v2443_v54, %v6166_v22  ;;  %v7789_v45 = vadd.f32 %v2484_v24, %v7676_v26  ;;  %v2275_v34 = vmul.f32 %v2259_v6, %v8289_v32 }
 0x50c   : > { %v5058_v30 = vrot.slane %v5051_v50, %v6494_v17  ;;  %v5050_v48 = vrot.slane %v5043_v16, %v6494_v17  ;;  %v7771_v19 = vadd.f32 %v2487_v63, %v2271_v40  ;;  %v7796_v8 = vadd.f32 %v2488_v57, %v2272_v33 }
 0x50d   : > { %v2386_v18 = vpop.permute.xlu0 %2385  ;;  %v2379_v7 = vpop.permute.xlu1 %2378  ;;  %v2500_v22 = vcombine.low %v7789_v45, %v7775_v15  ;;  %v8290_v33 = vcombine.low %v7625_v60, %v7631_v10  ;;  %v8291_v63 = vcombine.high %v7622_v4, %v7628_v62  ;;  %v5733_v10 = vld [vmem:[%s5951_s3 + $0x10] sm:$0xff]  }
 0x50e   : > { %v5075_v20 = vcombine.low %v5050_v48, %v5058_v30  ;;  %v5076_v37 = vcombine.high %v5050_v48, %v5058_v30  ;;  %v2490_v23 = vmul.f32 %v2471_v49, %v2386_v18  ;;  %v2489_v59 = vmul.f32 %v2467_v1, %v2379_v7  ;;  %v5730_v30 = vld [vmem:[%s5951_s3 + $0x20] sm:$0xff]   ;;  %v5731_v1 = vld [vmem:[%s5951_s3 + $0x18] sm:$0xff]  }
 0x50f   : > { %v2516_v55 = vcombine.low %v7782_v14, %v7771_v19  ;;  %v7821_v48 = vrot.slane %v2500_v22, %v6494_v17  ;;  %v5732_v7 = vld [vmem:[%s5951_s3 + $0x20] sm:$0xff]  }
 0x510   : > { %v7778_v5 = vrot.slane %v5075_v20, %v8206_v21  ;;  %v5090_v58 = vrot.slane %v5076_v37, %v8206_v21  ;;  %v7785_v39 = vadd.f32 %v2490_v23, %v2274_v27  ;;  %v2497_v26 = vadd.f32 %v2489_v59, %v2273_v25  ;;  %v5734_v20 = vld [vmem:[%s5951_s3 + $0x18] sm:$0xff]  }
 0x511   : > { %v2393_v0 = vpop.permute.xlu1 %2392  ;;  %v7813_v6 = vrot.slane %v2516_v55, %v6494_v17 }
 0x512   : > { %v2491_v50 = vmul.f32 %v2475_v9, %v2393_v0  ;;  %v5093_v16 = vcombine.low %v5074_v36, %v5090_v58  ;;  %v5092_v53 = vcombine.high %v7792_v11, %v7778_v5  ;;  %v2532_v51 = vcombine.low %v7796_v8, %v7785_v39 }
 0x513   : > { %v5094_v40 = vcombine.high %v5074_v36, %v5090_v58  ;;  %v5091_v13 = vcombine.low %v7792_v11, %v7778_v5  ;;  %v2564_v35 = vcombine.low %v7821_v48, %v7813_v6  ;;  %v8293_v58 = vcombine.low %v7397_v38, %v7386_v3 }
 0x514   : > { %v2499_v43 = vadd.f32 %v2491_v50, %v2275_v34  ;;  %v5715_v44 = vpack.i.bf16 %v5093_v16, %v8290_v33  ;;  %v5710_v28 = vpack.i.bf16 %v5092_v53, %v8291_v63  ;;  %v2540_v49 = vrot.slane %v2532_v51, %v6494_v17  ;;  %v5737_v50 = vld [vmem:[%s5951_s3 + $0x18] sm:$0xff]   ;;  %v5738_v33 = vld [vmem:[%s5951_s3 + $0x8] sm:$0xff]   ;;  %v8298_v63 = vld [vmem:[#allocation7_spill] sm:$0xff] }
 0x515   : > { %v5720_v31 = vpack.i.bf16 %v5094_v40, %v8292_v56  ;;  %v7840_v46 = vrot.slane %v2564_v35, %v8206_v21  ;;  %v8294_v36 = vcombine.low %v7457_v61, %v7462_v52  ;;  %v2517_v0 = vcombine.high %v7782_v14, %v7771_v19  ;;  %v5736_v19 = vld [vmem:[%s5951_s3 + $0x10] sm:$0xff]  }
 0x516   : > { %v2548_v2 = vcombine.low %v2497_v26, %v2499_v43  ;;  %5716 = vrot.lane.b32.xlu1 %v5715_v44, %s5852_s27  ;;  %5711 = vrot.lane.b32.xlu0 %v5710_v28, %s5868_s28  ;;  %v2549_v37 = vcombine.high %v2497_v26, %v2499_v43  ;;  %v2533_v29 = vcombine.high %v7796_v8, %v7785_v39  ;;  %v8296_v44 = vld [vmem:[#allocation27_spill] sm:$0xff]  ;;  %v8297_v40 = vld [vmem:[#allocation9_spill] sm:$0xff] }
 0x517   : > { %v2501_v38 = vcombine.high %v7789_v45, %v7775_v15  ;;  %v2565_v61 = vcombine.high %v7821_v48, %v7813_v6  ;;  %v8295_v45 = vmov 0.0   ;;  %v7878_v22 = vrot.slane %v2517_v0, %v6494_v17  ;;  %v8302_v48 = vld [vmem:[#allocation22_spill] sm:$0xff] }
 0x518   : > { %v2556_v12 = vrot.slane %v2548_v2, %v6494_v17  ;;  %v7866_v14 = vrot.slane %v2549_v37, %v6494_v17  ;;  %v2547_v26 = vrot.slane %v2533_v29, %v6494_v17  ;;  %v8299_v28 = vcombine.low %v8297_v40, %v8298_v63  ;;  %v8300_v2 = vld [vmem:[#allocation32_spill] sm:$0xff]  ;;  %v8309_v29 = vld [vmem:[#allocation31_spill] sm:$0xff] }
 0x519   : > { %v2579_v56 = vrot.slane %v2565_v61, %v8206_v21  ;;  %v8310_v61 = vld [vmem:[#allocation29_spill] sm:$0xff] }
 0x51a   : > { %v2596_v18 = vcombine.low %v2540_v49, %v2556_v12  ;;  %5721 = vrot.lane.b32.xlu1 %v5720_v31, %s5869_s7  ;;  %4477 = vrot.lane.b32.xlu0 %v5730_v30, %s5840_s18  ;;  %v2597_v23 = vcombine.high %v2540_v49, %v2556_v12  ;;  %v822_v6 = vsel %vm821_vm2, %v8299_v28, %v8296_v44  ;;  %v8301_v30 = vld [vmem:[#allocation6_spill] sm:$0xff] }
 0x51b   : > { %v8303_v49 = vcombine.low %v8301_v30, %v8302_v48  ;;  %v2515_v31 = vrot.slane %v2501_v38, %v6494_v17  ;;  %v2612_v35 = vcombine.low %v2547_v26, %v7866_v14 }
 0x51c   : > { %v7835_v54 = vrot.slane %v2596_v18, %v8206_v21  ;;  %v2611_v16 = vrot.slane %v2597_v23, %v8206_v21 }
 0x51d   : > { %v1440_v12 = vsel %vm821_vm2, %v8303_v49, %v8300_v2  ;;  %v2620_v23 = vrot.slane %v2612_v35, %v8206_v21  ;;  %v5744_v2 = vld [vmem:[%s5951_s3] sm:$0xff]   ;;  %v8316_v35 = vcombine.low %v7622_v4, %v7628_v62 }
 0x51e   : > { %4549 = vrot.lane.b32.xlu1 %v5731_v1, %s5840_s18  ;;  %5118 = vrot.lane.b32.xlu0 %v5732_v7, %s5843_s24  ;;  %v2628_v27 = vcombine.low %v7840_v46, %v7835_v54  ;;  %v2629_v15 = vcombine.high %v7840_v46, %v7835_v54  ;;  %v2630_v18 = vcombine.low %v2579_v56, %v2611_v16  ;;  %v5739_v1 = vld [vmem:[%s5951_s3 + $0x10] sm:$0xff]  }
 0x51f   : > { %v5697_v47 = vpop.permute.xlu0 %5696  ;;  %v5702_v60 = vpop.permute.xlu1 %5701  ;;  %v8304_v7 = vld [vmem:[#allocation41_spill] sm:$0xff] }
 0x520   : > { %v5699_v24 = vunpack.i.h.bf16 %v5697_v47  ;;  %v5698_v41 = vunpack.i.l.bf16 %v5697_v47  ;;  %v5704_v57 = vunpack.i.h.bf16 %v5702_v60  ;;  %v5703_v42 = vunpack.i.l.bf16 %v5702_v60  ;;  %v8305_v60 = vld [vmem:[#allocation45_spill] sm:$0xff] }
 0x521   : > { %v824_v47 = vsel %vm823_vm5, %v822_v6, %v8304_v7 }
 0x522   : > { %v3192_v59 = vsel %vm3191_vm1, %v8293_v58, %v5698_v41  ;;  %v3825_v9 = vsel %vm3191_vm1, %v8294_v36, %v5699_v24  ;;  %4547 = vrot.lane.b32.xlu1 %v5733_v10, %s5840_s18  ;;  %5190 = vrot.lane.b32.xlu0 %v5734_v20, %s5843_s24  ;;  %v1441_v10 = vsel %vm823_vm5, %v1440_v12, %v8305_v60  ;;  %v5740_v41 = vld [vmem:[%s5951_s3 + $0x8] sm:$0xff]   ;;  %v8306_v20 = vld [vmem:[#allocation43_spill] sm:$0xff] }
 0x523   : > { %v5707_v25 = vpop.permute.xlu0 %5706  ;;  %v3837_v3 = vpop.permute.xlu1 %3836  ;;  %v3826_v39 = vsel %vm821_vm2, %v3825_v9, %v5704_v57  ;;  %v3193_v34 = vsel %vm821_vm2, %v3192_v59, %v5703_v42  ;;  %v2580_v24 = vcombine.low %v2515_v31, %v7878_v22  ;;  %v826_v37 = vsel %vm825_vm6, %v824_v47, %v8306_v20  ;;  %v8307_v57 = vld [vmem:[#allocation47_spill] sm:$0xff]  ;;  %v5741_v36 = vld [vmem:[%s5951_s3 + $0x8] sm:$0xff]   ;;  %v8308_v9 = vld [vmem:[#allocation42_spill] sm:$0xff] }
 0x524   : > { %v5709_v52 = vunpack.i.h.bf16 %v5707_v25  ;;  %v5708_v32 = vunpack.i.l.bf16 %v5707_v25  ;;  %5459 = vmatpush3.bf16.msra.mxu0 %v3837_v3  ;;  %v1442_v42 = vsel %vm825_vm6, %v1441_v10, %v8307_v57  ;;  %v2613_v58 = vcombine.high %v2547_v26, %v7866_v14 }
 0x525   : > { %5464 = vmatprep.subr.bf16.mxu0 %v8295_v45  ;;  %v2631_v59 = vcombine.high %v2579_v56, %v2611_v16  ;;  %v828_v0 = vsel %vm827_vm7, %v826_v37, %v8308_v9  ;;  %v1443_v25 = vsel %vm827_vm7, %v1442_v42, %v8309_v29  ;;  %v2588_v38 = vrot.slane %v2580_v24, %v8206_v21  ;;  %v8313_v16 = vld [vmem:[#allocation46_spill] sm:$0xff] }
 0x526   : > { %v3195_v8 = vsel %vm3194_vm3, %v3193_v34, %v5708_v32  ;;  %v3827_v55 = vsel %vm3194_vm3, %v3826_v39, %v5709_v52  ;;  %2637 = vrot.lane.b32.xlu1 %v2629_v15, %s5852_s27  ;;  %5188 = vrot.lane.b32.xlu0 %v5736_v19, %s5843_s24  ;;  %v830_v52 = vsel %vm829_vm8, %v828_v0, %v8310_v61  ;;  %v8311_v32 = vld [vmem:[#allocation60_spill] sm:$0xff]  ;;  %v5742_v15 = vld [vmem:[%s5951_s3] sm:$0xff]  }
 0x527   : > { %v3196_v53 = vpack.c.bf16 %v3195_v8, %v3195_v8  ;;  %v3828_v51 = vpack.c.bf16 %v3827_v55, %v3827_v55  ;;  %v3909_v43 = vpop.permute.xlu0 %3908  ;;  %v3907_v17 = vpop.permute.xlu1 %3906  ;;  %v1444_v19 = vsel %vm829_vm8, %v1443_v25, %v8311_v32  ;;  %v2581_v14 = vcombine.high %v2515_v31, %v7878_v22  ;;  %v8312_v55 = vld [vmem:[#allocation44_spill] sm:$0xff] }
 0x528   : > { %v2633_v39 = vcombine.high %v2588_v38, %v2620_v23  ;;  %v2632_v34 = vcombine.low %v2588_v38, %v2620_v23  ;;  %v2627_v8 = vrot.slane %v2613_v58, %v8206_v21  ;;  %v1445_v26 = vsel %vm831_vm9, %v1444_v19, %v8313_v16  ;;  %v8317_v23 = vld [vmem:[#allocation55_spill] sm:$0xff]  ;;  %v8321_v25 = vld [vmem:[#allocation48_spill] sm:$0xff]  ;;  %v8322_v38 = vld [vmem:[#allocation10_spill] sm:$0xff] }
 0x529   : > { %5443 = vmatmul.mubr.msk.bf16.vlgmr.msra.gmra.mxu1 %vm823_vm5, %v3196_v53  ;;  %5461 = vmatmul.mubr.msk.bf16.vlgmr.msra.gmra.mxu0 %vm823_vm5, %v3828_v51  ;;  %v5743_v53 = vld [vmem:[%s5951_s3] sm:$0xff]   ;;  %v8314_v51 = vld [vmem:[#allocation30_spill] sm:$0xff]  ;;  %v2595_v40 = vrot.slane %v2581_v14, %v8206_v21  ;;  %s196_s3 = sand.u32 1, %s5806_s10  }
 0x52a   : > { %5447 = vmatpush3.bf16.msra.mxu1 %v5737_v50  ;;  %5465 = vmatpush3.bf16.msra.mxu0 %v3909_v43  ;;  %v832_v50 = vsel %vm831_vm9, %v830_v52, %v8312_v55  ;;  %v8318_v58 = vld [vmem:[#allocation23_spill] sm:$0xff]  ;;  %v8325_v55 = vld [vmem:[#allocation5_spill] sm:$0xff]  ;;  %s5375_s8 = sshll.u32 %s196_s3, 3  ;;  %s5256_s25 = scalar_lea.sflag [#allocation3], %s196_s3 }
 0x52b   : > { %4545 = vrot.lane.b32.xlu1 %v5738_v33, %s5840_s18  ;;  %5448 = vmatprep.subr.bf16.mxu1 %v8295_v45  ;;  %v3905_v3 = vpop.permute.xlu0 %3904  ;;  %v3903_v22 = vpop.permute.xlu1 %3902  ;;  %v834_v43 = vsel %vm833_vm10, %v832_v50, %v8314_v51  ;;  %v8315_v33 = vld [vmem:[#allocation33_spill] sm:$0xff]  ;;  %v2634_v63 = vcombine.low %v2595_v40, %v2627_v8  ;;  %v2635_v21 = vcombine.high %v2595_v40, %v2627_v8  ;;  %v8323_v19 = vld [vmem:[#allocation59_spill] sm:$0xff]  ;;  %s198_s16 = scalar_lea.vmem [#allocation2], %s5375_s8 }
 0x52c   : > { %2641 = vrot.lane.b32.xlu0 %v2630_v18, %s5851_s26  ;;  %5466 = vmatprep.subr.bf16.mxu0 %v8295_v45  ;;  %v1446_v44 = vsel %vm833_vm10, %v1445_v26, %v8315_v33  ;;  %v835_v28 = vpack.c.bf16 %v834_v43, %v834_v43  ;;  %v8326_v26 = vld [vmem:[#allocation56_spill] sm:$0xff] }
 0x52d   : > { %5454 = vmatprep.mubr.msk.bf16.mxu1 %vm5867_vm4, %v8295_v45  ;;  %5472 = vmatprep.mubr.msk.bf16.mxu0 %vm5867_vm4, %v8295_v45  ;;  %v1447_v6 = vpack.c.bf16 %v1446_v44, %v1446_v44 }
 0x52e   : > { %5449 = vmatpush3.bf16.msra.mxu1 %v5739_v1  ;;  %5467 = vmatpush3.bf16.msra.mxu0 %v3907_v17 }
 0x52f   : > { %5186 = vrot.lane.b32.xlu1 %v5740_v41, %s5843_s24  ;;  %5450 = vmatprep.subr.bf16.mxu1 %v8295_v45 }
 0x530   : > { %2645 = vrot.lane.b32.xlu0 %v2631_v59, %s5853_s29  ;;  %5468 = vmatprep.subr.bf16.mxu0 %v8295_v45  ;;  %v8319_v59 = vld [vmem:[#allocation24_spill] sm:$0xff] }
 0x532   : > { %5451 = vmatpush3.bf16.msra.mxu1 %v5741_v36  ;;  %5469 = vmatpush3.bf16.msra.mxu0 %v3905_v3  ;;  %v8320_v36 = vcombine.low %v8318_v58, %v8319_v59 }
 0x533   : > { %2653 = vrot.lane.b32.xlu1 %v2633_v39, %s5855_s4  ;;  %5452 = vmatprep.subr.bf16.mxu1 %v8295_v45  ;;  %v8324_v39 = vld [vmem:[#allocation8_spill] sm:$0xff] }
 0x534   : > { %2649 = vrot.lane.b32.xlu0 %v2632_v34, %s5854_s30  ;;  %5470 = vmatprep.subr.bf16.mxu0 %v8295_v45  ;;  %v2052_v9 = vsel %vm821_vm2, %v8320_v36, %v8317_v23 }
 0x535   : > { %v2053_v3 = vsel %vm823_vm5, %v2052_v9, %v8321_v25 }
 0x536   : > { %5453 = vmatpush3.bf16.msra.mxu1 %v5742_v15  ;;  %5471 = vmatpush3.bf16.msra.mxu0 %v3903_v22  ;;  %v2054_v61 = vsel %vm825_vm6, %v2053_v3, %v8322_v38 }
 0x537   : > { %4543 = vrot.lane.b32.xlu1 %v5743_v53, %s5840_s18  ;;  %5476 = vmatprep.subr.bf16.mxu1 %v8295_v45  ;;  %v2055_v14 = vsel %vm827_vm7, %v2054_v61, %v8323_v19  ;;  %s5271_s18 = sshll.u32 %s198_s16, 4  ;;  %s5272_s18 = int_to_ptr.vmem [resolvable:$true] %s5271_s18 }
 0x538   : > { %2657 = vrot.lane.b32.xlu0 %v2634_v63, %s5856_s5  ;;  %5494 = vmatprep.subr.bf16.mxu0 %v8295_v45  ;;  %v2056_v34 = vsel %vm829_vm8, %v2055_v14, %v8324_v39 }
 0x539   : > { %5455 = vmatmul.mubr.msk.bf16.vlgmr.msra.gmra.mxu1 %vm3272_vm11, %v835_v28  ;;  %5473 = vmatmul.mubr.msk.bf16.vlgmr.msra.gmra.mxu0 %vm3272_vm11, %v1447_v6  ;;  %v2057_v50 = vsel %vm831_vm9, %v2056_v34, %v8325_v55 }
 0x53a   : > { %5478 = vmatprep.mubr.msk.bf16.mxu1 %vm5867_vm4, %v8295_v45  ;;  %5496 = vmatprep.mubr.msk.bf16.mxu0 %vm5867_vm4, %v8295_v45  ;;  %v2058_v22 = vsel %vm833_vm10, %v2057_v50, %v8326_v26 }
 0x53b   : > { %5184 = vrot.lane.b32.xlu1 %v5744_v2, %s5843_s24  ;;  %v2059_v44 = vpack.c.bf16 %v2058_v22, %v2058_v22  ;;  %s8029_s24 = scalar_lea.hbm %s8073_s2, %s5409_s15 }
 0x53c   : > { %2661 = vrot.lane.b32.xlu0 %v2635_v21, %s5857_s6 }
 0x588   : > { %v5717_v30 = vpop.permute.xlu1 %5716  ;;  %v5712_v48 = vpop.permute.xlu0 %5711 }
 0x589   : > { %v5714_v49 = vunpack.i.h.bf16 %v5712_v48  ;;  %v5713_v12 = vunpack.i.l.bf16 %v5712_v48  ;;  %v5718_v56 = vunpack.i.l.bf16 %v5717_v30  ;;  %v5719_v31 = vunpack.i.h.bf16 %v5717_v30 }
 0x58b   : > { %v4466_v18 = vsel %vm3191_vm1, %v8316_v35, %v5713_v12  ;;  %v5107_v1 = vsel %vm3191_vm1, %v5091_v13, %v5714_v49 }
 0x58c   : > { %v5722_v7 = vpop.permute.xlu1 %5721  ;;  %v4478_v47 = vpop.permute.xlu0 %4477  ;;  %v4467_v24 = vsel %vm821_vm2, %v4466_v18, %v5718_v56  ;;  %v5108_v17 = vsel %vm821_vm2, %v5107_v1, %v5719_v31 }
 0x58d   : > { %v5724_v60 = vunpack.i.h.bf16 %v5722_v7  ;;  %v5723_v10 = vunpack.i.l.bf16 %v5722_v7  ;;  %5477 = vmatpush3.bf16.msra.mxu1 %v4478_v47 }
 0x58e   : > { %5482 = vmatprep.subr.bf16.mxu1 %v8295_v45 }
 0x58f   : > { %v4468_v41 = vsel %vm3194_vm3, %v4467_v24, %v5723_v10  ;;  %v5109_v62 = vsel %vm3194_vm3, %v5108_v17, %v5724_v60 }
 0x590   : > { %v4469_v4 = vpack.c.bf16 %v4468_v41, %v4468_v41  ;;  %v4550_v20 = vpop.permute.xlu1 %4549  ;;  %v5119_v5 = vpop.permute.xlu0 %5118  ;;  %v5110_v11 = vpack.c.bf16 %v5109_v62, %v5109_v62 }
 0x591   : > { %5495 = vmatpush3.bf16.msra.mxu0 %v5119_v5 }
 0x592   : > { %5479 = vmatmul.mubr.msk.bf16.vlgmr.msra.gmra.mxu1 %vm823_vm5, %v4469_v4  ;;  %5500 = vmatprep.subr.bf16.mxu0 %v8295_v45 }
 0x593   : > { %5483 = vmatpush3.bf16.msra.mxu1 %v4550_v20  ;;  %5490 = vmatprep.mubr.msk.bf16.mxu1 %vm5867_vm4, %v8295_v45 }
 0x594   : > { %v4548_v13 = vpop.permute.xlu1 %4547  ;;  %5484 = vmatprep.subr.bf16.mxu1 %v8295_v45  ;;  %v5191_v37 = vpop.permute.xlu0 %5190  ;;  %5497 = vmatmul.mubr.msk.bf16.vlgmr.msra.gmra.mxu0 %vm823_vm5, %v5110_v11 }
 0x595   : > { %5501 = vmatpush3.bf16.msra.mxu0 %v5191_v37  ;;  %5508 = vmatprep.mubr.msk.bf16.mxu0 %vm5867_vm4, %v8295_v45 }
 0x596   : > { %5502 = vmatprep.subr.bf16.mxu0 %v8295_v45 }
 0x597   : > { %5485 = vmatpush3.bf16.msra.mxu1 %v4548_v13 }
 0x598   : > { %v2638_v57 = vpop.permute.xlu1 %2637  ;;  %5486 = vmatprep.subr.bf16.mxu1 %v8295_v45  ;;  %v5189_v42 = vpop.permute.xlu0 %5188 }
 0x599   : > { %5503 = vmatpush3.bf16.msra.mxu0 %v5189_v42  ;;  %v2664_v16 = vsel %vm821_vm2, %v2628_v27, %v2638_v57 }
 0x59a   : > { %5504 = vmatprep.subr.bf16.mxu0 %v8295_v45 }
 0x59d   : > { %v4546_v0 = vpop.permute.xlu1 %4545 }
 0x59e   : > { %v2642_v29 = vpop.permute.xlu0 %2641  ;;  %5487 = vmatpush3.bf16.msra.mxu1 %v4546_v0 }
 0x59f   : > { %5488 = vmatprep.subr.bf16.mxu1 %v8295_v45  ;;  %v2665_v53 = vsel %vm823_vm5, %v2664_v16, %v2642_v29 }
 0x5a1   : > { %v5187_v52 = vpop.permute.xlu1 %5186 }
 0x5a2   : > { %v2646_v32 = vpop.permute.xlu0 %2645  ;;  %5505 = vmatpush3.bf16.msra.mxu0 %v5187_v52 }
 0x5a3   : > { %5506 = vmatprep.subr.bf16.mxu0 %v8295_v45  ;;  %v2666_v45 = vsel %vm825_vm6, %v2665_v53, %v2646_v32 }
 0x5a5   : > { %v2654_v15 = vpop.permute.xlu1 %2653 }
 0x5a6   : > { %v2650_v8 = vpop.permute.xlu0 %2649 }
 0x5a7   : > { %v2667_v43 = vsel %vm827_vm7, %v2666_v45, %v2650_v8 }
 0x5a8   : > { %v2668_v40 = vsel %vm829_vm8, %v2667_v43, %v2654_v15 }
 0x5a9   : > { %v4544_v51 = vpop.permute.xlu1 %4543 }
 0x5aa   : > { %v2658_v33 = vpop.permute.xlu0 %2657  ;;  %5489 = vmatpush3.bf16.msra.mxu1 %v4544_v51 }
 0x5ab   : > { %v2669_v54 = vsel %vm831_vm9, %v2668_v40, %v2658_v33 }
 0x5ad   : > { %v5185_v63 = vpop.permute.xlu1 %5184  ;;  %5491 = vmatmul.mubr.msk.bf16.vlgmr.msra.gmra.mxu1 %vm3272_vm11, %v2059_v44 }
 0x5ae   : > { %v2662_v46 = vpop.permute.xlu0 %2661  ;;  %5507 = vmatpush3.bf16.msra.mxu0 %v5185_v63 }
 0x5af   : > { %v2670_v27 = vsel %vm833_vm10, %v2669_v54, %v2662_v46 }
 0x5b0   : > { %v2671_v28 = vpack.c.bf16 %v2670_v27, %v2670_v27 }
 0x5b2   : > { %5509 = vmatmul.mubr.msk.bf16.vlgmr.msra.gmra.mxu0 %vm3272_vm11, %v2671_v28 }
 0x5e9   : > { %v3242_v6 = vpop.f32.mrf.mxu1  ;;  %v3876_v2 = vpop.f32.mrf.mxu0 }
 0x5eb   : > { %v5444_v21 = vpop.f32.mrf.mxu1  ;;  %v5462_v30 = vpop.f32.mrf.mxu0 }
 0x5ed   : > { %v3245_v48 = vpop.f32.mrf.mxu1  ;;  %v3879_v49 = vpop.f32.mrf.mxu0 }
 0x5ef   : > { %v5445_v12 = vpop.f32.mrf.mxu1  ;;  %v5463_v56 = vpop.f32.mrf.mxu0 }
 0x5f9   : > { %v3310_v31 = vpop.f32.mrf.mxu1  ;;  %v3951_v35 = vpop.f32.mrf.mxu0 }
 0x5fa   : > { %v3311_v18 = vadd.f32 %v3310_v31, %v3242_v6  ;;  %v3952_v1 = vadd.f32 %v3951_v35, %v3876_v2 }
 0x5fb   : > { %v5456_v7 = vpop.f32.mrf.mxu1  ;;  %v5474_v47 = vpop.f32.mrf.mxu0 }
 0x5fc   : > { %5240 = vrot.lane.b32.xlu0 %v3952_v1, %s5852_s27  ;;  %s5750_s27 = sshll.u32 %s5870_s12, 4  ;;  %s5751_s27 = int_to_ptr.vmem [resolvable:$false] %s5750_s27 }
 0x5fd   : > { %v3313_v60 = vpop.f32.mrf.mxu1  ;;  %v3954_v10 = vpop.f32.mrf.mxu0  ;;  %p5753_p1 = scmp.lt.s32.totalorder %s5272_s18, %s5751_s27 }
 0x5ff   : > { %v5457_v24 = vpop.f32.mrf.mxu1  ;;  %v5475_v17 = vpop.f32.mrf.mxu0 }
 0x652   : > { %v4517_v41 = vpop.f32.mrf.mxu1 }
 0x654   : > { %v5480_v4 = vpop.f32.mrf.mxu1  ;;  %v5158_v62 = vpop.f32.mrf.mxu0 }
 0x656   : > { %v4520_v20 = vpop.f32.mrf.mxu1  ;;  %v5498_v5 = vpop.f32.mrf.mxu0 }
 0x658   : > { %v5481_v11 = vpop.f32.mrf.mxu1  ;;  %v5161_v13 = vpop.f32.mrf.mxu0 }
 0x65a   : > { %v5499_v37 = vpop.f32.mrf.mxu0 }
 0x66d   : > { %v4592_v57 = vpop.f32.mrf.mxu1 }
 0x66e   : > { %v4593_v42 = vadd.f32 %v4592_v57, %v4517_v41  ;;  %v5241_v3 = vpop.permute.xlu0 %5240 }
 0x66f   : > { %v5492_v23 = vpop.f32.mrf.mxu1  ;;  %v5251_v61 = vsel %vm821_vm2, %v3311_v18, %v5241_v3 }
 0x670   : > { %5244 = vrot.lane.b32.xlu1 %v4593_v42, %s5851_s26  ;;  %s5746_s26 = scalar_lea.vmem %s5272_s18, 128 }
 0x671   : > { %v4595_v58 = vpop.f32.mrf.mxu1  ;;  %p5747_p12 = scmp.ne.s32.totalorder %s5272_s18, %s5746_s26 }
 0x672   : > { %v5233_v59 = vpop.f32.mrf.mxu0 }
 0x673   : > { %v5234_v36 = vadd.f32 %v5233_v59, %v5158_v62  ;;  %v5493_v9 = vpop.f32.mrf.mxu1  ;;  %p5748_p13 = pnand %p5747_p12, %p5926_p4 }
 0x674   : > { %v5510_v0 = vpop.f32.mrf.mxu0 }
 0x675   : > { %5248 = vrot.lane.b32.xlu0 %v5234_v36, %s5853_s29  ;;  %p5749_p0 = pneg %p5748_p13  ;;  %s5752_s29 = scalar_lea.vmem %s5751_s27, 256 }
 0x676   : > { %v5236_v29 = vpop.f32.mrf.mxu0  ;;  %p5754_p2 = scmp.lt.s32.totalorder %s5752_s29, %s5746_s26 }
 0x678   : > { %v5511_v25 = vpop.f32.mrf.mxu0  ;;  %p5755_p3 = por %p5754_p2, %p5753_p1 }
 0x67a   : > { %p5756_p5 = pnand %p5755_p3, %p5749_p0 }
 0x6e2   : > { %v5245_v38 = vpop.permute.xlu1 %5244 }
 0x6e3   : > { %v5252_v52 = vsel %vm823_vm5, %v5251_v61, %v5245_v38 }
 0x6e7   : > { %v5249_v32 = vpop.permute.xlu0 %5248 }
 0x6e8   : > { %v5253_v19 = vsel %vm825_vm6, %v5252_v52, %v5249_v32 }
 0x6e9   : > { %5254 = vst.msk [vmem:[%s198_s16] sm:$0xff] %vm827_vm7, %v5253_v19 }
 0x6ea   : > { %5759 = shalt.err (!%p5756_p5)
}
 0x6eb   : > { %s5760_s30 = scalar_lea.hbm %s8029_s24, 128  ;;  %s5764_s6 = scalar_lea.hbm %s8073_s2, 256 }
 0x6ec   : > { %p5761_p6 = scmp.ne.s32.totalorder %s8029_s24, %s5760_s30  ;;  %p5765_p10 = scmp.lt.s32.totalorder %s8029_s24, %s8073_s2 }
 0x6ed   : > { %p5766_p11 = scmp.lt.s32.totalorder %s5764_s6, %s5760_s30 }
 0x6ee   : > { %p5762_p7 = pnand %p5761_p6, %p5926_p4 }
 0x6ef   : > { %p5767_p12 = por %p5766_p11, %p5765_p10 }
 0x6f0   : > { %p5763_p9 = pneg %p5762_p7 }
 0x6f2   : > { %p5768_p13 = pnand %p5767_p12, %p5763_p9 }
 0x6f4   : > { %5771 = shalt.err (!%p5768_p13)
}
 0x6f5   : > { %5545 = dma.vmem_to_hbm [thread:$0]  (%p5926_p4), %s5272_s18, 128, %s8029_s24, %s5256_s25  }
 0x6f6 PF: > { %p5551_p0 = scmp.ge.s32.totalorder %s5822_s14, 2  ;;  %s5283_s3 = sand.u32 1, %s5802_s9  }
 0x6f7   : > { %s5284_s8 = scalar_lea.sflag [#allocation3], %s5283_s3 }
 0x6f8   : > { %p5548_p1 = pnand %p5551_p0, %p5933_p8 }
 0x6fa   : > { %p5549_p2 = pneg %p5548_p1 }
 0x6fc   : > { %5797 = dma.done.wait (%p5549_p2), %s5284_s8, 128  }
 0x6fd   : > { %5799 = vsyncadd (%p5549_p2), %s5284_s8, 4294967168  ;;  %s15_s14 = sadd.s32 1, %s5822_s14   ;;  %s8327_s9 = smov %s5806_s10 }
 0x6fe   : > { %p12_p3 = scmp.ge.s32.totalorder %s15_s14, 4   ;;  %s8328_s10 = smov %s5810_s11 }
 0x6ff   : > { %s8329_s11 = smov %s5939_s22  ;;  %s8330_s12 = smov %s5818_s13 }
 0x700   : > { %s8331_s13 = smov %s8333_s17  ;;  %14 = sbr.rel (!%p12_p3) target bundleno = 4 (0x4), region = 66 }
 0x705   :  { %5289 = vsyncpa [#allocation3], 1 }
 0x706   :  { %5291 = vsyncpa [#allocation3 + $0x1], 1 }

</bundles_post_ra>
